<compile_context>
chip_gen: v6e
topology: v6e:2x2x1
jax: 0.10.0
libtpu: 0.0.40
codegen_flags: <defaults>
</compile_context>

<pallas_src>
import math
import functools

import jax
import jax.numpy as jnp
from jax.experimental import pallas as pl
from jax.experimental.pallas import tpu as pltpu


# ------------------------------ fused layer kernel -------------------------------- #

def _encoder_layer_kernel(x_ref, wqkv_ref, bqkv_ref, wo_ref, bo_ref,
                          ln1g_ref, ln1b_ref, w1_ref, b1_ref, w2_ref, b2_ref,
                          ln2g_ref, ln2b_ref, *rest,
                          num_heads, scale, with_head):
    # One grid step = one batch element.
    # x: (S, D) bf16; matmul weights bf16 (pre-transposed (in, out)); biases / LN f32.
    if with_head:
        wh_ref, bh_ref, o_ref, attn_ref = rest
    else:
        o_ref, attn_ref = rest

    xb = x_ref[...]                                  # (S, D) bf16 (matmul operand)
    x = xb.astype(jnp.float32)                       # f32 copy for the residual path
    S, D = x.shape
    Dh = D // num_heads

    # ---- multi-head self-attention ----
    qkv = (jnp.dot(xb, wqkv_ref[...], preferred_element_type=jnp.float32)
           + bqkv_ref[...]).astype(jnp.bfloat16)     # (S, 3D), single up-front cast

    for h in range(num_heads):
        qh = qkv[:, h * Dh:(h + 1) * Dh]                         # (S, Dh) bf16
        kh = qkv[:, D + h * Dh:D + (h + 1) * Dh]                 # (S, Dh) bf16
        vh = qkv[:, 2 * D + h * Dh:2 * D + (h + 1) * Dh]         # (S, Dh) bf16
        # scores = q k^T * scale  (contract last dims -> no explicit transpose), f32
        s = jax.lax.dot_general(qh, kh, (((1,), (1,)), ((), ())),
                                preferred_element_type=jnp.float32) * scale
        m = jnp.max(s, axis=-1, keepdims=True)
        p = jnp.exp(s - m)
        # EUP reciprocal (approx) -> rows sum to ~1 (documented small divergence)
        p = p * pl.reciprocal(jnp.sum(p, axis=-1, keepdims=True), approx=True)
        ah = jnp.dot(p.astype(jnp.bfloat16), vh,
                     preferred_element_type=jnp.float32)         # (S, Dh) f32
        # head output lands at its static lane offset in the VMEM scratch
        attn_ref[:, h * Dh:(h + 1) * Dh] = ah.astype(jnp.bfloat16)

    # single K=D out-projection over the assembled (S, D) attention output
    proj = jnp.dot(attn_ref[...], wo_ref[...],
                   preferred_element_type=jnp.float32) + bo_ref[...]

    # residual + LayerNorm1 (f32 statistics)
    y = x + proj
    mu = jnp.mean(y, axis=-1, keepdims=True)
    c = y - mu
    var = jnp.mean(c * c, axis=-1, keepdims=True)
    h1 = c * jax.lax.rsqrt(var + 1e-5) * ln1g_ref[...] + ln1b_ref[...]   # (S, D) f32

    # ---- feed-forward ----
    t = jnp.dot(h1.astype(jnp.bfloat16), w1_ref[...],
                preferred_element_type=jnp.float32) + b1_ref[...]
    t = jnp.maximum(t, 0.0)
    f = jnp.dot(t.astype(jnp.bfloat16), w2_ref[...],
                preferred_element_type=jnp.float32) + b2_ref[...]

    # residual + LayerNorm2 (f32 statistics)
    y2 = h1 + f
    mu2 = jnp.mean(y2, axis=-1, keepdims=True)
    c2 = y2 - mu2
    var2 = jnp.mean(c2 * c2, axis=-1, keepdims=True)
    out = c2 * jax.lax.rsqrt(var2 + 1e-5) * ln2g_ref[...] + ln2b_ref[...]

    if with_head:
        # reasoning head fused into the last layer's kernel
        head = jnp.dot(out.astype(jnp.bfloat16), wh_ref[...],
                       preferred_element_type=jnp.float32) + bh_ref[...]
        o_ref[...] = head.astype(o_ref.dtype)        # f32 final output
    else:
        o_ref[...] = out.astype(o_ref.dtype)         # bf16 inter-layer hand-off


# ------------------------------ wrappers ------------------------------------------ #

@functools.lru_cache(maxsize=None)
def _vmem_limit_bytes():
    """Generation-aware scoped-VMEM budget (~3/4 of physical, capped at 96 MiB)."""
    try:
        cap = pltpu.get_tpu_info().vmem_capacity_bytes
    except Exception:
        cap = 64 * 1024 * 1024
    return int(min(cap * 3 // 4, 96 * 1024 * 1024))


@functools.lru_cache(maxsize=None)
def _single_buffer_supported():
    """Probe whether pipeline_mode=pl.Buffered(1) (single-buffered grid-invariant
    operands) is supported by this jax/Mosaic build; otherwise fall back to the
    default double-buffering."""
    try:
        def k(a_ref, o_ref):
            o_ref[...] = a_ref[...] * 2.0
        f = pl.pallas_call(
            k,
            out_shape=jax.ShapeDtypeStruct((8, 128), jnp.float32),
            grid=(2,),
            in_specs=[pl.BlockSpec((8, 128), lambda i: (0, 0),
                                   pipeline_mode=pl.Buffered(1))],
            out_specs=pl.BlockSpec((8, 128), lambda i: (0, 0)),
        )
        jax.block_until_ready(f(jnp.zeros((8, 128), jnp.float32)))
        return True
    except Exception:
        return False


def _const_spec(shape):
    """BlockSpec for a grid-invariant operand (constant index map, single-buffered
    when supported so weights are not duplicated in VMEM)."""
    idx = lambda i: (0, 0)
    if _single_buffer_supported():
        return pl.BlockSpec(shape, idx, pipeline_mode=pl.Buffered(1))
    return pl.BlockSpec(shape, idx)


def encoder_layer(x2d, lp, *, seq_len, num_heads, head_w=None, head_b=None):
    """One fused transformer encoder layer (optionally with the reasoning head).

    x2d: (B*S, D) bf16, batch-major (each batch's sequence is a contiguous row block).
    Returns (B*S, D) bf16, or (B*S, head_dim) f32 when the head is fused.
    """
    N, D = x2d.shape
    B = N // seq_len
    scale = 1.0 / math.sqrt(D // num_heads)
    Hff = lp['lin1_w_t'].shape[1]
    with_head = head_w is not None

    ins = [x2d,
           lp['in_proj_w_t'], lp['in_proj_b'],
           lp['out_proj_w_t'], lp['out_proj_b'],
           lp['ln1_g'], lp['ln1_b'],
           lp['lin1_w_t'], lp['lin1_b'],
           lp['lin2_w_t'], lp['lin2_b'],
           lp['ln2_g'], lp['ln2_b']]
    in_specs = [
        pl.BlockSpec((seq_len, D), lambda i: (i, 0)),      # activations (pipelined)
        _const_spec((D, 3 * D)), _const_spec((1, 3 * D)),
        _const_spec((D, D)), _const_spec((1, D)),
        _const_spec((1, D)), _const_spec((1, D)),
        _const_spec((D, Hff)), _const_spec((1, Hff)),
        _const_spec((Hff, D)), _const_spec((1, D)),
        _const_spec((1, D)), _const_spec((1, D)),
    ]
    if with_head:
        Ho = head_w.shape[1]
        ins += [head_w, head_b]
        in_specs += [_const_spec((D, Ho)), _const_spec((1, Ho))]
        out_shape = jax.ShapeDtypeStruct((N, Ho), jnp.float32)
        out_spec = pl.BlockSpec((seq_len, Ho), lambda i: (i, 0))
    else:
        out_shape = jax.ShapeDtypeStruct((N, D), jnp.bfloat16)
        out_spec = pl.BlockSpec((seq_len, D), lambda i: (i, 0))

    return pl.pallas_call(
        functools.partial(_encoder_layer_kernel, num_heads=num_heads,
                          scale=scale, with_head=with_head),
        out_shape=out_shape,
        grid=(B,),
        in_specs=in_specs,
        out_specs=out_spec,
        scratch_shapes=[pltpu.VMEM((seq_len, D), jnp.bfloat16)],   # attn-concat scratch
        compiler_params=pltpu.CompilerParams(
            dimension_semantics=("parallel",),
            vmem_limit_bytes=_vmem_limit_bytes()),
    )(*ins)


# ------------------------- parameters & forward pass ------------------------------ #

def init_params(key, input_dim, hidden_dim, num_layers=6):
    def normal_bf16(k, shape):
        # matmul weights stored pre-transposed (in, out) in bf16 for MXU peak
        return (0.02 * jax.random.normal(k, shape, jnp.float32)).astype(jnp.bfloat16)

    layers = []
    for _ in range(num_layers):
        key, k0, k1, k2, k3 = jax.random.split(key, 5)
        layers.append(dict(
            in_proj_w_t=normal_bf16(k0, (input_dim, 3 * input_dim)),
            in_proj_b=jnp.zeros((1, 3 * input_dim), jnp.float32),
            out_proj_w_t=normal_bf16(k1, (input_dim, input_dim)),
            out_proj_b=jnp.zeros((1, input_dim), jnp.float32),
            ln1_g=jnp.ones((1, input_dim), jnp.float32),
            ln1_b=jnp.zeros((1, input_dim), jnp.float32),
            lin1_w_t=normal_bf16(k2, (input_dim, hidden_dim)),
            lin1_b=jnp.zeros((1, hidden_dim), jnp.float32),
            lin2_w_t=normal_bf16(k3, (hidden_dim, input_dim)),
            lin2_b=jnp.zeros((1, input_dim), jnp.float32),
            ln2_g=jnp.ones((1, input_dim), jnp.float32),
            ln2_b=jnp.zeros((1, input_dim), jnp.float32),
        ))
    key, kh = jax.random.split(key)
    return dict(
        layers=layers,
        head_w_t=normal_bf16(kh, (input_dim, hidden_dim)),
        head_b=jnp.zeros((1, hidden_dim), jnp.float32),
    )


def reasoning_transformer_forward(x, params, *, num_heads):
    # x: (S, B, D) f32, as in nn.TransformerEncoder (batch_first=False)
    S, B, D = x.shape
    assert D % num_heads == 0, "d_model must be divisible by num_heads"
    assert (S % 8 == 0) or (B == 1), \
        "seq_len must be a multiple of 8 (BlockSpec (8,128) constraint on row blocks)"

    # batch-major 2-D layout (contiguous per-batch row blocks), bf16 hand-offs
    h2d = x.transpose(1, 0, 2).reshape(B * S, D).astype(jnp.bfloat16)

    layers = params['layers']
    for lp in layers[:-1]:
        h2d = encoder_layer(h2d, lp, seq_len=S, num_heads=num_heads)
    # last layer with the reasoning head fused in
    out2d = encoder_layer(h2d, layers[-1], seq_len=S, num_heads=num_heads,
                          head_w=params['head_w_t'], head_b=params['head_b'])

    hidden_dim = params['head_w_t'].shape[1]
    return out2d.reshape(B, S, hidden_dim).transpose(1, 0, 2)   # back to (S, B, hidden)


# --------------------------------------- main -------------------------------------- #

if __name__ == "__main__":
    # small shapes consistent with the module (defaults 512/256/8 scaled down);
    # D=128 keeps the activation lanes dense, S=16 keeps bf16 row blocks tile-aligned.
    INPUT_DIM, HIDDEN_DIM, NUM_HEADS = 128, 64, 4
    SEQ, BATCH = 16, 2

    # resolve probes outside the jit trace
    _single_buffer_supported()
    _vmem_limit_bytes()

    key = jax.random.PRNGKey(0)
    kx, kp = jax.random.split(key)
    x = jax.random.normal(kx, (SEQ, BATCH, INPUT_DIM), jnp.float32)
    params = init_params(kp, INPUT_DIM, HIDDEN_DIM, num_layers=6)

    fwd = jax.jit(functools.partial(reasoning_transformer_forward, num_heads=NUM_HEADS))
    out = fwd(x, params)
    jax.block_until_ready(out)

    assert out.shape == (SEQ, BATCH, HIDDEN_DIM)
    assert out.dtype == jnp.float32
    print("KERNEL_OK")
</pallas_src>

<mosaic_0001>
module attributes {stable_mosaic.version = 11 : i64} {
  func.func @k(%arg0: i32, %arg1: memref<8x128xf32, #tpu.memory_space<vmem>>, %arg2: memref<8x128xf32, #tpu.memory_space<vmem>>) attributes {dimension_semantics = [#tpu.dimension_semantics<arbitrary>], iteration_bounds = array<i64: 2>, scalar_prefetch = 0 : i64, scratch_operands = 0 : i64, tpu.core_type = #tpu.core_type<tc>, window_params = [{pipeline_mode = #tpu.pipeline_mode<synchronous>, transform_indices = @transform_0, window_bounds = array<i64: 8, 128>}, {pipeline_mode = #tpu.pipeline_mode<synchronous>, transform_indices = @transform_1, window_bounds = array<i64: 8, 128>}]} {
    %c0 = arith.constant 0 : index
    %c0_0 = arith.constant 0 : index
    %0 = vector.load %arg1[%c0, %c0_0] : memref<8x128xf32, #tpu.memory_space<vmem>>, vector<8x128xf32>
    %cst = arith.constant 2.000000e+00 : f32
    %1 = vector.broadcast %cst : f32 to vector<8x128xf32>
    %2 = arith.mulf %0, %1 : vector<8x128xf32>
    %c0_1 = arith.constant 0 : index
    %c0_2 = arith.constant 0 : index
    %3 = vector.load %arg2[%c0_1, %c0_2] : memref<8x128xf32, #tpu.memory_space<vmem>>, vector<8x128xf32>
    tpu.vector_store %arg2[%c0_1, %c0_2], %2 {strides = array<i32>} : memref<8x128xf32, #tpu.memory_space<vmem>>, vector<8x128xf32>,
    return
  }
  func.func @transform_0(%arg0: i32) -> (i32, i32) {
    %c0_i32 = arith.constant 0 : i32
    %c0_i32_0 = arith.constant 0 : i32
    %c0_i32_1 = arith.constant 0 : i32
    return %c0_i32, %c0_i32_0 : i32, i32
  }
  func.func @transform_1(%arg0: i32) -> (i32, i32) {
    %c0_i32 = arith.constant 0 : i32
    %c0_i32_0 = arith.constant 0 : i32
    %c0_i32_1 = arith.constant 0 : i32
    return %c0_i32, %c0_i32_0 : i32, i32
  }
}

module attributes {stable_mosaic.version = 11 : i64} {
  func.func @_encoder_layer_kernel(%arg0: i32, %arg1: memref<16x128xbf16, #tpu.memory_space<vmem>>, %arg2: memref<128x384xbf16, #tpu.memory_space<vmem>>, %arg3: memref<1x384xf32, #tpu.memory_space<vmem>>, %arg4: memref<128x128xbf16, #tpu.memory_space<vmem>>, %arg5: memref<1x128xf32, #tpu.memory_space<vmem>>, %arg6: memref<1x128xf32, #tpu.memory_space<vmem>>, %arg7: memref<1x128xf32, #tpu.memory_space<vmem>>, %arg8: memref<128x64xbf16, #tpu.memory_space<vmem>>, %arg9: memref<1x64xf32, #tpu.memory_space<vmem>>, %arg10: memref<64x128xbf16, #tpu.memory_space<vmem>>, %arg11: memref<1x128xf32, #tpu.memory_space<vmem>>, %arg12: memref<1x128xf32, #tpu.memory_space<vmem>>, %arg13: memref<1x128xf32, #tpu.memory_space<vmem>>, %arg14: memref<16x128xbf16, #tpu.memory_space<vmem>>, %arg15: memref<16x128xbf16, #tpu.memory_space<vmem>>) attributes {dimension_semantics = [#tpu.dimension_semantics<parallel>], iteration_bounds = array<i64: 2>, scalar_prefetch = 0 : i64, scratch_operands = 1 : i64, tpu.core_type = #tpu.core_type<tc>, window_params = [{transform_indices = @transform_0, window_bounds = array<i64: 16, 128>}, {pipeline_mode = #tpu.pipeline_mode<synchronous>, transform_indices = @transform_1, window_bounds = array<i64: 128, 384>}, {pipeline_mode = #tpu.pipeline_mode<synchronous>, transform_indices = @transform_2, window_bounds = array<i64: 1, 384>}, {pipeline_mode = #tpu.pipeline_mode<synchronous>, transform_indices = @transform_3, window_bounds = array<i64: 128, 128>}, {pipeline_mode = #tpu.pipeline_mode<synchronous>, transform_indices = @transform_4, window_bounds = array<i64: 1, 128>}, {pipeline_mode = #tpu.pipeline_mode<synchronous>, transform_indices = @transform_5, window_bounds = array<i64: 1, 128>}, {pipeline_mode = #tpu.pipeline_mode<synchronous>, transform_indices = @transform_6, window_bounds = array<i64: 1, 128>}, {pipeline_mode = #tpu.pipeline_mode<synchronous>, transform_indices = @transform_7, window_bounds = array<i64: 128, 64>}, {pipeline_mode = #tpu.pipeline_mode<synchronous>, transform_indices = @transform_8, window_bounds = array<i64: 1, 64>}, {pipeline_mode = #tpu.pipeline_mode<synchronous>, transform_indices = @transform_9, window_bounds = array<i64: 64, 128>}, {pipeline_mode = #tpu.pipeline_mode<synchronous>, transform_indices = @transform_10, window_bounds = array<i64: 1, 128>}, {pipeline_mode = #tpu.pipeline_mode<synchronous>, transform_indices = @transform_11, window_bounds = array<i64: 1, 128>}, {pipeline_mode = #tpu.pipeline_mode<synchronous>, transform_indices = @transform_12, window_bounds = array<i64: 1, 128>}, {transform_indices = @transform_13, window_bounds = array<i64: 16, 128>}]} {
    %c0 = arith.constant 0 : index
    %c0_0 = arith.constant 0 : index
    %0 = vector.load %arg1[%c0, %c0_0] : memref<16x128xbf16, #tpu.memory_space<vmem>>, vector<16x128xbf16>
    %1 = arith.extf %0 : vector<16x128xbf16> to vector<16x128xf32>
    %c0_1 = arith.constant 0 : index
    %c0_2 = arith.constant 0 : index
    %2 = vector.load %arg2[%c0_1, %c0_2] : memref<128x384xbf16, #tpu.memory_space<vmem>>, vector<128x384xbf16>
    %cst = arith.constant dense<0.000000e+00> : vector<16x384xf32>
    %3 = tpu.matmul %0, %2, %cst {dimension_numbers = #tpu.dot_dimension_numbers<[1], [0], [0], [1], [0, 0, 1, 1], [], []>} : vector<16x128xbf16>, vector<128x384xbf16>, vector<16x384xf32> -> vector<16x384xf32>
    %c0_3 = arith.constant 0 : index
    %c0_4 = arith.constant 0 : index
    %4 = vector.load %arg3[%c0_3, %c0_4] : memref<1x384xf32, #tpu.memory_space<vmem>>, vector<1x384xf32>
    %5 = vector.broadcast %4 : vector<1x384xf32> to vector<16x384xf32>
    %6 = arith.addf %3, %5 : vector<16x384xf32>
    %7 = arith.truncf %6 : vector<16x384xf32> to vector<16x384xbf16>
    %8 = vector.extract_strided_slice %7 {offsets = [0, 0], sizes = [16, 32], strides = [1, 1]} : vector<16x384xbf16> to vector<16x32xbf16>
    %9 = vector.extract_strided_slice %7 {offsets = [0, 128], sizes = [16, 32], strides = [1, 1]} : vector<16x384xbf16> to vector<16x32xbf16>
    %10 = vector.extract_strided_slice %7 {offsets = [0, 256], sizes = [16, 32], strides = [1, 1]} : vector<16x384xbf16> to vector<16x32xbf16>
    %cst_5 = arith.constant dense<0.000000e+00> : vector<16x16xf32>
    %11 = tpu.matmul %8, %9, %cst_5 {dimension_numbers = #tpu.dot_dimension_numbers<[1], [1], [0], [0], [0, 0, 1, 0], [], []>} : vector<16x32xbf16>, vector<16x32xbf16>, vector<16x16xf32> -> vector<16x16xf32>
    %cst_6 = arith.constant 0.176776692 : f32
    %12 = vector.broadcast %cst_6 : f32 to vector<16x16xf32>
    %13 = arith.mulf %11, %12 : vector<16x16xf32>
    %cst_7 = arith.constant dense<0xFF800000> : vector<16xf32>
    %14 = vector.multi_reduction <maximumf>, %13, %cst_7 [1] : vector<16x16xf32> to vector<16xf32>
    %15 = vector.shape_cast %14 : vector<16xf32> to vector<16x1xf32>
    %16 = vector.broadcast %15 : vector<16x1xf32> to vector<16x16xf32>
    %17 = arith.subf %13, %16 : vector<16x16xf32>
    %18 = math.exp %17 : vector<16x16xf32>
    %cst_8 = arith.constant dense<0.000000e+00> : vector<16xf32>
    %19 = vector.multi_reduction <add>, %18, %cst_8 [1] : vector<16x16xf32> to vector<16xf32>
    %20 = vector.shape_cast %19 : vector<16xf32> to vector<16x1xf32>
    %21 = tpu.reciprocal %20 {approx = true} : vector<16x1xf32> -> vector<16x1xf32>
    %22 = vector.broadcast %21 : vector<16x1xf32> to vector<16x16xf32>
    %23 = arith.mulf %18, %22 : vector<16x16xf32>
    %24 = arith.truncf %23 : vector<16x16xf32> to vector<16x16xbf16>
    %cst_9 = arith.constant dense<0.000000e+00> : vector<16x32xf32>
    %25 = tpu.matmul %24, %10, %cst_9 {dimension_numbers = #tpu.dot_dimension_numbers<[1], [0], [0], [1], [0, 0, 1, 1], [], []>} : vector<16x16xbf16>, vector<16x32xbf16>, vector<16x32xf32> -> vector<16x32xf32>
    %26 = arith.truncf %25 : vector<16x32xf32> to vector<16x32xbf16>
    %c0_10 = arith.constant 0 : index
    %c0_11 = arith.constant 0 : index
    %27 = vector.load %arg15[%c0_10, %c0_11] : memref<16x128xbf16, #tpu.memory_space<vmem>>, vector<16x32xbf16>
    tpu.vector_store %arg15[%c0_10, %c0_11], %26 {strides = array<i32>} : memref<16x128xbf16, #tpu.memory_space<vmem>>, vector<16x32xbf16>,
    %28 = vector.extract_strided_slice %7 {offsets = [0, 32], sizes = [16, 32], strides = [1, 1]} : vector<16x384xbf16> to vector<16x32xbf16>
    %29 = vector.extract_strided_slice %7 {offsets = [0, 160], sizes = [16, 32], strides = [1, 1]} : vector<16x384xbf16> to vector<16x32xbf16>
    %30 = vector.extract_strided_slice %7 {offsets = [0, 288], sizes = [16, 32], strides = [1, 1]} : vector<16x384xbf16> to vector<16x32xbf16>
    %cst_12 = arith.constant dense<0.000000e+00> : vector<16x16xf32>
    %31 = tpu.matmul %28, %29, %cst_12 {dimension_numbers = #tpu.dot_dimension_numbers<[1], [1], [0], [0], [0, 0, 1, 0], [], []>} : vector<16x32xbf16>, vector<16x32xbf16>, vector<16x16xf32> -> vector<16x16xf32>
    %cst_13 = arith.constant 0.176776692 : f32
    %32 = vector.broadcast %cst_13 : f32 to vector<16x16xf32>
    %33 = arith.mulf %31, %32 : vector<16x16xf32>
    %cst_14 = arith.constant dense<0xFF800000> : vector<16xf32>
    %34 = vector.multi_reduction <maximumf>, %33, %cst_14 [1] : vector<16x16xf32> to vector<16xf32>
    %35 = vector.shape_cast %34 : vector<16xf32> to vector<16x1xf32>
    %36 = vector.broadcast %35 : vector<16x1xf32> to vector<16x16xf32>
    %37 = arith.subf %33, %36 : vector<16x16xf32>
    %38 = math.exp %37 : vector<16x16xf32>
    %cst_15 = arith.constant dense<0.000000e+00> : vector<16xf32>
    %39 = vector.multi_reduction <add>, %38, %cst_15 [1] : vector<16x16xf32> to vector<16xf32>
    %40 = vector.shape_cast %39 : vector<16xf32> to vector<16x1xf32>
    %41 = tpu.reciprocal %40 {approx = true} : vector<16x1xf32> -> vector<16x1xf32>
    %42 = vector.broadcast %41 : vector<16x1xf32> to vector<16x16xf32>
    %43 = arith.mulf %38, %42 : vector<16x16xf32>
    %44 = arith.truncf %43 : vector<16x16xf32> to vector<16x16xbf16>
    %cst_16 = arith.constant dense<0.000000e+00> : vector<16x32xf32>
    %45 = tpu.matmul %44, %30, %cst_16 {dimension_numbers = #tpu.dot_dimension_numbers<[1], [0], [0], [1], [0, 0, 1, 1], [], []>} : vector<16x16xbf16>, vector<16x32xbf16>, vector<16x32xf32> -> vector<16x32xf32>
    %46 = arith.truncf %45 : vector<16x32xf32> to vector<16x32xbf16>
    %c0_17 = arith.constant 0 : index
    %c32 = arith.constant 32 : index
    %47 = vector.load %arg15[%c0_17, %c32] : memref<16x128xbf16, #tpu.memory_space<vmem>>, vector<16x32xbf16>
    tpu.vector_store %arg15[%c0_17, %c32], %46 {strides = array<i32>} : memref<16x128xbf16, #tpu.memory_space<vmem>>, vector<16x32xbf16>,
    %48 = vector.extract_strided_slice %7 {offsets = [0, 64], sizes = [16, 32], strides = [1, 1]} : vector<16x384xbf16> to vector<16x32xbf16>
    %49 = vector.extract_strided_slice %7 {offsets = [0, 192], sizes = [16, 32], strides = [1, 1]} : vector<16x384xbf16> to vector<16x32xbf16>
    %50 = vector.extract_strided_slice %7 {offsets = [0, 320], sizes = [16, 32], strides = [1, 1]} : vector<16x384xbf16> to vector<16x32xbf16>
    %cst_18 = arith.constant dense<0.000000e+00> : vector<16x16xf32>
    %51 = tpu.matmul %48, %49, %cst_18 {dimension_numbers = #tpu.dot_dimension_numbers<[1], [1], [0], [0], [0, 0, 1, 0], [], []>} : vector<16x32xbf16>, vector<16x32xbf16>, vector<16x16xf32> -> vector<16x16xf32>
    %cst_19 = arith.constant 0.176776692 : f32
    %52 = vector.broadcast %cst_19 : f32 to vector<16x16xf32>
    %53 = arith.mulf %51, %52 : vector<16x16xf32>
    %cst_20 = arith.constant dense<0xFF800000> : vector<16xf32>
    %54 = vector.multi_reduction <maximumf>, %53, %cst_20 [1] : vector<16x16xf32> to vector<16xf32>
    %55 = vector.shape_cast %54 : vector<16xf32> to vector<16x1xf32>
    %56 = vector.broadcast %55 : vector<16x1xf32> to vector<16x16xf32>
    %57 = arith.subf %53, %56 : vector<16x16xf32>
    %58 = math.exp %57 : vector<16x16xf32>
    %cst_21 = arith.constant dense<0.000000e+00> : vector<16xf32>
    %59 = vector.multi_reduction <add>, %58, %cst_21 [1] : vector<16x16xf32> to vector<16xf32>
    %60 = vector.shape_cast %59 : vector<16xf32> to vector<16x1xf32>
    %61 = tpu.reciprocal %60 {approx = true} : vector<16x1xf32> -> vector<16x1xf32>
    %62 = vector.broadcast %61 : vector<16x1xf32> to vector<16x16xf32>
    %63 = arith.mulf %58, %62 : vector<16x16xf32>
    %64 = arith.truncf %63 : vector<16x16xf32> to vector<16x16xbf16>
    %cst_22 = arith.constant dense<0.000000e+00> : vector<16x32xf32>
    %65 = tpu.matmul %64, %50, %cst_22 {dimension_numbers = #tpu.dot_dimension_numbers<[1], [0], [0], [1], [0, 0, 1, 1], [], []>} : vector<16x16xbf16>, vector<16x32xbf16>, vector<16x32xf32> -> vector<16x32xf32>
    %66 = arith.truncf %65 : vector<16x32xf32> to vector<16x32xbf16>
    %c0_23 = arith.constant 0 : index
    %c64 = arith.constant 64 : index
    %67 = vector.load %arg15[%c0_23, %c64] : memref<16x128xbf16, #tpu.memory_space<vmem>>, vector<16x32xbf16>
    tpu.vector_store %arg15[%c0_23, %c64], %66 {strides = array<i32>} : memref<16x128xbf16, #tpu.memory_space<vmem>>, vector<16x32xbf16>,
    %68 = vector.extract_strided_slice %7 {offsets = [0, 96], sizes = [16, 32], strides = [1, 1]} : vector<16x384xbf16> to vector<16x32xbf16>
    %69 = vector.extract_strided_slice %7 {offsets = [0, 224], sizes = [16, 32], strides = [1, 1]} : vector<16x384xbf16> to vector<16x32xbf16>
    %70 = vector.extract_strided_slice %7 {offsets = [0, 352], sizes = [16, 32], strides = [1, 1]} : vector<16x384xbf16> to vector<16x32xbf16>
    %cst_24 = arith.constant dense<0.000000e+00> : vector<16x16xf32>
    %71 = tpu.matmul %68, %69, %cst_24 {dimension_numbers = #tpu.dot_dimension_numbers<[1], [1], [0], [0], [0, 0, 1, 0], [], []>} : vector<16x32xbf16>, vector<16x32xbf16>, vector<16x16xf32> -> vector<16x16xf32>
    %cst_25 = arith.constant 0.176776692 : f32
    %72 = vector.broadcast %cst_25 : f32 to vector<16x16xf32>
    %73 = arith.mulf %71, %72 : vector<16x16xf32>
    %cst_26 = arith.constant dense<0xFF800000> : vector<16xf32>
    %74 = vector.multi_reduction <maximumf>, %73, %cst_26 [1] : vector<16x16xf32> to vector<16xf32>
    %75 = vector.shape_cast %74 : vector<16xf32> to vector<16x1xf32>
    %76 = vector.broadcast %75 : vector<16x1xf32> to vector<16x16xf32>
    %77 = arith.subf %73, %76 : vector<16x16xf32>
    %78 = math.exp %77 : vector<16x16xf32>
    %cst_27 = arith.constant dense<0.000000e+00> : vector<16xf32>
    %79 = vector.multi_reduction <add>, %78, %cst_27 [1] : vector<16x16xf32> to vector<16xf32>
    %80 = vector.shape_cast %79 : vector<16xf32> to vector<16x1xf32>
    %81 = tpu.reciprocal %80 {approx = true} : vector<16x1xf32> -> vector<16x1xf32>
    %82 = vector.broadcast %81 : vector<16x1xf32> to vector<16x16xf32>
    %83 = arith.mulf %78, %82 : vector<16x16xf32>
    %84 = arith.truncf %83 : vector<16x16xf32> to vector<16x16xbf16>
    %cst_28 = arith.constant dense<0.000000e+00> : vector<16x32xf32>
    %85 = tpu.matmul %84, %70, %cst_28 {dimension_numbers = #tpu.dot_dimension_numbers<[1], [0], [0], [1], [0, 0, 1, 1], [], []>} : vector<16x16xbf16>, vector<16x32xbf16>, vector<16x32xf32> -> vector<16x32xf32>
    %86 = arith.truncf %85 : vector<16x32xf32> to vector<16x32xbf16>
    %c0_29 = arith.constant 0 : index
    %c96 = arith.constant 96 : index
    %87 = vector.load %arg15[%c0_29, %c96] : memref<16x128xbf16, #tpu.memory_space<vmem>>, vector<16x32xbf16>
    tpu.vector_store %arg15[%c0_29, %c96], %86 {strides = array<i32>} : memref<16x128xbf16, #tpu.memory_space<vmem>>, vector<16x32xbf16>,
    %c0_30 = arith.constant 0 : index
    %c0_31 = arith.constant 0 : index
    %88 = vector.load %arg15[%c0_30, %c0_31] : memref<16x128xbf16, #tpu.memory_space<vmem>>, vector<16x128xbf16>
    %c0_32 = arith.constant 0 : index
    %c0_33 = arith.constant 0 : index
    %89 = vector.load %arg4[%c0_32, %c0_33] : memref<128x128xbf16, #tpu.memory_space<vmem>>, vector<128x128xbf16>
    %cst_34 = arith.constant dense<0.000000e+00> : vector<16x128xf32>
    %90 = tpu.matmul %88, %89, %cst_34 {dimension_numbers = #tpu.dot_dimension_numbers<[1], [0], [0], [1], [0, 0, 1, 1], [], []>} : vector<16x128xbf16>, vector<128x128xbf16>, vector<16x128xf32> -> vector<16x128xf32>
    %c0_35 = arith.constant 0 : index
    %c0_36 = arith.constant 0 : index
    %91 = vector.load %arg5[%c0_35, %c0_36] : memref<1x128xf32, #tpu.memory_space<vmem>>, vector<1x128xf32>
    %92 = vector.broadcast %91 : vector<1x128xf32> to vector<16x128xf32>
    %93 = arith.addf %90, %92 : vector<16x128xf32>
    %94 = arith.addf %1, %93 : vector<16x128xf32>
    %cst_37 = arith.constant dense<0.000000e+00> : vector<16xf32>
    %95 = vector.multi_reduction <add>, %94, %cst_37 [1] : vector<16x128xf32> to vector<16xf32>
    %96 = vector.shape_cast %95 : vector<16xf32> to vector<16x1xf32>
    %cst_38 = arith.constant 1.280000e+02 : f32
    %97 = vector.broadcast %cst_38 : f32 to vector<16x1xf32>
    %98 = arith.divf %96, %97 : vector<16x1xf32>
    %99 = vector.broadcast %98 : vector<16x1xf32> to vector<16x128xf32>
    %100 = arith.subf %94, %99 : vector<16x128xf32>
    %101 = arith.mulf %100, %100 : vector<16x128xf32>
    %cst_39 = arith.constant dense<0.000000e+00> : vector<16xf32>
    %102 = vector.multi_reduction <add>, %101, %cst_39 [1] : vector<16x128xf32> to vector<16xf32>
    %103 = vector.shape_cast %102 : vector<16xf32> to vector<16x1xf32>
    %cst_40 = arith.constant 1.280000e+02 : f32
    %104 = vector.broadcast %cst_40 : f32 to vector<16x1xf32>
    %105 = arith.divf %103, %104 : vector<16x1xf32>
    %cst_41 = arith.constant 9.99999974E-6 : f32
    %106 = vector.broadcast %cst_41 : f32 to vector<16x1xf32>
    %107 = arith.addf %105, %106 : vector<16x1xf32>
    %108 = math.rsqrt %107 : vector<16x1xf32>
    %109 = vector.broadcast %108 : vector<16x1xf32> to vector<16x128xf32>
    %110 = arith.mulf %100, %109 : vector<16x128xf32>
    %c0_42 = arith.constant 0 : index
    %c0_43 = arith.constant 0 : index
    %111 = vector.load %arg6[%c0_42, %c0_43] : memref<1x128xf32, #tpu.memory_space<vmem>>, vector<1x128xf32>
    %112 = vector.broadcast %111 : vector<1x128xf32> to vector<16x128xf32>
    %113 = arith.mulf %110, %112 : vector<16x128xf32>
    %c0_44 = arith.constant 0 : index
    %c0_45 = arith.constant 0 : index
    %114 = vector.load %arg7[%c0_44, %c0_45] : memref<1x128xf32, #tpu.memory_space<vmem>>, vector<1x128xf32>
    %115 = vector.broadcast %114 : vector<1x128xf32> to vector<16x128xf32>
    %116 = arith.addf %113, %115 : vector<16x128xf32>
    %117 = arith.truncf %116 : vector<16x128xf32> to vector<16x128xbf16>
    %c0_46 = arith.constant 0 : index
    %c0_47 = arith.constant 0 : index
    %118 = vector.load %arg8[%c0_46, %c0_47] : memref<128x64xbf16, #tpu.memory_space<vmem>>, vector<128x64xbf16>
    %cst_48 = arith.constant dense<0.000000e+00> : vector<16x64xf32>
    %119 = tpu.matmul %117, %118, %cst_48 {dimension_numbers = #tpu.dot_dimension_numbers<[1], [0], [0], [1], [0, 0, 1, 1], [], []>} : vector<16x128xbf16>, vector<128x64xbf16>, vector<16x64xf32> -> vector<16x64xf32>
    %c0_49 = arith.constant 0 : index
    %c0_50 = arith.constant 0 : index
    %120 = vector.load %arg9[%c0_49, %c0_50] : memref<1x64xf32, #tpu.memory_space<vmem>>, vector<1x64xf32>
    %121 = vector.broadcast %120 : vector<1x64xf32> to vector<16x64xf32>
    %122 = arith.addf %119, %121 : vector<16x64xf32>
    %cst_51 = arith.constant 0.000000e+00 : f32
    %123 = vector.broadcast %cst_51 : f32 to vector<16x64xf32>
    %124 = arith.maximumf %122, %123 : vector<16x64xf32>
    %125 = arith.truncf %124 : vector<16x64xf32> to vector<16x64xbf16>
    %c0_52 = arith.constant 0 : index
    %c0_53 = arith.constant 0 : index
    %126 = vector.load %arg10[%c0_52, %c0_53] : memref<64x128xbf16, #tpu.memory_space<vmem>>, vector<64x128xbf16>
    %cst_54 = arith.constant dense<0.000000e+00> : vector<16x128xf32>
    %127 = tpu.matmul %125, %126, %cst_54 {dimension_numbers = #tpu.dot_dimension_numbers<[1], [0], [0], [1], [0, 0, 1, 1], [], []>} : vector<16x64xbf16>, vector<64x128xbf16>, vector<16x128xf32> -> vector<16x128xf32>
    %c0_55 = arith.constant 0 : index
    %c0_56 = arith.constant 0 : index
    %128 = vector.load %arg11[%c0_55, %c0_56] : memref<1x128xf32, #tpu.memory_space<vmem>>, vector<1x128xf32>
    %129 = vector.broadcast %128 : vector<1x128xf32> to vector<16x128xf32>
    %130 = arith.addf %127, %129 : vector<16x128xf32>
    %131 = arith.addf %116, %130 : vector<16x128xf32>
    %cst_57 = arith.constant dense<0.000000e+00> : vector<16xf32>
    %132 = vector.multi_reduction <add>, %131, %cst_57 [1] : vector<16x128xf32> to vector<16xf32>
    %133 = vector.shape_cast %132 : vector<16xf32> to vector<16x1xf32>
    %cst_58 = arith.constant 1.280000e+02 : f32
    %134 = vector.broadcast %cst_58 : f32 to vector<16x1xf32>
    %135 = arith.divf %133, %134 : vector<16x1xf32>
    %136 = vector.broadcast %135 : vector<16x1xf32> to vector<16x128xf32>
    %137 = arith.subf %131, %136 : vector<16x128xf32>
    %138 = arith.mulf %137, %137 : vector<16x128xf32>
    %cst_59 = arith.constant dense<0.000000e+00> : vector<16xf32>
    %139 = vector.multi_reduction <add>, %138, %cst_59 [1] : vector<16x128xf32> to vector<16xf32>
    %140 = vector.shape_cast %139 : vector<16xf32> to vector<16x1xf32>
    %cst_60 = arith.constant 1.280000e+02 : f32
    %141 = vector.broadcast %cst_60 : f32 to vector<16x1xf32>
    %142 = arith.divf %140, %141 : vector<16x1xf32>
    %cst_61 = arith.constant 9.99999974E-6 : f32
    %143 = vector.broadcast %cst_61 : f32 to vector<16x1xf32>
    %144 = arith.addf %142, %143 : vector<16x1xf32>
    %145 = math.rsqrt %144 : vector<16x1xf32>
    %146 = vector.broadcast %145 : vector<16x1xf32> to vector<16x128xf32>
    %147 = arith.mulf %137, %146 : vector<16x128xf32>
    %c0_62 = arith.constant 0 : index
    %c0_63 = arith.constant 0 : index
    %148 = vector.load %arg12[%c0_62, %c0_63] : memref<1x128xf32, #tpu.memory_space<vmem>>, vector<1x128xf32>
    %149 = vector.broadcast %148 : vector<1x128xf32> to vector<16x128xf32>
    %150 = arith.mulf %147, %149 : vector<16x128xf32>
    %c0_64 = arith.constant 0 : index
    %c0_65 = arith.constant 0 : index
    %151 = vector.load %arg13[%c0_64, %c0_65] : memref<1x128xf32, #tpu.memory_space<vmem>>, vector<1x128xf32>
    %152 = vector.broadcast %151 : vector<1x128xf32> to vector<16x128xf32>
    %153 = arith.addf %150, %152 : vector<16x128xf32>
    %154 = arith.truncf %153 : vector<16x128xf32> to vector<16x128xbf16>
    %c0_66 = arith.constant 0 : index
    %c0_67 = arith.constant 0 : index
    %155 = vector.load %arg14[%c0_66, %c0_67] : memref<16x128xbf16, #tpu.memory_space<vmem>>, vector<16x128xbf16>
    tpu.vector_store %arg14[%c0_66, %c0_67], %154 {strides = array<i32>} : memref<16x128xbf16, #tpu.memory_space<vmem>>, vector<16x128xbf16>,
    return
  }
  func.func @transform_0(%arg0: i32) -> (i32, i32) {
    %c0_i32 = arith.constant 0 : i32
    %c0_i32_0 = arith.constant 0 : i32
    return %arg0, %c0_i32 : i32, i32
  }
  func.func @transform_1(%arg0: i32) -> (i32, i32) {
    %c0_i32 = arith.constant 0 : i32
    %c0_i32_0 = arith.constant 0 : i32
    %c0_i32_1 = arith.constant 0 : i32
    return %c0_i32, %c0_i32_0 : i32, i32
  }
  func.func @transform_2(%arg0: i32) -> (i32, i32) {
    %c0_i32 = arith.constant 0 : i32
    %c0_i32_0 = arith.constant 0 : i32
    %c0_i32_1 = arith.constant 0 : i32
    return %c0_i32, %c0_i32_0 : i32, i32
  }
  func.func @transform_3(%arg0: i32) -> (i32, i32) {
    %c0_i32 = arith.constant 0 : i32
    %c0_i32_0 = arith.constant 0 : i32
    %c0_i32_1 = arith.constant 0 : i32
    return %c0_i32, %c0_i32_0 : i32, i32
  }
  func.func @transform_4(%arg0: i32) -> (i32, i32) {
    %c0_i32 = arith.constant 0 : i32
    %c0_i32_0 = arith.constant 0 : i32
    %c0_i32_1 = arith.constant 0 : i32
    return %c0_i32, %c0_i32_0 : i32, i32
  }
  func.func @transform_5(%arg0: i32) -> (i32, i32) {
    %c0_i32 = arith.constant 0 : i32
    %c0_i32_0 = arith.constant 0 : i32
    %c0_i32_1 = arith.constant 0 : i32
    return %c0_i32, %c0_i32_0 : i32, i32
  }
  func.func @transform_6(%arg0: i32) -> (i32, i32) {
    %c0_i32 = arith.constant 0 : i32
    %c0_i32_0 = arith.constant 0 : i32
    %c0_i32_1 = arith.constant 0 : i32
    return %c0_i32, %c0_i32_0 : i32, i32
  }
  func.func @transform_7(%arg0: i32) -> (i32, i32) {
    %c0_i32 = arith.constant 0 : i32
    %c0_i32_0 = arith.constant 0 : i32
    %c0_i32_1 = arith.constant 0 : i32
    return %c0_i32, %c0_i32_0 : i32, i32
  }
  func.func @transform_8(%arg0: i32) -> (i32, i32) {
    %c0_i32 = arith.constant 0 : i32
    %c0_i32_0 = arith.constant 0 : i32
    %c0_i32_1 = arith.constant 0 : i32
    return %c0_i32, %c0_i32_0 : i32, i32
  }
  func.func @transform_9(%arg0: i32) -> (i32, i32) {
    %c0_i32 = arith.constant 0 : i32
    %c0_i32_0 = arith.constant 0 : i32
    %c0_i32_1 = arith.constant 0 : i32
    return %c0_i32, %c0_i32_0 : i32, i32
  }
  func.func @transform_10(%arg0: i32) -> (i32, i32) {
    %c0_i32 = arith.constant 0 : i32
    %c0_i32_0 = arith.constant 0 : i32
    %c0_i32_1 = arith.constant 0 : i32
    return %c0_i32, %c0_i32_0 : i32, i32
  }
  func.func @transform_11(%arg0: i32) -> (i32, i32) {
    %c0_i32 = arith.constant 0 : i32
    %c0_i32_0 = arith.constant 0 : i32
    %c0_i32_1 = arith.constant 0 : i32
    return %c0_i32, %c0_i32_0 : i32, i32
  }
  func.func @transform_12(%arg0: i32) -> (i32, i32) {
    %c0_i32 = arith.constant 0 : i32
    %c0_i32_0 = arith.constant 0 : i32
    %c0_i32_1 = arith.constant 0 : i32
    return %c0_i32, %c0_i32_0 : i32, i32
  }
  func.func @transform_13(%arg0: i32) -> (i32, i32) {
    %c0_i32 = arith.constant 0 : i32
    %c0_i32_0 = arith.constant 0 : i32
    return %arg0, %c0_i32 : i32, i32
  }
}

module attributes {stable_mosaic.version = 11 : i64} {
  func.func @_encoder_layer_kernel(%arg0: i32, %arg1: memref<16x128xbf16, #tpu.memory_space<vmem>>, %arg2: memref<128x384xbf16, #tpu.memory_space<vmem>>, %arg3: memref<1x384xf32, #tpu.memory_space<vmem>>, %arg4: memref<128x128xbf16, #tpu.memory_space<vmem>>, %arg5: memref<1x128xf32, #tpu.memory_space<vmem>>, %arg6: memref<1x128xf32, #tpu.memory_space<vmem>>, %arg7: memref<1x128xf32, #tpu.memory_space<vmem>>, %arg8: memref<128x64xbf16, #tpu.memory_space<vmem>>, %arg9: memref<1x64xf32, #tpu.memory_space<vmem>>, %arg10: memref<64x128xbf16, #tpu.memory_space<vmem>>, %arg11: memref<1x128xf32, #tpu.memory_space<vmem>>, %arg12: memref<1x128xf32, #tpu.memory_space<vmem>>, %arg13: memref<1x128xf32, #tpu.memory_space<vmem>>, %arg14: memref<16x128xbf16, #tpu.memory_space<vmem>>, %arg15: memref<16x128xbf16, #tpu.memory_space<vmem>>) attributes {dimension_semantics = [#tpu.dimension_semantics<parallel>], iteration_bounds = array<i64: 2>, scalar_prefetch = 0 : i64, scratch_operands = 1 : i64, tpu.core_type = #tpu.core_type<tc>, window_params = [{transform_indices = @transform_0, window_bounds = array<i64: 16, 128>}, {pipeline_mode = #tpu.pipeline_mode<synchronous>, transform_indices = @transform_1, window_bounds = array<i64: 128, 384>}, {pipeline_mode = #tpu.pipeline_mode<synchronous>, transform_indices = @transform_2, window_bounds = array<i64: 1, 384>}, {pipeline_mode = #tpu.pipeline_mode<synchronous>, transform_indices = @transform_3, window_bounds = array<i64: 128, 128>}, {pipeline_mode = #tpu.pipeline_mode<synchronous>, transform_indices = @transform_4, window_bounds = array<i64: 1, 128>}, {pipeline_mode = #tpu.pipeline_mode<synchronous>, transform_indices = @transform_5, window_bounds = array<i64: 1, 128>}, {pipeline_mode = #tpu.pipeline_mode<synchronous>, transform_indices = @transform_6, window_bounds = array<i64: 1, 128>}, {pipeline_mode = #tpu.pipeline_mode<synchronous>, transform_indices = @transform_7, window_bounds = array<i64: 128, 64>}, {pipeline_mode = #tpu.pipeline_mode<synchronous>, transform_indices = @transform_8, window_bounds = array<i64: 1, 64>}, {pipeline_mode = #tpu.pipeline_mode<synchronous>, transform_indices = @transform_9, window_bounds = array<i64: 64, 128>}, {pipeline_mode = #tpu.pipeline_mode<synchronous>, transform_indices = @transform_10, window_bounds = array<i64: 1, 128>}, {pipeline_mode = #tpu.pipeline_mode<synchronous>, transform_indices = @transform_11, window_bounds = array<i64: 1, 128>}, {pipeline_mode = #tpu.pipeline_mode<synchronous>, transform_indices = @transform_12, window_bounds = array<i64: 1, 128>}, {transform_indices = @transform_13, window_bounds = array<i64: 16, 128>}]} {
    %c0 = arith.constant 0 : index
    %c0_0 = arith.constant 0 : index
    %0 = vector.load %arg1[%c0, %c0_0] : memref<16x128xbf16, #tpu.memory_space<vmem>>, vector<16x128xbf16>
    %1 = arith.extf %0 : vector<16x128xbf16> to vector<16x128xf32>
    %c0_1 = arith.constant 0 : index
    %c0_2 = arith.constant 0 : index
    %2 = vector.load %arg2[%c0_1, %c0_2] : memref<128x384xbf16, #tpu.memory_space<vmem>>, vector<128x384xbf16>
    %cst = arith.constant dense<0.000000e+00> : vector<16x384xf32>
    %3 = tpu.matmul %0, %2, %cst {dimension_numbers = #tpu.dot_dimension_numbers<[1], [0], [0], [1], [0, 0, 1, 1], [], []>} : vector<16x128xbf16>, vector<128x384xbf16>, vector<16x384xf32> -> vector<16x384xf32>
    %c0_3 = arith.constant 0 : index
    %c0_4 = arith.constant 0 : index
    %4 = vector.load %arg3[%c0_3, %c0_4] : memref<1x384xf32, #tpu.memory_space<vmem>>, vector<1x384xf32>
    %5 = vector.broadcast %4 : vector<1x384xf32> to vector<16x384xf32>
    %6 = arith.addf %3, %5 : vector<16x384xf32>
    %7 = arith.truncf %6 : vector<16x384xf32> to vector<16x384xbf16>
    %8 = vector.extract_strided_slice %7 {offsets = [0, 0], sizes = [16, 32], strides = [1, 1]} : vector<16x384xbf16> to vector<16x32xbf16>
    %9 = vector.extract_strided_slice %7 {offsets = [0, 128], sizes = [16, 32], strides = [1, 1]} : vector<16x384xbf16> to vector<16x32xbf16>
    %10 = vector.extract_strided_slice %7 {offsets = [0, 256], sizes = [16, 32], strides = [1, 1]} : vector<16x384xbf16> to vector<16x32xbf16>
    %cst_5 = arith.constant dense<0.000000e+00> : vector<16x16xf32>
    %11 = tpu.matmul %8, %9, %cst_5 {dimension_numbers = #tpu.dot_dimension_numbers<[1], [1], [0], [0], [0, 0, 1, 0], [], []>} : vector<16x32xbf16>, vector<16x32xbf16>, vector<16x16xf32> -> vector<16x16xf32>
    %cst_6 = arith.constant 0.176776692 : f32
    %12 = vector.broadcast %cst_6 : f32 to vector<16x16xf32>
    %13 = arith.mulf %11, %12 : vector<16x16xf32>
    %cst_7 = arith.constant dense<0xFF800000> : vector<16xf32>
    %14 = vector.multi_reduction <maximumf>, %13, %cst_7 [1] : vector<16x16xf32> to vector<16xf32>
    %15 = vector.shape_cast %14 : vector<16xf32> to vector<16x1xf32>
    %16 = vector.broadcast %15 : vector<16x1xf32> to vector<16x16xf32>
    %17 = arith.subf %13, %16 : vector<16x16xf32>
    %18 = math.exp %17 : vector<16x16xf32>
    %cst_8 = arith.constant dense<0.000000e+00> : vector<16xf32>
    %19 = vector.multi_reduction <add>, %18, %cst_8 [1] : vector<16x16xf32> to vector<16xf32>
    %20 = vector.shape_cast %19 : vector<16xf32> to vector<16x1xf32>
    %21 = tpu.reciprocal %20 {approx = true} : vector<16x1xf32> -> vector<16x1xf32>
    %22 = vector.broadcast %21 : vector<16x1xf32> to vector<16x16xf32>
    %23 = arith.mulf %18, %22 : vector<16x16xf32>
    %24 = arith.truncf %23 : vector<16x16xf32> to vector<16x16xbf16>
    %cst_9 = arith.constant dense<0.000000e+00> : vector<16x32xf32>
    %25 = tpu.matmul %24, %10, %cst_9 {dimension_numbers = #tpu.dot_dimension_numbers<[1], [0], [0], [1], [0, 0, 1, 1], [], []>} : vector<16x16xbf16>, vector<16x32xbf16>, vector<16x32xf32> -> vector<16x32xf32>
    %26 = arith.truncf %25 : vector<16x32xf32> to vector<16x32xbf16>
    %c0_10 = arith.constant 0 : index
    %c0_11 = arith.constant 0 : index
    %27 = vector.load %arg15[%c0_10, %c0_11] : memref<16x128xbf16, #tpu.memory_space<vmem>>, vector<16x32xbf16>
    tpu.vector_store %arg15[%c0_10, %c0_11], %26 {strides = array<i32>} : memref<16x128xbf16, #tpu.memory_space<vmem>>, vector<16x32xbf16>,
    %28 = vector.extract_strided_slice %7 {offsets = [0, 32], sizes = [16, 32], strides = [1, 1]} : vector<16x384xbf16> to vector<16x32xbf16>
    %29 = vector.extract_strided_slice %7 {offsets = [0, 160], sizes = [16, 32], strides = [1, 1]} : vector<16x384xbf16> to vector<16x32xbf16>
    %30 = vector.extract_strided_slice %7 {offsets = [0, 288], sizes = [16, 32], strides = [1, 1]} : vector<16x384xbf16> to vector<16x32xbf16>
    %cst_12 = arith.constant dense<0.000000e+00> : vector<16x16xf32>
    %31 = tpu.matmul %28, %29, %cst_12 {dimension_numbers = #tpu.dot_dimension_numbers<[1], [1], [0], [0], [0, 0, 1, 0], [], []>} : vector<16x32xbf16>, vector<16x32xbf16>, vector<16x16xf32> -> vector<16x16xf32>
    %cst_13 = arith.constant 0.176776692 : f32
    %32 = vector.broadcast %cst_13 : f32 to vector<16x16xf32>
    %33 = arith.mulf %31, %32 : vector<16x16xf32>
    %cst_14 = arith.constant dense<0xFF800000> : vector<16xf32>
    %34 = vector.multi_reduction <maximumf>, %33, %cst_14 [1] : vector<16x16xf32> to vector<16xf32>
    %35 = vector.shape_cast %34 : vector<16xf32> to vector<16x1xf32>
    %36 = vector.broadcast %35 : vector<16x1xf32> to vector<16x16xf32>
    %37 = arith.subf %33, %36 : vector<16x16xf32>
    %38 = math.exp %37 : vector<16x16xf32>
    %cst_15 = arith.constant dense<0.000000e+00> : vector<16xf32>
    %39 = vector.multi_reduction <add>, %38, %cst_15 [1] : vector<16x16xf32> to vector<16xf32>
    %40 = vector.shape_cast %39 : vector<16xf32> to vector<16x1xf32>
    %41 = tpu.reciprocal %40 {approx = true} : vector<16x1xf32> -> vector<16x1xf32>
    %42 = vector.broadcast %41 : vector<16x1xf32> to vector<16x16xf32>
    %43 = arith.mulf %38, %42 : vector<16x16xf32>
    %44 = arith.truncf %43 : vector<16x16xf32> to vector<16x16xbf16>
    %cst_16 = arith.constant dense<0.000000e+00> : vector<16x32xf32>
    %45 = tpu.matmul %44, %30, %cst_16 {dimension_numbers = #tpu.dot_dimension_numbers<[1], [0], [0], [1], [0, 0, 1, 1], [], []>} : vector<16x16xbf16>, vector<16x32xbf16>, vector<16x32xf32> -> vector<16x32xf32>
    %46 = arith.truncf %45 : vector<16x32xf32> to vector<16x32xbf16>
    %c0_17 = arith.constant 0 : index
    %c32 = arith.constant 32 : index
    %47 = vector.load %arg15[%c0_17, %c32] : memref<16x128xbf16, #tpu.memory_space<vmem>>, vector<16x32xbf16>
    tpu.vector_store %arg15[%c0_17, %c32], %46 {strides = array<i32>} : memref<16x128xbf16, #tpu.memory_space<vmem>>, vector<16x32xbf16>,
    %48 = vector.extract_strided_slice %7 {offsets = [0, 64], sizes = [16, 32], strides = [1, 1]} : vector<16x384xbf16> to vector<16x32xbf16>
    %49 = vector.extract_strided_slice %7 {offsets = [0, 192], sizes = [16, 32], strides = [1, 1]} : vector<16x384xbf16> to vector<16x32xbf16>
    %50 = vector.extract_strided_slice %7 {offsets = [0, 320], sizes = [16, 32], strides = [1, 1]} : vector<16x384xbf16> to vector<16x32xbf16>
    %cst_18 = arith.constant dense<0.000000e+00> : vector<16x16xf32>
    %51 = tpu.matmul %48, %49, %cst_18 {dimension_numbers = #tpu.dot_dimension_numbers<[1], [1], [0], [0], [0, 0, 1, 0], [], []>} : vector<16x32xbf16>, vector<16x32xbf16>, vector<16x16xf32> -> vector<16x16xf32>
    %cst_19 = arith.constant 0.176776692 : f32
    %52 = vector.broadcast %cst_19 : f32 to vector<16x16xf32>
    %53 = arith.mulf %51, %52 : vector<16x16xf32>
    %cst_20 = arith.constant dense<0xFF800000> : vector<16xf32>
    %54 = vector.multi_reduction <maximumf>, %53, %cst_20 [1] : vector<16x16xf32> to vector<16xf32>
    %55 = vector.shape_cast %54 : vector<16xf32> to vector<16x1xf32>
    %56 = vector.broadcast %55 : vector<16x1xf32> to vector<16x16xf32>
    %57 = arith.subf %53, %56 : vector<16x16xf32>
    %58 = math.exp %57 : vector<16x16xf32>
    %cst_21 = arith.constant dense<0.000000e+00> : vector<16xf32>
    %59 = vector.multi_reduction <add>, %58, %cst_21 [1] : vector<16x16xf32> to vector<16xf32>
    %60 = vector.shape_cast %59 : vector<16xf32> to vector<16x1xf32>
    %61 = tpu.reciprocal %60 {approx = true} : vector<16x1xf32> -> vector<16x1xf32>
    %62 = vector.broadcast %61 : vector<16x1xf32> to vector<16x16xf32>
    %63 = arith.mulf %58, %62 : vector<16x16xf32>
    %64 = arith.truncf %63 : vector<16x16xf32> to vector<16x16xbf16>
    %cst_22 = arith.constant dense<0.000000e+00> : vector<16x32xf32>
    %65 = tpu.matmul %64, %50, %cst_22 {dimension_numbers = #tpu.dot_dimension_numbers<[1], [0], [0], [1], [0, 0, 1, 1], [], []>} : vector<16x16xbf16>, vector<16x32xbf16>, vector<16x32xf32> -> vector<16x32xf32>
    %66 = arith.truncf %65 : vector<16x32xf32> to vector<16x32xbf16>
    %c0_23 = arith.constant 0 : index
    %c64 = arith.constant 64 : index
    %67 = vector.load %arg15[%c0_23, %c64] : memref<16x128xbf16, #tpu.memory_space<vmem>>, vector<16x32xbf16>
    tpu.vector_store %arg15[%c0_23, %c64], %66 {strides = array<i32>} : memref<16x128xbf16, #tpu.memory_space<vmem>>, vector<16x32xbf16>,
    %68 = vector.extract_strided_slice %7 {offsets = [0, 96], sizes = [16, 32], strides = [1, 1]} : vector<16x384xbf16> to vector<16x32xbf16>
    %69 = vector.extract_strided_slice %7 {offsets = [0, 224], sizes = [16, 32], strides = [1, 1]} : vector<16x384xbf16> to vector<16x32xbf16>
    %70 = vector.extract_strided_slice %7 {offsets = [0, 352], sizes = [16, 32], strides = [1, 1]} : vector<16x384xbf16> to vector<16x32xbf16>
    %cst_24 = arith.constant dense<0.000000e+00> : vector<16x16xf32>
    %71 = tpu.matmul %68, %69, %cst_24 {dimension_numbers = #tpu.dot_dimension_numbers<[1], [1], [0], [0], [0, 0, 1, 0], [], []>} : vector<16x32xbf16>, vector<16x32xbf16>, vector<16x16xf32> -> vector<16x16xf32>
    %cst_25 = arith.constant 0.176776692 : f32
    %72 = vector.broadcast %cst_25 : f32 to vector<16x16xf32>
    %73 = arith.mulf %71, %72 : vector<16x16xf32>
    %cst_26 = arith.constant dense<0xFF800000> : vector<16xf32>
    %74 = vector.multi_reduction <maximumf>, %73, %cst_26 [1] : vector<16x16xf32> to vector<16xf32>
    %75 = vector.shape_cast %74 : vector<16xf32> to vector<16x1xf32>
    %76 = vector.broadcast %75 : vector<16x1xf32> to vector<16x16xf32>
    %77 = arith.subf %73, %76 : vector<16x16xf32>
    %78 = math.exp %77 : vector<16x16xf32>
    %cst_27 = arith.constant dense<0.000000e+00> : vector<16xf32>
    %79 = vector.multi_reduction <add>, %78, %cst_27 [1] : vector<16x16xf32> to vector<16xf32>
    %80 = vector.shape_cast %79 : vector<16xf32> to vector<16x1xf32>
    %81 = tpu.reciprocal %80 {approx = true} : vector<16x1xf32> -> vector<16x1xf32>
    %82 = vector.broadcast %81 : vector<16x1xf32> to vector<16x16xf32>
    %83 = arith.mulf %78, %82 : vector<16x16xf32>
    %84 = arith.truncf %83 : vector<16x16xf32> to vector<16x16xbf16>
    %cst_28 = arith.constant dense<0.000000e+00> : vector<16x32xf32>
    %85 = tpu.matmul %84, %70, %cst_28 {dimension_numbers = #tpu.dot_dimension_numbers<[1], [0], [0], [1], [0, 0, 1, 1], [], []>} : vector<16x16xbf16>, vector<16x32xbf16>, vector<16x32xf32> -> vector<16x32xf32>
    %86 = arith.truncf %85 : vector<16x32xf32> to vector<16x32xbf16>
    %c0_29 = arith.constant 0 : index
    %c96 = arith.constant 96 : index
    %87 = vector.load %arg15[%c0_29, %c96] : memref<16x128xbf16, #tpu.memory_space<vmem>>, vector<16x32xbf16>
    tpu.vector_store %arg15[%c0_29, %c96], %86 {strides = array<i32>} : memref<16x128xbf16, #tpu.memory_space<vmem>>, vector<16x32xbf16>,
    %c0_30 = arith.constant 0 : index
    %c0_31 = arith.constant 0 : index
    %88 = vector.load %arg15[%c0_30, %c0_31] : memref<16x128xbf16, #tpu.memory_space<vmem>>, vector<16x128xbf16>
    %c0_32 = arith.constant 0 : index
    %c0_33 = arith.constant 0 : index
    %89 = vector.load %arg4[%c0_32, %c0_33] : memref<128x128xbf16, #tpu.memory_space<vmem>>, vector<128x128xbf16>
    %cst_34 = arith.constant dense<0.000000e+00> : vector<16x128xf32>
    %90 = tpu.matmul %88, %89, %cst_34 {dimension_numbers = #tpu.dot_dimension_numbers<[1], [0], [0], [1], [0, 0, 1, 1], [], []>} : vector<16x128xbf16>, vector<128x128xbf16>, vector<16x128xf32> -> vector<16x128xf32>
    %c0_35 = arith.constant 0 : index
    %c0_36 = arith.constant 0 : index
    %91 = vector.load %arg5[%c0_35, %c0_36] : memref<1x128xf32, #tpu.memory_space<vmem>>, vector<1x128xf32>
    %92 = vector.broadcast %91 : vector<1x128xf32> to vector<16x128xf32>
    %93 = arith.addf %90, %92 : vector<16x128xf32>
    %94 = arith.addf %1, %93 : vector<16x128xf32>
    %cst_37 = arith.constant dense<0.000000e+00> : vector<16xf32>
    %95 = vector.multi_reduction <add>, %94, %cst_37 [1] : vector<16x128xf32> to vector<16xf32>
    %96 = vector.shape_cast %95 : vector<16xf32> to vector<16x1xf32>
    %cst_38 = arith.constant 1.280000e+02 : f32
    %97 = vector.broadcast %cst_38 : f32 to vector<16x1xf32>
    %98 = arith.divf %96, %97 : vector<16x1xf32>
    %99 = vector.broadcast %98 : vector<16x1xf32> to vector<16x128xf32>
    %100 = arith.subf %94, %99 : vector<16x128xf32>
    %101 = arith.mulf %100, %100 : vector<16x128xf32>
    %cst_39 = arith.constant dense<0.000000e+00> : vector<16xf32>
    %102 = vector.multi_reduction <add>, %101, %cst_39 [1] : vector<16x128xf32> to vector<16xf32>
    %103 = vector.shape_cast %102 : vector<16xf32> to vector<16x1xf32>
    %cst_40 = arith.constant 1.280000e+02 : f32
    %104 = vector.broadcast %cst_40 : f32 to vector<16x1xf32>
    %105 = arith.divf %103, %104 : vector<16x1xf32>
    %cst_41 = arith.constant 9.99999974E-6 : f32
    %106 = vector.broadcast %cst_41 : f32 to vector<16x1xf32>
    %107 = arith.addf %105, %106 : vector<16x1xf32>
    %108 = math.rsqrt %107 : vector<16x1xf32>
    %109 = vector.broadcast %108 : vector<16x1xf32> to vector<16x128xf32>
    %110 = arith.mulf %100, %109 : vector<16x128xf32>
    %c0_42 = arith.constant 0 : index
    %c0_43 = arith.constant 0 : index
    %111 = vector.load %arg6[%c0_42, %c0_43] : memref<1x128xf32, #tpu.memory_space<vmem>>, vector<1x128xf32>
    %112 = vector.broadcast %111 : vector<1x128xf32> to vector<16x128xf32>
    %113 = arith.mulf %110, %112 : vector<16x128xf32>
    %c0_44 = arith.constant 0 : index
    %c0_45 = arith.constant 0 : index
    %114 = vector.load %arg7[%c0_44, %c0_45] : memref<1x128xf32, #tpu.memory_space<vmem>>, vector<1x128xf32>
    %115 = vector.broadcast %114 : vector<1x128xf32> to vector<16x128xf32>
    %116 = arith.addf %113, %115 : vector<16x128xf32>
    %117 = arith.truncf %116 : vector<16x128xf32> to vector<16x128xbf16>
    %c0_46 = arith.constant 0 : index
    %c0_47 = arith.constant 0 : index
    %118 = vector.load %arg8[%c0_46, %c0_47] : memref<128x64xbf16, #tpu.memory_space<vmem>>, vector<128x64xbf16>
    %cst_48 = arith.constant dense<0.000000e+00> : vector<16x64xf32>
    %119 = tpu.matmul %117, %118, %cst_48 {dimension_numbers = #tpu.dot_dimension_numbers<[1], [0], [0], [1], [0, 0, 1, 1], [], []>} : vector<16x128xbf16>, vector<128x64xbf16>, vector<16x64xf32> -> vector<16x64xf32>
    %c0_49 = arith.constant 0 : index
    %c0_50 = arith.constant 0 : index
    %120 = vector.load %arg9[%c0_49, %c0_50] : memref<1x64xf32, #tpu.memory_space<vmem>>, vector<1x64xf32>
    %121 = vector.broadcast %120 : vector<1x64xf32> to vector<16x64xf32>
    %122 = arith.addf %119, %121 : vector<16x64xf32>
    %cst_51 = arith.constant 0.000000e+00 : f32
    %123 = vector.broadcast %cst_51 : f32 to vector<16x64xf32>
    %124 = arith.maximumf %122, %123 : vector<16x64xf32>
    %125 = arith.truncf %124 : vector<16x64xf32> to vector<16x64xbf16>
    %c0_52 = arith.constant 0 : index
    %c0_53 = arith.constant 0 : index
    %126 = vector.load %arg10[%c0_52, %c0_53] : memref<64x128xbf16, #tpu.memory_space<vmem>>, vector<64x128xbf16>
    %cst_54 = arith.constant dense<0.000000e+00> : vector<16x128xf32>
    %127 = tpu.matmul %125, %126, %cst_54 {dimension_numbers = #tpu.dot_dimension_numbers<[1], [0], [0], [1], [0, 0, 1, 1], [], []>} : vector<16x64xbf16>, vector<64x128xbf16>, vector<16x128xf32> -> vector<16x128xf32>
    %c0_55 = arith.constant 0 : index
    %c0_56 = arith.constant 0 : index
    %128 = vector.load %arg11[%c0_55, %c0_56] : memref<1x128xf32, #tpu.memory_space<vmem>>, vector<1x128xf32>
    %129 = vector.broadcast %128 : vector<1x128xf32> to vector<16x128xf32>
    %130 = arith.addf %127, %129 : vector<16x128xf32>
    %131 = arith.addf %116, %130 : vector<16x128xf32>
    %cst_57 = arith.constant dense<0.000000e+00> : vector<16xf32>
    %132 = vector.multi_reduction <add>, %131, %cst_57 [1] : vector<16x128xf32> to vector<16xf32>
    %133 = vector.shape_cast %132 : vector<16xf32> to vector<16x1xf32>
    %cst_58 = arith.constant 1.280000e+02 : f32
    %134 = vector.broadcast %cst_58 : f32 to vector<16x1xf32>
    %135 = arith.divf %133, %134 : vector<16x1xf32>
    %136 = vector.broadcast %135 : vector<16x1xf32> to vector<16x128xf32>
    %137 = arith.subf %131, %136 : vector<16x128xf32>
    %138 = arith.mulf %137, %137 : vector<16x128xf32>
    %cst_59 = arith.constant dense<0.000000e+00> : vector<16xf32>
    %139 = vector.multi_reduction <add>, %138, %cst_59 [1] : vector<16x128xf32> to vector<16xf32>
    %140 = vector.shape_cast %139 : vector<16xf32> to vector<16x1xf32>
    %cst_60 = arith.constant 1.280000e+02 : f32
    %141 = vector.broadcast %cst_60 : f32 to vector<16x1xf32>
    %142 = arith.divf %140, %141 : vector<16x1xf32>
    %cst_61 = arith.constant 9.99999974E-6 : f32
    %143 = vector.broadcast %cst_61 : f32 to vector<16x1xf32>
    %144 = arith.addf %142, %143 : vector<16x1xf32>
    %145 = math.rsqrt %144 : vector<16x1xf32>
    %146 = vector.broadcast %145 : vector<16x1xf32> to vector<16x128xf32>
    %147 = arith.mulf %137, %146 : vector<16x128xf32>
    %c0_62 = arith.constant 0 : index
    %c0_63 = arith.constant 0 : index
    %148 = vector.load %arg12[%c0_62, %c0_63] : memref<1x128xf32, #tpu.memory_space<vmem>>, vector<1x128xf32>
    %149 = vector.broadcast %148 : vector<1x128xf32> to vector<16x128xf32>
    %150 = arith.mulf %147, %149 : vector<16x128xf32>
    %c0_64 = arith.constant 0 : index
    %c0_65 = arith.constant 0 : index
    %151 = vector.load %arg13[%c0_64, %c0_65] : memref<1x128xf32, #tpu.memory_space<vmem>>, vector<1x128xf32>
    %152 = vector.broadcast %151 : vector<1x128xf32> to vector<16x128xf32>
    %153 = arith.addf %150, %152 : vector<16x128xf32>
    %154 = arith.truncf %153 : vector<16x128xf32> to vector<16x128xbf16>
    %c0_66 = arith.constant 0 : index
    %c0_67 = arith.constant 0 : index
    %155 = vector.load %arg14[%c0_66, %c0_67] : memref<16x128xbf16, #tpu.memory_space<vmem>>, vector<16x128xbf16>
    tpu.vector_store %arg14[%c0_66, %c0_67], %154 {strides = array<i32>} : memref<16x128xbf16, #tpu.memory_space<vmem>>, vector<16x128xbf16>,
    return
  }
  func.func @transform_0(%arg0: i32) -> (i32, i32) {
    %c0_i32 = arith.constant 0 : i32
    %c0_i32_0 = arith.constant 0 : i32
    return %arg0, %c0_i32 : i32, i32
  }
  func.func @transform_1(%arg0: i32) -> (i32, i32) {
    %c0_i32 = arith.constant 0 : i32
    %c0_i32_0 = arith.constant 0 : i32
    %c0_i32_1 = arith.constant 0 : i32
    return %c0_i32, %c0_i32_0 : i32, i32
  }
  func.func @transform_2(%arg0: i32) -> (i32, i32) {
    %c0_i32 = arith.constant 0 : i32
    %c0_i32_0 = arith.constant 0 : i32
    %c0_i32_1 = arith.constant 0 : i32
    return %c0_i32, %c0_i32_0 : i32, i32
  }
  func.func @transform_3(%arg0: i32) -> (i32, i32) {
    %c0_i32 = arith.constant 0 : i32
    %c0_i32_0 = arith.constant 0 : i32
    %c0_i32_1 = arith.constant 0 : i32
    return %c0_i32, %c0_i32_0 : i32, i32
  }
  func.func @transform_4(%arg0: i32) -> (i32, i32) {
    %c0_i32 = arith.constant 0 : i32
    %c0_i32_0 = arith.constant 0 : i32
    %c0_i32_1 = arith.constant 0 : i32
    return %c0_i32, %c0_i32_0 : i32, i32
  }
  func.func @transform_5(%arg0: i32) -> (i32, i32) {
    %c0_i32 = arith.constant 0 : i32
    %c0_i32_0 = arith.constant 0 : i32
    %c0_i32_1 = arith.constant 0 : i32
    return %c0_i32, %c0_i32_0 : i32, i32
  }
  func.func @transform_6(%arg0: i32) -> (i32, i32) {
    %c0_i32 = arith.constant 0 : i32
    %c0_i32_0 = arith.constant 0 : i32
    %c0_i32_1 = arith.constant 0 : i32
    return %c0_i32, %c0_i32_0 : i32, i32
  }
  func.func @transform_7(%arg0: i32) -> (i32, i32) {
    %c0_i32 = arith.constant 0 : i32
    %c0_i32_0 = arith.constant 0 : i32
    %c0_i32_1 = arith.constant 0 : i32
    return %c0_i32, %c0_i32_0 : i32, i32
  }
  func.func @transform_8(%arg0: i32) -> (i32, i32) {
    %c0_i32 = arith.constant 0 : i32
    %c0_i32_0 = arith.constant 0 : i32
    %c0_i32_1 = arith.constant 0 : i32
    return %c0_i32, %c0_i32_0 : i32, i32
  }
  func.func @transform_9(%arg0: i32) -> (i32, i32) {
    %c0_i32 = arith.constant 0 : i32
    %c0_i32_0 = arith.constant 0 : i32
    %c0_i32_1 = arith.constant 0 : i32
    return %c0_i32, %c0_i32_0 : i32, i32
  }
  func.func @transform_10(%arg0: i32) -> (i32, i32) {
    %c0_i32 = arith.constant 0 : i32
    %c0_i32_0 = arith.constant 0 : i32
    %c0_i32_1 = arith.constant 0 : i32
    return %c0_i32, %c0_i32_0 : i32, i32
  }
  func.func @transform_11(%arg0: i32) -> (i32, i32) {
    %c0_i32 = arith.constant 0 : i32
    %c0_i32_0 = arith.constant 0 : i32
    %c0_i32_1 = arith.constant 0 : i32
    return %c0_i32, %c0_i32_0 : i32, i32
  }
  func.func @transform_12(%arg0: i32) -> (i32, i32) {
    %c0_i32 = arith.constant 0 : i32
    %c0_i32_0 = arith.constant 0 : i32
    %c0_i32_1 = arith.constant 0 : i32
    return %c0_i32, %c0_i32_0 : i32, i32
  }
  func.func @transform_13(%arg0: i32) -> (i32, i32) {
    %c0_i32 = arith.constant 0 : i32
    %c0_i32_0 = arith.constant 0 : i32
    return %arg0, %c0_i32 : i32, i32
  }
}

module attributes {stable_mosaic.version = 11 : i64} {
  func.func @_encoder_layer_kernel(%arg0: i32, %arg1: memref<16x128xbf16, #tpu.memory_space<vmem>>, %arg2: memref<128x384xbf16, #tpu.memory_space<vmem>>, %arg3: memref<1x384xf32, #tpu.memory_space<vmem>>, %arg4: memref<128x128xbf16, #tpu.memory_space<vmem>>, %arg5: memref<1x128xf32, #tpu.memory_space<vmem>>, %arg6: memref<1x128xf32, #tpu.memory_space<vmem>>, %arg7: memref<1x128xf32, #tpu.memory_space<vmem>>, %arg8: memref<128x64xbf16, #tpu.memory_space<vmem>>, %arg9: memref<1x64xf32, #tpu.memory_space<vmem>>, %arg10: memref<64x128xbf16, #tpu.memory_space<vmem>>, %arg11: memref<1x128xf32, #tpu.memory_space<vmem>>, %arg12: memref<1x128xf32, #tpu.memory_space<vmem>>, %arg13: memref<1x128xf32, #tpu.memory_space<vmem>>, %arg14: memref<128x64xbf16, #tpu.memory_space<vmem>>, %arg15: memref<1x64xf32, #tpu.memory_space<vmem>>, %arg16: memref<16x64xf32, #tpu.memory_space<vmem>>, %arg17: memref<16x128xbf16, #tpu.memory_space<vmem>>) attributes {dimension_semantics = [#tpu.dimension_semantics<parallel>], iteration_bounds = array<i64: 2>, scalar_prefetch = 0 : i64, scratch_operands = 1 : i64, tpu.core_type = #tpu.core_type<tc>, window_params = [{transform_indices = @transform_0, window_bounds = array<i64: 16, 128>}, {pipeline_mode = #tpu.pipeline_mode<synchronous>, transform_indices = @transform_1, window_bounds = array<i64: 128, 384>}, {pipeline_mode = #tpu.pipeline_mode<synchronous>, transform_indices = @transform_2, window_bounds = array<i64: 1, 384>}, {pipeline_mode = #tpu.pipeline_mode<synchronous>, transform_indices = @transform_3, window_bounds = array<i64: 128, 128>}, {pipeline_mode = #tpu.pipeline_mode<synchronous>, transform_indices = @transform_4, window_bounds = array<i64: 1, 128>}, {pipeline_mode = #tpu.pipeline_mode<synchronous>, transform_indices = @transform_5, window_bounds = array<i64: 1, 128>}, {pipeline_mode = #tpu.pipeline_mode<synchronous>, transform_indices = @transform_6, window_bounds = array<i64: 1, 128>}, {pipeline_mode = #tpu.pipeline_mode<synchronous>, transform_indices = @transform_7, window_bounds = array<i64: 128, 64>}, {pipeline_mode = #tpu.pipeline_mode<synchronous>, transform_indices = @transform_8, window_bounds = array<i64: 1, 64>}, {pipeline_mode = #tpu.pipeline_mode<synchronous>, transform_indices = @transform_9, window_bounds = array<i64: 64, 128>}, {pipeline_mode = #tpu.pipeline_mode<synchronous>, transform_indices = @transform_10, window_bounds = array<i64: 1, 128>}, {pipeline_mode = #tpu.pipeline_mode<synchronous>, transform_indices = @transform_11, window_bounds = array<i64: 1, 128>}, {pipeline_mode = #tpu.pipeline_mode<synchronous>, transform_indices = @transform_12, window_bounds = array<i64: 1, 128>}, {pipeline_mode = #tpu.pipeline_mode<synchronous>, transform_indices = @transform_13, window_bounds = array<i64: 128, 64>}, {pipeline_mode = #tpu.pipeline_mode<synchronous>, transform_indices = @transform_14, window_bounds = array<i64: 1, 64>}, {transform_indices = @transform_15, window_bounds = array<i64: 16, 64>}]} {
    %c0 = arith.constant 0 : index
    %c0_0 = arith.constant 0 : index
    %0 = vector.load %arg1[%c0, %c0_0] : memref<16x128xbf16, #tpu.memory_space<vmem>>, vector<16x128xbf16>
    %1 = arith.extf %0 : vector<16x128xbf16> to vector<16x128xf32>
    %c0_1 = arith.constant 0 : index
    %c0_2 = arith.constant 0 : index
    %2 = vector.load %arg2[%c0_1, %c0_2] : memref<128x384xbf16, #tpu.memory_space<vmem>>, vector<128x384xbf16>
    %cst = arith.constant dense<0.000000e+00> : vector<16x384xf32>
    %3 = tpu.matmul %0, %2, %cst {dimension_numbers = #tpu.dot_dimension_numbers<[1], [0], [0], [1], [0, 0, 1, 1], [], []>} : vector<16x128xbf16>, vector<128x384xbf16>, vector<16x384xf32> -> vector<16x384xf32>
    %c0_3 = arith.constant 0 : index
    %c0_4 = arith.constant 0 : index
    %4 = vector.load %arg3[%c0_3, %c0_4] : memref<1x384xf32, #tpu.memory_space<vmem>>, vector<1x384xf32>
    %5 = vector.broadcast %4 : vector<1x384xf32> to vector<16x384xf32>
    %6 = arith.addf %3, %5 : vector<16x384xf32>
    %7 = arith.truncf %6 : vector<16x384xf32> to vector<16x384xbf16>
    %8 = vector.extract_strided_slice %7 {offsets = [0, 0], sizes = [16, 32], strides = [1, 1]} : vector<16x384xbf16> to vector<16x32xbf16>
    %9 = vector.extract_strided_slice %7 {offsets = [0, 128], sizes = [16, 32], strides = [1, 1]} : vector<16x384xbf16> to vector<16x32xbf16>
    %10 = vector.extract_strided_slice %7 {offsets = [0, 256], sizes = [16, 32], strides = [1, 1]} : vector<16x384xbf16> to vector<16x32xbf16>
    %cst_5 = arith.constant dense<0.000000e+00> : vector<16x16xf32>
    %11 = tpu.matmul %8, %9, %cst_5 {dimension_numbers = #tpu.dot_dimension_numbers<[1], [1], [0], [0], [0, 0, 1, 0], [], []>} : vector<16x32xbf16>, vector<16x32xbf16>, vector<16x16xf32> -> vector<16x16xf32>
    %cst_6 = arith.constant 0.176776692 : f32
    %12 = vector.broadcast %cst_6 : f32 to vector<16x16xf32>
    %13 = arith.mulf %11, %12 : vector<16x16xf32>
    %cst_7 = arith.constant dense<0xFF800000> : vector<16xf32>
    %14 = vector.multi_reduction <maximumf>, %13, %cst_7 [1] : vector<16x16xf32> to vector<16xf32>
    %15 = vector.shape_cast %14 : vector<16xf32> to vector<16x1xf32>
    %16 = vector.broadcast %15 : vector<16x1xf32> to vector<16x16xf32>
    %17 = arith.subf %13, %16 : vector<16x16xf32>
    %18 = math.exp %17 : vector<16x16xf32>
    %cst_8 = arith.constant dense<0.000000e+00> : vector<16xf32>
    %19 = vector.multi_reduction <add>, %18, %cst_8 [1] : vector<16x16xf32> to vector<16xf32>
    %20 = vector.shape_cast %19 : vector<16xf32> to vector<16x1xf32>
    %21 = tpu.reciprocal %20 {approx = true} : vector<16x1xf32> -> vector<16x1xf32>
    %22 = vector.broadcast %21 : vector<16x1xf32> to vector<16x16xf32>
    %23 = arith.mulf %18, %22 : vector<16x16xf32>
    %24 = arith.truncf %23 : vector<16x16xf32> to vector<16x16xbf16>
    %cst_9 = arith.constant dense<0.000000e+00> : vector<16x32xf32>
    %25 = tpu.matmul %24, %10, %cst_9 {dimension_numbers = #tpu.dot_dimension_numbers<[1], [0], [0], [1], [0, 0, 1, 1], [], []>} : vector<16x16xbf16>, vector<16x32xbf16>, vector<16x32xf32> -> vector<16x32xf32>
    %26 = arith.truncf %25 : vector<16x32xf32> to vector<16x32xbf16>
    %c0_10 = arith.constant 0 : index
    %c0_11 = arith.constant 0 : index
    %27 = vector.load %arg17[%c0_10, %c0_11] : memref<16x128xbf16, #tpu.memory_space<vmem>>, vector<16x32xbf16>
    tpu.vector_store %arg17[%c0_10, %c0_11], %26 {strides = array<i32>} : memref<16x128xbf16, #tpu.memory_space<vmem>>, vector<16x32xbf16>,
    %28 = vector.extract_strided_slice %7 {offsets = [0, 32], sizes = [16, 32], strides = [1, 1]} : vector<16x384xbf16> to vector<16x32xbf16>
    %29 = vector.extract_strided_slice %7 {offsets = [0, 160], sizes = [16, 32], strides = [1, 1]} : vector<16x384xbf16> to vector<16x32xbf16>
    %30 = vector.extract_strided_slice %7 {offsets = [0, 288], sizes = [16, 32], strides = [1, 1]} : vector<16x384xbf16> to vector<16x32xbf16>
    %cst_12 = arith.constant dense<0.000000e+00> : vector<16x16xf32>
    %31 = tpu.matmul %28, %29, %cst_12 {dimension_numbers = #tpu.dot_dimension_numbers<[1], [1], [0], [0], [0, 0, 1, 0], [], []>} : vector<16x32xbf16>, vector<16x32xbf16>, vector<16x16xf32> -> vector<16x16xf32>
    %cst_13 = arith.constant 0.176776692 : f32
    %32 = vector.broadcast %cst_13 : f32 to vector<16x16xf32>
    %33 = arith.mulf %31, %32 : vector<16x16xf32>
    %cst_14 = arith.constant dense<0xFF800000> : vector<16xf32>
    %34 = vector.multi_reduction <maximumf>, %33, %cst_14 [1] : vector<16x16xf32> to vector<16xf32>
    %35 = vector.shape_cast %34 : vector<16xf32> to vector<16x1xf32>
    %36 = vector.broadcast %35 : vector<16x1xf32> to vector<16x16xf32>
    %37 = arith.subf %33, %36 : vector<16x16xf32>
    %38 = math.exp %37 : vector<16x16xf32>
    %cst_15 = arith.constant dense<0.000000e+00> : vector<16xf32>
    %39 = vector.multi_reduction <add>, %38, %cst_15 [1] : vector<16x16xf32> to vector<16xf32>
    %40 = vector.shape_cast %39 : vector<16xf32> to vector<16x1xf32>
    %41 = tpu.reciprocal %40 {approx = true} : vector<16x1xf32> -> vector<16x1xf32>
    %42 = vector.broadcast %41 : vector<16x1xf32> to vector<16x16xf32>
    %43 = arith.mulf %38, %42 : vector<16x16xf32>
    %44 = arith.truncf %43 : vector<16x16xf32> to vector<16x16xbf16>
    %cst_16 = arith.constant dense<0.000000e+00> : vector<16x32xf32>
    %45 = tpu.matmul %44, %30, %cst_16 {dimension_numbers = #tpu.dot_dimension_numbers<[1], [0], [0], [1], [0, 0, 1, 1], [], []>} : vector<16x16xbf16>, vector<16x32xbf16>, vector<16x32xf32> -> vector<16x32xf32>
    %46 = arith.truncf %45 : vector<16x32xf32> to vector<16x32xbf16>
    %c0_17 = arith.constant 0 : index
    %c32 = arith.constant 32 : index
    %47 = vector.load %arg17[%c0_17, %c32] : memref<16x128xbf16, #tpu.memory_space<vmem>>, vector<16x32xbf16>
    tpu.vector_store %arg17[%c0_17, %c32], %46 {strides = array<i32>} : memref<16x128xbf16, #tpu.memory_space<vmem>>, vector<16x32xbf16>,
    %48 = vector.extract_strided_slice %7 {offsets = [0, 64], sizes = [16, 32], strides = [1, 1]} : vector<16x384xbf16> to vector<16x32xbf16>
    %49 = vector.extract_strided_slice %7 {offsets = [0, 192], sizes = [16, 32], strides = [1, 1]} : vector<16x384xbf16> to vector<16x32xbf16>
    %50 = vector.extract_strided_slice %7 {offsets = [0, 320], sizes = [16, 32], strides = [1, 1]} : vector<16x384xbf16> to vector<16x32xbf16>
    %cst_18 = arith.constant dense<0.000000e+00> : vector<16x16xf32>
    %51 = tpu.matmul %48, %49, %cst_18 {dimension_numbers = #tpu.dot_dimension_numbers<[1], [1], [0], [0], [0, 0, 1, 0], [], []>} : vector<16x32xbf16>, vector<16x32xbf16>, vector<16x16xf32> -> vector<16x16xf32>
    %cst_19 = arith.constant 0.176776692 : f32
    %52 = vector.broadcast %cst_19 : f32 to vector<16x16xf32>
    %53 = arith.mulf %51, %52 : vector<16x16xf32>
    %cst_20 = arith.constant dense<0xFF800000> : vector<16xf32>
    %54 = vector.multi_reduction <maximumf>, %53, %cst_20 [1] : vector<16x16xf32> to vector<16xf32>
    %55 = vector.shape_cast %54 : vector<16xf32> to vector<16x1xf32>
    %56 = vector.broadcast %55 : vector<16x1xf32> to vector<16x16xf32>
    %57 = arith.subf %53, %56 : vector<16x16xf32>
    %58 = math.exp %57 : vector<16x16xf32>
    %cst_21 = arith.constant dense<0.000000e+00> : vector<16xf32>
    %59 = vector.multi_reduction <add>, %58, %cst_21 [1] : vector<16x16xf32> to vector<16xf32>
    %60 = vector.shape_cast %59 : vector<16xf32> to vector<16x1xf32>
    %61 = tpu.reciprocal %60 {approx = true} : vector<16x1xf32> -> vector<16x1xf32>
    %62 = vector.broadcast %61 : vector<16x1xf32> to vector<16x16xf32>
    %63 = arith.mulf %58, %62 : vector<16x16xf32>
    %64 = arith.truncf %63 : vector<16x16xf32> to vector<16x16xbf16>
    %cst_22 = arith.constant dense<0.000000e+00> : vector<16x32xf32>
    %65 = tpu.matmul %64, %50, %cst_22 {dimension_numbers = #tpu.dot_dimension_numbers<[1], [0], [0], [1], [0, 0, 1, 1], [], []>} : vector<16x16xbf16>, vector<16x32xbf16>, vector<16x32xf32> -> vector<16x32xf32>
    %66 = arith.truncf %65 : vector<16x32xf32> to vector<16x32xbf16>
    %c0_23 = arith.constant 0 : index
    %c64 = arith.constant 64 : index
    %67 = vector.load %arg17[%c0_23, %c64] : memref<16x128xbf16, #tpu.memory_space<vmem>>, vector<16x32xbf16>
    tpu.vector_store %arg17[%c0_23, %c64], %66 {strides = array<i32>} : memref<16x128xbf16, #tpu.memory_space<vmem>>, vector<16x32xbf16>,
    %68 = vector.extract_strided_slice %7 {offsets = [0, 96], sizes = [16, 32], strides = [1, 1]} : vector<16x384xbf16> to vector<16x32xbf16>
    %69 = vector.extract_strided_slice %7 {offsets = [0, 224], sizes = [16, 32], strides = [1, 1]} : vector<16x384xbf16> to vector<16x32xbf16>
    %70 = vector.extract_strided_slice %7 {offsets = [0, 352], sizes = [16, 32], strides = [1, 1]} : vector<16x384xbf16> to vector<16x32xbf16>
    %cst_24 = arith.constant dense<0.000000e+00> : vector<16x16xf32>
    %71 = tpu.matmul %68, %69, %cst_24 {dimension_numbers = #tpu.dot_dimension_numbers<[1], [1], [0], [0], [0, 0, 1, 0], [], []>} : vector<16x32xbf16>, vector<16x32xbf16>, vector<16x16xf32> -> vector<16x16xf32>
    %cst_25 = arith.constant 0.176776692 : f32
    %72 = vector.broadcast %cst_25 : f32 to vector<16x16xf32>
    %73 = arith.mulf %71, %72 : vector<16x16xf32>
    %cst_26 = arith.constant dense<0xFF800000> : vector<16xf32>
    %74 = vector.multi_reduction <maximumf>, %73, %cst_26 [1] : vector<16x16xf32> to vector<16xf32>
    %75 = vector.shape_cast %74 : vector<16xf32> to vector<16x1xf32>
    %76 = vector.broadcast %75 : vector<16x1xf32> to vector<16x16xf32>
    %77 = arith.subf %73, %76 : vector<16x16xf32>
    %78 = math.exp %77 : vector<16x16xf32>
    %cst_27 = arith.constant dense<0.000000e+00> : vector<16xf32>
    %79 = vector.multi_reduction <add>, %78, %cst_27 [1] : vector<16x16xf32> to vector<16xf32>
    %80 = vector.shape_cast %79 : vector<16xf32> to vector<16x1xf32>
    %81 = tpu.reciprocal %80 {approx = true} : vector<16x1xf32> -> vector<16x1xf32>
    %82 = vector.broadcast %81 : vector<16x1xf32> to vector<16x16xf32>
    %83 = arith.mulf %78, %82 : vector<16x16xf32>
    %84 = arith.truncf %83 : vector<16x16xf32> to vector<16x16xbf16>
    %cst_28 = arith.constant dense<0.000000e+00> : vector<16x32xf32>
    %85 = tpu.matmul %84, %70, %cst_28 {dimension_numbers = #tpu.dot_dimension_numbers<[1], [0], [0], [1], [0, 0, 1, 1], [], []>} : vector<16x16xbf16>, vector<16x32xbf16>, vector<16x32xf32> -> vector<16x32xf32>
    %86 = arith.truncf %85 : vector<16x32xf32> to vector<16x32xbf16>
    %c0_29 = arith.constant 0 : index
    %c96 = arith.constant 96 : index
    %87 = vector.load %arg17[%c0_29, %c96] : memref<16x128xbf16, #tpu.memory_space<vmem>>, vector<16x32xbf16>
    tpu.vector_store %arg17[%c0_29, %c96], %86 {strides = array<i32>} : memref<16x128xbf16, #tpu.memory_space<vmem>>, vector<16x32xbf16>,
    %c0_30 = arith.constant 0 : index
    %c0_31 = arith.constant 0 : index
    %88 = vector.load %arg17[%c0_30, %c0_31] : memref<16x128xbf16, #tpu.memory_space<vmem>>, vector<16x128xbf16>
    %c0_32 = arith.constant 0 : index
    %c0_33 = arith.constant 0 : index
    %89 = vector.load %arg4[%c0_32, %c0_33] : memref<128x128xbf16, #tpu.memory_space<vmem>>, vector<128x128xbf16>
    %cst_34 = arith.constant dense<0.000000e+00> : vector<16x128xf32>
    %90 = tpu.matmul %88, %89, %cst_34 {dimension_numbers = #tpu.dot_dimension_numbers<[1], [0], [0], [1], [0, 0, 1, 1], [], []>} : vector<16x128xbf16>, vector<128x128xbf16>, vector<16x128xf32> -> vector<16x128xf32>
    %c0_35 = arith.constant 0 : index
    %c0_36 = arith.constant 0 : index
    %91 = vector.load %arg5[%c0_35, %c0_36] : memref<1x128xf32, #tpu.memory_space<vmem>>, vector<1x128xf32>
    %92 = vector.broadcast %91 : vector<1x128xf32> to vector<16x128xf32>
    %93 = arith.addf %90, %92 : vector<16x128xf32>
    %94 = arith.addf %1, %93 : vector<16x128xf32>
    %cst_37 = arith.constant dense<0.000000e+00> : vector<16xf32>
    %95 = vector.multi_reduction <add>, %94, %cst_37 [1] : vector<16x128xf32> to vector<16xf32>
    %96 = vector.shape_cast %95 : vector<16xf32> to vector<16x1xf32>
    %cst_38 = arith.constant 1.280000e+02 : f32
    %97 = vector.broadcast %cst_38 : f32 to vector<16x1xf32>
    %98 = arith.divf %96, %97 : vector<16x1xf32>
    %99 = vector.broadcast %98 : vector<16x1xf32> to vector<16x128xf32>
    %100 = arith.subf %94, %99 : vector<16x128xf32>
    %101 = arith.mulf %100, %100 : vector<16x128xf32>
    %cst_39 = arith.constant dense<0.000000e+00> : vector<16xf32>
    %102 = vector.multi_reduction <add>, %101, %cst_39 [1] : vector<16x128xf32> to vector<16xf32>
    %103 = vector.shape_cast %102 : vector<16xf32> to vector<16x1xf32>
    %cst_40 = arith.constant 1.280000e+02 : f32
    %104 = vector.broadcast %cst_40 : f32 to vector<16x1xf32>
    %105 = arith.divf %103, %104 : vector<16x1xf32>
    %cst_41 = arith.constant 9.99999974E-6 : f32
    %106 = vector.broadcast %cst_41 : f32 to vector<16x1xf32>
    %107 = arith.addf %105, %106 : vector<16x1xf32>
    %108 = math.rsqrt %107 : vector<16x1xf32>
    %109 = vector.broadcast %108 : vector<16x1xf32> to vector<16x128xf32>
    %110 = arith.mulf %100, %109 : vector<16x128xf32>
    %c0_42 = arith.constant 0 : index
    %c0_43 = arith.constant 0 : index
    %111 = vector.load %arg6[%c0_42, %c0_43] : memref<1x128xf32, #tpu.memory_space<vmem>>, vector<1x128xf32>
    %112 = vector.broadcast %111 : vector<1x128xf32> to vector<16x128xf32>
    %113 = arith.mulf %110, %112 : vector<16x128xf32>
    %c0_44 = arith.constant 0 : index
    %c0_45 = arith.constant 0 : index
    %114 = vector.load %arg7[%c0_44, %c0_45] : memref<1x128xf32, #tpu.memory_space<vmem>>, vector<1x128xf32>
    %115 = vector.broadcast %114 : vector<1x128xf32> to vector<16x128xf32>
    %116 = arith.addf %113, %115 : vector<16x128xf32>
    %117 = arith.truncf %116 : vector<16x128xf32> to vector<16x128xbf16>
    %c0_46 = arith.constant 0 : index
    %c0_47 = arith.constant 0 : index
    %118 = vector.load %arg8[%c0_46, %c0_47] : memref<128x64xbf16, #tpu.memory_space<vmem>>, vector<128x64xbf16>
    %cst_48 = arith.constant dense<0.000000e+00> : vector<16x64xf32>
    %119 = tpu.matmul %117, %118, %cst_48 {dimension_numbers = #tpu.dot_dimension_numbers<[1], [0], [0], [1], [0, 0, 1, 1], [], []>} : vector<16x128xbf16>, vector<128x64xbf16>, vector<16x64xf32> -> vector<16x64xf32>
    %c0_49 = arith.constant 0 : index
    %c0_50 = arith.constant 0 : index
    %120 = vector.load %arg9[%c0_49, %c0_50] : memref<1x64xf32, #tpu.memory_space<vmem>>, vector<1x64xf32>
    %121 = vector.broadcast %120 : vector<1x64xf32> to vector<16x64xf32>
    %122 = arith.addf %119, %121 : vector<16x64xf32>
    %cst_51 = arith.constant 0.000000e+00 : f32
    %123 = vector.broadcast %cst_51 : f32 to vector<16x64xf32>
    %124 = arith.maximumf %122, %123 : vector<16x64xf32>
    %125 = arith.truncf %124 : vector<16x64xf32> to vector<16x64xbf16>
    %c0_52 = arith.constant 0 : index
    %c0_53 = arith.constant 0 : index
    %126 = vector.load %arg10[%c0_52, %c0_53] : memref<64x128xbf16, #tpu.memory_space<vmem>>, vector<64x128xbf16>
    %cst_54 = arith.constant dense<0.000000e+00> : vector<16x128xf32>
    %127 = tpu.matmul %125, %126, %cst_54 {dimension_numbers = #tpu.dot_dimension_numbers<[1], [0], [0], [1], [0, 0, 1, 1], [], []>} : vector<16x64xbf16>, vector<64x128xbf16>, vector<16x128xf32> -> vector<16x128xf32>
    %c0_55 = arith.constant 0 : index
    %c0_56 = arith.constant 0 : index
    %128 = vector.load %arg11[%c0_55, %c0_56] : memref<1x128xf32, #tpu.memory_space<vmem>>, vector<1x128xf32>
    %129 = vector.broadcast %128 : vector<1x128xf32> to vector<16x128xf32>
    %130 = arith.addf %127, %129 : vector<16x128xf32>
    %131 = arith.addf %116, %130 : vector<16x128xf32>
    %cst_57 = arith.constant dense<0.000000e+00> : vector<16xf32>
    %132 = vector.multi_reduction <add>, %131, %cst_57 [1] : vector<16x128xf32> to vector<16xf32>
    %133 = vector.shape_cast %132 : vector<16xf32> to vector<16x1xf32>
    %cst_58 = arith.constant 1.280000e+02 : f32
    %134 = vector.broadcast %cst_58 : f32 to vector<16x1xf32>
    %135 = arith.divf %133, %134 : vector<16x1xf32>
    %136 = vector.broadcast %135 : vector<16x1xf32> to vector<16x128xf32>
    %137 = arith.subf %131, %136 : vector<16x128xf32>
    %138 = arith.mulf %137, %137 : vector<16x128xf32>
    %cst_59 = arith.constant dense<0.000000e+00> : vector<16xf32>
    %139 = vector.multi_reduction <add>, %138, %cst_59 [1] : vector<16x128xf32> to vector<16xf32>
    %140 = vector.shape_cast %139 : vector<16xf32> to vector<16x1xf32>
    %cst_60 = arith.constant 1.280000e+02 : f32
    %141 = vector.broadcast %cst_60 : f32 to vector<16x1xf32>
    %142 = arith.divf %140, %141 : vector<16x1xf32>
    %cst_61 = arith.constant 9.99999974E-6 : f32
    %143 = vector.broadcast %cst_61 : f32 to vector<16x1xf32>
    %144 = arith.addf %142, %143 : vector<16x1xf32>
    %145 = math.rsqrt %144 : vector<16x1xf32>
    %146 = vector.broadcast %145 : vector<16x1xf32> to vector<16x128xf32>
    %147 = arith.mulf %137, %146 : vector<16x128xf32>
    %c0_62 = arith.constant 0 : index
    %c0_63 = arith.constant 0 : index
    %148 = vector.load %arg12[%c0_62, %c0_63] : memref<1x128xf32, #tpu.memory_space<vmem>>, vector<1x128xf32>
    %149 = vector.broadcast %148 : vector<1x128xf32> to vector<16x128xf32>
    %150 = arith.mulf %147, %149 : vector<16x128xf32>
    %c0_64 = arith.constant 0 : index
    %c0_65 = arith.constant 0 : index
    %151 = vector.load %arg13[%c0_64, %c0_65] : memref<1x128xf32, #tpu.memory_space<vmem>>, vector<1x128xf32>
    %152 = vector.broadcast %151 : vector<1x128xf32> to vector<16x128xf32>
    %153 = arith.addf %150, %152 : vector<16x128xf32>
    %154 = arith.truncf %153 : vector<16x128xf32> to vector<16x128xbf16>
    %c0_66 = arith.constant 0 : index
    %c0_67 = arith.constant 0 : index
    %155 = vector.load %arg14[%c0_66, %c0_67] : memref<128x64xbf16, #tpu.memory_space<vmem>>, vector<128x64xbf16>
    %cst_68 = arith.constant dense<0.000000e+00> : vector<16x64xf32>
    %156 = tpu.matmul %154, %155, %cst_68 {dimension_numbers = #tpu.dot_dimension_numbers<[1], [0], [0], [1], [0, 0, 1, 1], [], []>} : vector<16x128xbf16>, vector<128x64xbf16>, vector<16x64xf32> -> vector<16x64xf32>
    %c0_69 = arith.constant 0 : index
    %c0_70 = arith.constant 0 : index
    %157 = vector.load %arg15[%c0_69, %c0_70] : memref<1x64xf32, #tpu.memory_space<vmem>>, vector<1x64xf32>
    %158 = vector.broadcast %157 : vector<1x64xf32> to vector<16x64xf32>
    %159 = arith.addf %156, %158 : vector<16x64xf32>
    %c0_71 = arith.constant 0 : index
    %c0_72 = arith.constant 0 : index
    %160 = vector.load %arg16[%c0_71, %c0_72] : memref<16x64xf32, #tpu.memory_space<vmem>>, vector<16x64xf32>
    tpu.vector_store %arg16[%c0_71, %c0_72], %159 {strides = array<i32>} : memref<16x64xf32, #tpu.memory_space<vmem>>, vector<16x64xf32>,
    return
  }
  func.func @transform_0(%arg0: i32) -> (i32, i32) {
    %c0_i32 = arith.constant 0 : i32
    %c0_i32_0 = arith.constant 0 : i32
    return %arg0, %c0_i32 : i32, i32
  }
  func.func @transform_1(%arg0: i32) -> (i32, i32) {
    %c0_i32 = arith.constant 0 : i32
    %c0_i32_0 = arith.constant 0 : i32
    %c0_i32_1 = arith.constant 0 : i32
    return %c0_i32, %c0_i32_0 : i32, i32
  }
  func.func @transform_2(%arg0: i32) -> (i32, i32) {
    %c0_i32 = arith.constant 0 : i32
    %c0_i32_0 = arith.constant 0 : i32
    %c0_i32_1 = arith.constant 0 : i32
    return %c0_i32, %c0_i32_0 : i32, i32
  }
  func.func @transform_3(%arg0: i32) -> (i32, i32) {
    %c0_i32 = arith.constant 0 : i32
    %c0_i32_0 = arith.constant 0 : i32
    %c0_i32_1 = arith.constant 0 : i32
    return %c0_i32, %c0_i32_0 : i32, i32
  }
  func.func @transform_4(%arg0: i32) -> (i32, i32) {
    %c0_i32 = arith.constant 0 : i32
    %c0_i32_0 = arith.constant 0 : i32
    %c0_i32_1 = arith.constant 0 : i32
    return %c0_i32, %c0_i32_0 : i32, i32
  }
  func.func @transform_5(%arg0: i32) -> (i32, i32) {
    %c0_i32 = arith.constant 0 : i32
    %c0_i32_0 = arith.constant 0 : i32
    %c0_i32_1 = arith.constant 0 : i32
    return %c0_i32, %c0_i32_0 : i32, i32
  }
  func.func @transform_6(%arg0: i32) -> (i32, i32) {
    %c0_i32 = arith.constant 0 : i32
    %c0_i32_0 = arith.constant 0 : i32
    %c0_i32_1 = arith.constant 0 : i32
    return %c0_i32, %c0_i32_0 : i32, i32
  }
  func.func @transform_7(%arg0: i32) -> (i32, i32) {
    %c0_i32 = arith.constant 0 : i32
    %c0_i32_0 = arith.constant 0 : i32
    %c0_i32_1 = arith.constant 0 : i32
    return %c0_i32, %c0_i32_0 : i32, i32
  }
  func.func @transform_8(%arg0: i32) -> (i32, i32) {
    %c0_i32 = arith.constant 0 : i32
    %c0_i32_0 = arith.constant 0 : i32
    %c0_i32_1 = arith.constant 0 : i32
    return %c0_i32, %c0_i32_0 : i32, i32
  }
  func.func @transform_9(%arg0: i32) -> (i32, i32) {
    %c0_i32 = arith.constant 0 : i32
    %c0_i32_0 = arith.constant 0 : i32
    %c0_i32_1 = arith.constant 0 : i32
    return %c0_i32, %c0_i32_0 : i32, i32
  }
  func.func @transform_10(%arg0: i32) -> (i32, i32) {
    %c0_i32 = arith.constant 0 : i32
    %c0_i32_0 = arith.constant 0 : i32
    %c0_i32_1 = arith.constant 0 : i32
    return %c0_i32, %c0_i32_0 : i32, i32
  }
  func.func @transform_11(%arg0: i32) -> (i32, i32) {
    %c0_i32 = arith.constant 0 : i32
    %c0_i32_0 = arith.constant 0 : i32
    %c0_i32_1 = arith.constant 0 : i32
    return %c0_i32, %c0_i32_0 : i32, i32
  }
  func.func @transform_12(%arg0: i32) -> (i32, i32) {
    %c0_i32 = arith.constant 0 : i32
    %c0_i32_0 = arith.constant 0 : i32
    %c0_i32_1 = arith.constant 0 : i32
    return %c0_i32, %c0_i32_0 : i32, i32
  }
  func.func @transform_13(%arg0: i32) -> (i32, i32) {
    %c0_i32 = arith.constant 0 : i32
    %c0_i32_0 = arith.constant 0 : i32
    %c0_i32_1 = arith.constant 0 : i32
    return %c0_i32, %c0_i32_0 : i32, i32
  }
  func.func @transform_14(%arg0: i32) -> (i32, i32) {
    %c0_i32 = arith.constant 0 : i32
    %c0_i32_0 = arith.constant 0 : i32
    %c0_i32_1 = arith.constant 0 : i32
    return %c0_i32, %c0_i32_0 : i32, i32
  }
  func.func @transform_15(%arg0: i32) -> (i32, i32) {
    %c0_i32 = arith.constant 0 : i32
    %c0_i32_0 = arith.constant 0 : i32
    return %arg0, %c0_i32 : i32, i32
  }
}

</mosaic_0001>

<bundles_post_ra>
// kernel: tpu_custom_call.1
= control target key start
LH: loop header
LB: loop body
LE: loop exit
PB: predicated region body
PF: predicated region fallthrough
CT: control target
= control target key end

     0   :  { %6 = vsyncpa [#allocation3], 0  ;;  %s305_s0 = inlined_call_operand.hbm [shape: f32[8,128], index: 0, kind: input, shape index: {}]   ;;  %s306_s1 = inlined_call_operand.hbm [shape: f32[8,128], index: 1, kind: output, shape index: {}]  }
   0x1   :  { %7 = vsyncpa [#allocation4], 0  ;;  %s258_s6 = smov 0  }
   0x2 LB: > { %s145_s7 = sadd.s32 4294967295, %s244_s6   ;;  %p146_p0 = scmp.ge.s32.totalorder %s244_s6, 1  ;;  %s244_s6 = sphi %s258_s6, %s13_s6  }
   0x3   : > { %p60_p1 = scmp.lt.s32.totalorder %s244_s6, 3  ;;  %p270_p3 = scmp.eq.s32.totalorder %s145_s7, 0 }
   0x4   : > { %s246_s10 = smov [#allocation2]  }
   0x5   : > { %p266_p2 = pnand %p146_p0, %p60_p1  ;;  %s73_s11 = sshll.u32 %s246_s10, 4  ;;  %s74_s11 = int_to_ptr.vmem [resolvable:$true] %s73_s11 }
   0x6   : > { %s191_s12 = scalar_lea.vmem %s74_s11, 128  ;;  %p199_p10 = scmp.lt.s32.totalorder %s74_s11, %s74_s11 }
   0x7   : > { %p162_p4 = pneg %p266_p2  ;;  %p192_p7 = scmp.ne.s32.totalorder %s74_s11, %s191_s12 }
   0x8   : > { %p200_p11 = scmp.lt.s32.totalorder %s191_s12, %s191_s12 }
   0x9   : > { %p163_p5 = pnand %p270_p3, %p162_p4 }
   0xa   : > { %p201_p12 = por %p200_p11, %p199_p10 }
   0xb   : > { %p182_p6 = pneg %p163_p5 }
   0xd   : > { %p194_p8 = pnand %p192_p7, %p182_p6 }
   0xf   : > { %p195_p9 = pneg %p194_p8 }
  0x11   : > { %p202_p13 = pnand %p201_p12, %p195_p9 }
  0x13   : > { %205 = shalt.err (!%p202_p13)
}
  0x14   : > { %165 = dma.hbm_to_vmem [thread:$0]  (!%p163_p5), %s305_s0, 128, %s74_s11, [#allocation3]  }
  0x15   : > { %86 = sbr.rel (%p266_p2) target bundleno = 42 (0x2a), region = 24 }
  0x1a   : > { %235 = dma.done.wait (%p270_p3), [#allocation3], 128  }
  0x1b   : > { %237 = vsyncadd (%p270_p3), [#allocation3], 4294967168  ;;  %s247_s15 = smov [#allocation5]   ;;  %v96_v0 = vld [vmem:[#allocation2] sm:$0xff]  ;;  %p287_p0 = scmp.eq.s32.totalorder %s145_s7, 1 }
  0x1c   : > { %s106_s16 = sshll.u32 %s247_s15, 4  ;;  %v97_v1 = vmul.f32 2.0, %v96_v0  ;;  %s107_s16 = int_to_ptr.vmem [resolvable:$true] %s106_s16 }
  0x1d   : > { %s206_s18 = scalar_lea.vmem %s107_s16, 128  ;;  %p213_p5 = scmp.lt.s32.totalorder %s107_s16, %s107_s16 }
  0x1e   : > { %98 = vst [vmem:[#allocation5] sm:$0xff] %v97_v1  ;;  %p207_p1 = scmp.ne.s32.totalorder %s107_s16, %s206_s18  ;;  %p214_p6 = scmp.lt.s32.totalorder %s206_s18, %s206_s18 }
  0x20   : > { %p208_p2 = pnand %p207_p1, %p287_p0  ;;  %p215_p7 = por %p214_p6, %p213_p5 }
  0x22   : > { %p209_p4 = pneg %p208_p2 }
  0x24   : > { %p216_p3 = pnand %p215_p7, %p209_p4 }
  0x26   : > { %219 = shalt.err (!%p216_p3)
}
  0x27   : > { %159 = dma.vmem_to_hbm [thread:$0]  (%p287_p0), %s107_s16, 128, %s306_s1, [#allocation4]  }
  0x28   : > { %239 = dma.done.wait (%p287_p0), [#allocation4], 128  }
  0x29   : > { %241 = vsyncadd (%p287_p0), [#allocation4], 4294967168 }
  0x2a PF: > { %s13_s6 = sadd.s32 1, %s244_s6  }
  0x2b   : > { %p10_p8 = scmp.ge.s32.totalorder %s13_s6, 4  }
  0x2d   :  { %12 = sbr.rel (!%p10_p8) target bundleno = 2 (0x2), region = 53 }
  0x32   :  { %119 = vsyncpa [#allocation3], 1 }
  0x33   :  { %121 = vsyncpa [#allocation3 + $0x1], 1 }
  0x34   :  { %122 = vsyncpa [#allocation4], 1 }
  0x35   :  { %124 = vsyncpa [#allocation4 + $0x1], 1 }

// kernel: reasoning_transformer_forward.6
= control target key start
LH: loop header
LB: loop body
LE: loop exit
PB: predicated region body
PF: predicated region fallthrough
CT: control target
= control target key end

     0   :  { %18 = vsyncpa [#allocation4], 0  ;;  %s2823_s0 = inlined_call_operand.vmem [shape: bf16[32,128], index: 0, kind: input, shape index: {}]   ;;  %s2824_s1 = inlined_call_operand.vmem [shape: bf16[128,384], index: 1, kind: input, shape index: {}]   ;;  %s2825_s2 = inlined_call_operand.hbm [shape: f32[1,384], index: 2, kind: input, shape index: {}]   ;;  %s2826_s3 = inlined_call_operand.vmem [shape: bf16[128,128], index: 3, kind: input, shape index: {}]   ;;  %s2827_s4 = inlined_call_operand.vmem [shape: f32[1,128], index: 4, kind: input, shape index: {}]   ;;  %s2828_s5 = inlined_call_operand.vmem [shape: f32[1,128], index: 5, kind: input, shape index: {}]   ;;  %s2829_s6 = inlined_call_operand.hbm [shape: f32[1,128], index: 6, kind: input, shape index: {}]   ;;  %s2830_s7 = inlined_call_operand.vmem [shape: bf16[128,64], index: 7, kind: input, shape index: {}]   ;;  %s2831_s8 = inlined_call_operand.hbm [shape: f32[1,64], index: 8, kind: input, shape index: {}]   ;;  %s2832_s9 = inlined_call_operand.vmem [shape: bf16[64,128], index: 9, kind: input, shape index: {}]   ;;  %s2833_s10 = inlined_call_operand.hbm [shape: f32[1,128], index: 10, kind: input, shape index: {}]   ;;  %s2834_s11 = inlined_call_operand.vmem [shape: f32[1,128], index: 11, kind: input, shape index: {}]   ;;  %s2835_s12 = inlined_call_operand.vmem [shape: f32[1,128], index: 12, kind: input, shape index: {}]   ;;  %s2836_s13 = inlined_call_operand.vmem [shape: bf16[32,128], index: 13, kind: output, shape index: {}]  }
   0x1   :  { %19 = vsyncpa [#allocation6], 0 }
   0x2   :  { %20 = vsyncpa [#allocation9], 0  ;;  %s2456_s25 = smov 0  }
   0x3 LB: > { %s1828_s26 = sadd.s32 4294967295, %s2374_s25   ;;  %p1830_p0 = scmp.ge.s32.totalorder %s2374_s25, 1  ;;  %s2374_s25 = sphi %s2456_s25, %s26_s25  }
   0x4   : > { %p335_p1 = scmp.lt.s32.totalorder %s2374_s25, 3  ;;  %p2466_p2 = scmp.eq.s32.totalorder %s1828_s26, 0 }
   0x5   : > { %s2376_s28 = smov [#allocation5]   ;;  %s2377_s14 = smov [#allocation3]  }
   0x6   : > { %s2839_s27 = scalar_select %p2466_p2, 1, 0 }
   0x7   : > { %s371_s29 = sshll.u32 %s2376_s28, 4  ;;  %p2470_p3 = pnand %p1830_p0, %p335_p1  ;;  %s372_s29 = int_to_ptr.vmem [resolvable:$true] %s371_s29 }
   0x8   : > { %s351_s15 = sshll.u32 %s2377_s14, 4  ;;  %s2378_s16 = smov [#allocation7]   ;;  %s352_s15 = int_to_ptr.vmem [resolvable:$true] %s351_s15 }
   0x9   : > { %p2118_p4 = pneg %p2470_p3  ;;  %s385_s17 = sshll.u32 %s2378_s16, 4  ;;  %s2482_s17 = int_to_ptr.vmem [resolvable:$true] %s385_s17 }
   0xa   : > { %s2379_s19 = smov [#allocation8]   ;;  %s2263_s21 = scalar_lea.vmem %s372_s29, 16 }
   0xb   : > { %p2478_p5 = pnand %p2466_p2, %p2118_p4  ;;  %s399_s20 = sshll.u32 %s2379_s19, 4  ;;  %s2484_s20 = int_to_ptr.vmem [resolvable:$true] %s399_s20 }
   0xc   : > { %p2264_p7 = scmp.ne.s32.totalorder %s372_s29, %s2263_s21  ;;  %s2270_s22 = scalar_lea.vmem %s372_s29, 32 }
   0xd   : > { %p2254_p6 = pneg %p2478_p5  ;;  %p2271_p10 = scmp.lt.s32.totalorder %s372_s29, %s372_s29 }
   0xe   : > { %p2272_p11 = scmp.lt.s32.totalorder %s2270_s22, %s2263_s21 }
   0xf   : > { %p2266_p8 = pnand %p2264_p7, %p2254_p6 }
  0x10   : > { %p2273_p12 = por %p2272_p11, %p2271_p10 }
  0x11   : > { %p2267_p9 = pneg %p2266_p8 }
  0x13   : > { %p2274_p13 = pnand %p2273_p12, %p2267_p9 }
  0x15   : > { %2277 = shalt.err (!%p2274_p13)
}
  0x16   : > { %2124 = dma.hbm_to_vmem [thread:$0]  (!%p2478_p5), %s2829_s6, 16, %s372_s29, [#allocation6]  }
  0x17   : > { %s2289_s28 = scalar_lea.vmem %s352_s15, 48  ;;  %s2296_s14 = scalar_lea.vmem %s352_s15, 64 }
  0x18   : > { %p2290_p0 = scmp.ne.s32.totalorder %s352_s15, %s2289_s28  ;;  %p2297_p7 = scmp.lt.s32.totalorder %s352_s15, %s352_s15 }
  0x19   : > { %p2298_p8 = scmp.lt.s32.totalorder %s2296_s14, %s2289_s28 }
  0x1a   : > { %p2292_p1 = pnand %p2290_p0, %p2254_p6 }
  0x1b   : > { %p2299_p2 = por %p2298_p8, %p2297_p7 }
  0x1c   : > { %p2293_p4 = pneg %p2292_p1 }
  0x1e   : > { %p2300_p10 = pnand %p2299_p2, %p2293_p4 }
  0x20   : > { %2303 = shalt.err (!%p2300_p10)
}
  0x21   : > { %2121 = dma.hbm_to_vmem [thread:$0]  (!%p2478_p5), %s2825_s2, 48, %s352_s15, [#allocation4]  }
  0x22   : > { %s2315_s29 = scalar_lea.vmem %s2482_s17, 16  ;;  %s2322_s21 = scalar_lea.vmem %s2482_s17, 32 }
  0x23   : > { %p2316_p9 = scmp.ne.s32.totalorder %s2482_s17, %s2315_s29  ;;  %p2323_p2 = scmp.lt.s32.totalorder %s2482_s17, %s2482_s17 }
  0x24   : > { %p2324_p13 = scmp.lt.s32.totalorder %s2322_s21, %s2315_s29 }
  0x25   : > { %p2318_p11 = pnand %p2316_p9, %p2254_p6 }
  0x26   : > { %p2325_p0 = por %p2324_p13, %p2323_p2 }
  0x27   : > { %p2319_p12 = pneg %p2318_p11 }
  0x29   : > { %p2326_p1 = pnand %p2325_p0, %p2319_p12 }
  0x2b   : > { %2329 = shalt.err (!%p2326_p1)
}
  0x2c   : > { %2127 = dma.hbm_to_vmem [thread:$0]  (!%p2478_p5), %s2831_s8, 16, %s2482_s17, [#allocation6]  }
  0x2d   : > { %s2341_s15 = scalar_lea.vmem %s2484_s20, 16  ;;  %s2348_s24 = scalar_lea.vmem %s2484_s20, 32 }
  0x2e   : > { %p2342_p4 = scmp.ne.s32.totalorder %s2484_s20, %s2341_s15  ;;  %p2349_p10 = scmp.lt.s32.totalorder %s2484_s20, %s2484_s20 }
  0x2f   : > { %p2350_p9 = scmp.lt.s32.totalorder %s2348_s24, %s2341_s15 }
  0x30   : > { %p2344_p7 = pnand %p2342_p4, %p2254_p6 }
  0x31   : > { %p2351_p11 = por %p2350_p9, %p2349_p10 }
  0x32   : > { %p2345_p8 = pneg %p2344_p7 }
  0x34   : > { %p2352_p12 = pnand %p2351_p11, %p2345_p8 }
  0x36   : > { %2355 = shalt.err (!%p2352_p12)
}
  0x37   : > { %2130 = dma.hbm_to_vmem [thread:$0]  (!%p2478_p5), %s2833_s10, 16, %s2484_s20, [#allocation9]  }
  0x38   : > { %427 = sbr.rel (%p2470_p3) target bundleno = 2499 (0x9c3), region = 72  ;;  %p2842_p6 = scmp.ne.s32.totalorder (!%p2470_p3), %s2839_s27, 0 }
  0x3d   : > { %2361 = dma.done.wait (%p2842_p6), [#allocation4], 48  }
  0x3e   : > { %2363 = vsyncadd (%p2842_p6), [#allocation4], 4294967248 }
  0x3f   : > { %2365 = dma.done.wait (%p2842_p6), [#allocation6], 32  }
  0x40   : > { %2367 = vsyncadd (%p2842_p6), [#allocation6], 4294967264 }
  0x41   : > { %2369 = dma.done.wait (%p2842_p6), [#allocation9], 16  }
  0x42   : > { %2371 = vsyncadd (%p2842_p6), [#allocation9], 4294967280  ;;  %v2380_v0 = vmov 0   ;;  %v2381_v1 = vmov 0.0   ;;  %s1841_s30 = sshll.u32 %s1828_s26, 1  ;;  %vm2382_vm0 = vmmov 0   ;;  %v534_v27 = vlaneseq }
  0x43   : > { %715 = vmatprep.mubr.bf16.mxu0 %v2380_v0  ;;  %1982 = vmatprep.subr.bf16.mxu1 %v2381_v1  ;;  %v2157_v2 = vld [vmem:[%s2824_s1 + $0xac] ss:$12 sps:$4 sm:$0xff]   ;;  %v2159_v3 = vld [vmem:[%s2824_s1 + $0xa8] ss:$12 sps:$4 sm:$0xff]   ;;  %p484_p3 = scmp.lt.s32.totalorder %s1841_s30, 3  ;;  %vm770_vm1 = vcmask 261120  }
  0x44   : > { %683 = vmatprep.subr.bf16.mxu0 %v2157_v2  ;;  %v2160_v4 = vld [vmem:[%s2824_s1 + $0x94] ss:$12 sps:$4 sm:$0xff]   ;;  %v2162_v5 = vld [vmem:[%s2824_s1 + $0x90] ss:$12 sps:$4 sm:$0xff]   ;;  %v2165_v7 = vld [vmem:[%s2824_s1 + $0x78] ss:$12 sps:$4 sm:$0xff]   ;;  %1998 = vmatprep.mubr.msk.bf16.mxu1 %vm2382_vm0, %v2381_v1 }
  0x45   : > { %684 = vmatpush1.bf16.msra.mxu0 %v2159_v3  ;;  %v2163_v6 = vld [vmem:[%s2824_s1 + $0x7c] ss:$12 sps:$4 sm:$0xff]   ;;  %s2844_s30 = smov (!%p484_p3, %s1841_s30), 3  ;;  %v2166_v8 = vld [vmem:[%s2824_s1 + $0x64] ss:$12 sps:$4 sm:$0xff]   ;;  %v535_v28 = vshrl.u32 %v534_v27, 7 }
  0x46   : > { %685 = vmatprep.subr.bf16.mxu0 %v2160_v4  ;;  %v2168_v9 = vld [vmem:[%s2824_s1 + $0x60] ss:$12 sps:$4 sm:$0xff]   ;;  %s1842_s18 = sshll.u32 %s2844_s30, 2  ;;  %v2182_v10 = vld [vmem:[%s2824_s1 + $0xb0] ss:$12 sps:$4 sm:$0xff]   ;;  %s2383_s22 = smov 64  }
  0x47   : > { %v2169_v11 = vld [vmem:[%s2824_s1 + $0x4c] ss:$12 sps:$4 sm:$0xff]   ;;  %1983 = vmatpush3.bf16.msra.mxu1 %v2182_v10  ;;  %v2171_v13 = vld [vmem:[%s2824_s1 + $0x48] ss:$12 sps:$4 sm:$0xff]   ;;  %v2174_v16 = vld [vmem:[%s2824_s1 + $0x30] ss:$12 sps:$4 sm:$0xff]   ;;  %s487_s24 = scalar_lea.vmem %s2823_s0, %s1842_s18  ;;  %s493_s29 = scalar_lea.vmem %s2836_s13, %s1842_s18 }
  0x48   : > { %v2183_v12 = vld [vmem:[%s2824_s1 + $0x98] ss:$12 sps:$4 sm:$0xff]   ;;  %1984 = vmatprep.subr.bf16.mxu1 %v2381_v1  ;;  %v2172_v14 = vld [vmem:[%s2824_s1 + $0x34] ss:$12 sps:$4 sm:$0xff]   ;;  %v2175_v17 = vld [vmem:[%s2824_s1 + $0x1c] ss:$12 sps:$4 sm:$0xff]  }
  0x49   : > { %686 = vmatpush1.bf16.msra.mxu0 %v2162_v5  ;;  %v2184_v15 = vld [vmem:[%s2824_s1 + $0x80] ss:$12 sps:$4 sm:$0xff]   ;;  %v2185_v18 = vld [vmem:[%s2824_s1 + $0x68] ss:$12 sps:$4 sm:$0xff]   ;;  %v2177_v19 = vld [vmem:[%s2824_s1 + $0x18] ss:$12 sps:$4 sm:$0xff]  }
  0x4a   : > { %687 = vmatprep.subr.bf16.mxu0 %v2163_v6  ;;  %v2178_v20 = vld [vmem:[%s2824_s1 + $0x4] ss:$12 sps:$4 sm:$0xff]   ;;  %v2180_v22 = vld [vmem:[%s2824_s1] ss:$12 sps:$4 sm:$0xff]   ;;  %v2189_v26 = vld [vmem:[%s2824_s1 + $0x8] ss:$12 sps:$4 sm:$0xff]  }
  0x4b   : > { %1985 = vmatpush3.bf16.msra.mxu1 %v2183_v12  ;;  %v2186_v21 = vld [vmem:[%s2824_s1 + $0x50] ss:$12 sps:$4 sm:$0xff]   ;;  %v2623_v23 = vld [vmem:[%s487_s24] sm:$0xff]   ;;  %v540_v29 = vsub.s32 1, %v535_v28  ;;  %v532_v31 = vld [vmem:[#allocation3] sm:$0x7] }
  0x4c   : > { %1986 = vmatprep.subr.bf16.mxu1 %v2381_v1  ;;  %v2187_v24 = vld [vmem:[%s2824_s1 + $0x38] ss:$12 sps:$4 sm:$0xff]   ;;  %v2188_v25 = vld [vmem:[%s2824_s1 + $0x20] ss:$12 sps:$4 sm:$0xff]   ;;  %v536_v33 = vsub.s32 0, %v535_v28  ;;  %s2384_s23 = smov 96  }
  0x4d   : > { %688 = vmatpush1.bf16.msra.mxu0 %v2165_v7  ;;  %v541_v34 = vrot.slane %v532_v31, %v540_v29  ;;  %s2385_s15 = smov 32   ;;  %v544_v45 = vsub.s32 2, %v535_v28  ;;  %vm820_vm2 = vcmask 130048   ;;  %vm896_vm3 = vcmask 257024  }
  0x4e   : > { %689 = vmatprep.subr.bf16.mxu0 %v2166_v8  ;;  %v537_v37 = vrot.slane %v532_v31, %v536_v33  ;;  %vm1037_vm4 = vcmask 519424   ;;  %vm1175_vm5 = vcmask 781824   ;;  %vm1313_vm6 = vcmask 1044224  }
  0x4f   : > { %1987 = vmatpush3.bf16.msra.mxu1 %v2184_v15  ;;  %v545_v46 = vrot.slane %v532_v31, %v544_v45  ;;  %vm1634_vm7 = vcmask 523264  }
  0x50   : > { %1988 = vmatprep.subr.bf16.mxu1 %v2381_v1 }
  0x51   : > { %690 = vmatpush1.bf16.msra.mxu0 %v2168_v9 }
  0x52   : > { %691 = vmatprep.subr.bf16.mxu0 %v2169_v11 }
  0x53   : > { %1989 = vmatpush3.bf16.msra.mxu1 %v2185_v18 }
  0x54   : > { %1990 = vmatprep.subr.bf16.mxu1 %v2381_v1 }
  0x55   : > { %692 = vmatpush1.bf16.msra.mxu0 %v2171_v13 }
  0x56   : > { %693 = vmatprep.subr.bf16.mxu0 %v2172_v14 }
  0x57   : > { %1991 = vmatpush3.bf16.msra.mxu1 %v2186_v21 }
  0x58   : > { %1992 = vmatprep.subr.bf16.mxu1 %v2381_v1 }
  0x59   : > { %694 = vmatpush1.bf16.msra.mxu0 %v2174_v16 }
  0x5a   : > { %695 = vmatprep.subr.bf16.mxu0 %v2175_v17 }
  0x5b   : > { %1993 = vmatpush3.bf16.msra.mxu1 %v2187_v24 }
  0x5c   : > { %1994 = vmatprep.subr.bf16.mxu1 %v2381_v1 }
  0x5d   : > { %696 = vmatpush1.bf16.msra.mxu0 %v2177_v19 }
  0x5e   : > { %697 = vmatprep.subr.bf16.mxu0 %v2178_v20 }
  0x5f   : > { %1995 = vmatpush3.bf16.msra.mxu1 %v2188_v25 }
  0x60   : > { %1996 = vmatprep.subr.bf16.mxu1 %v2381_v1 }
  0x61   : > { %698 = vmatpush1.bf16.msra.mxu0 %v2180_v22 }
  0x62   : > { %2014 = vmatprep.subr.bf16.mxu0 %v2381_v1 }
  0x63   : > { %1997 = vmatpush3.bf16.msra.mxu1 %v2189_v26 }
  0x64   : > { %716 = vmatmul.mubr.bf16.vlgmr.msra.gmra.mxu0 %v2623_v23  ;;  %2002 = vmatprep.subr.bf16.mxu1 %v2381_v1 }
  0x65   : > { %2016 = vmatprep.mubr.msk.bf16.mxu0 %vm2382_vm0, %v2381_v1 }
  0x66   : > { %1999 = vmatmul.mubr.bf16.vlgmr.msra.gmra.mxu1 %v2623_v23 }
  0x67   : > { %2004 = vmatprep.mubr.msk.bf16.mxu1 %vm2382_vm0, %v2381_v1 }
 0x124   : > { %v717_v30 = vpop.f32.mrf.mxu0 }
 0x125   : > { %v718_v42 = vadd.f32 %v717_v30, %v537_v37 }
 0x126   : > { %v719_v32 = vpop.f32.mrf.mxu0  ;;  %v760_v47 = vpop.f32.mrf.mxu1 }
 0x127   : > { %v720_v38 = vadd.f32 %v719_v32, %v541_v34  ;;  %v761_v49 = vadd.f32 %v760_v47, %v545_v46 }
 0x128   : > { %v721_v35 = vpop.f32.mrf.mxu0  ;;  %v2000_v48 = vpop.f32.mrf.mxu1 }
 0x129   : > { %v722_v40 = vadd.f32 %v721_v35, %v537_v37 }
 0x12a   : > { %v723_v36 = vpop.f32.mrf.mxu0  ;;  %v763_v50 = vpop.f32.mrf.mxu1 }
 0x12b   : > { %v724_v39 = vadd.f32 %v723_v36, %v541_v34  ;;  %v767_v44 = vpack.c.bf16 %v722_v40, %v718_v42  ;;  %v764_v51 = vadd.f32 %v763_v50, %v545_v46 }
 0x12c   : > { %v2001_v52 = vpop.f32.mrf.mxu1 }
 0x12d   : > { %v768_v41 = vpack.c.bf16 %v724_v39, %v720_v38  ;;  %v2659_v53 = vpack.c.bf16 %v764_v51, %v761_v49 }
 0x12f   : > { %1042 = vrot.lane.b32.xlu1 %v768_v41, %s2383_s22  ;;  %903 = vrot.lane.b32.xlu0 %v768_v41, %s2384_s23  ;;  %v775_v43 = vsel %vm770_vm1, %v768_v41, 0 }
 0x130   : > { %2003 = vmatpush3.bf16.xpose.msra.mxu1 %v775_v43 }
 0x131   : > { %2008 = vmatprep.subr.bf16.mxu1 %v2381_v1 }
 0x133   : > { %1040 = vrot.lane.b32.xlu1 %v767_v44, %s2383_s22  ;;  %900 = vrot.lane.b32.xlu0 %v767_v44, %s2384_s23 }
 0x137   : > { %1178 = vrot.lane.b32.xlu1 %v767_v44, %s2385_s15  ;;  %1180 = vrot.lane.b32.xlu0 %v768_v41, %s2385_s15 }
 0x138   : > { %2005 = vmatmul.mubr.msk.bf16.vlgmr.msra.gmra.mxu1 %vm770_vm1, %v767_v44 }
 0x139   : > { %2010 = vmatprep.mubr.msk.bf16.mxu1 %vm2382_vm0, %v2381_v1  ;;  %2009 = vmatpush3.bf16.msra.mxu1 %v2659_v53 }
 0x13a   : > { %2020 = vmatprep.subr.bf16.mxu1 %v2381_v1 }
 0x1a1   : > { %v904_v54 = vpop.permute.xlu0 %903  ;;  %v1043_v56 = vpop.permute.xlu1 %1042 }
 0x1a2   : > { %v909_v55 = vsel %vm770_vm1, %v904_v54, 0  ;;  %v1048_v58 = vsel %vm770_vm1, %v1043_v56, 0 }
 0x1a3   : > { %2015 = vmatpush3.bf16.xpose.msra.mxu0 %v909_v55 }
 0x1a4   : > { %2026 = vmatprep.subr.bf16.mxu0 %v2381_v1 }
 0x1a5   : > { %v901_v57 = vpop.permute.xlu0 %900  ;;  %v1041_v60 = vpop.permute.xlu1 %1040 }
 0x1a9   : > { %v1181_v59 = vpop.permute.xlu0 %1180  ;;  %v1179_v62 = vpop.permute.xlu1 %1178 }
 0x1aa   : > { %2017 = vmatmul.mubr.msk.bf16.vlgmr.msra.gmra.mxu0 %vm770_vm1, %v901_v57  ;;  %v1186_v61 = vsel %vm770_vm1, %v1181_v59, 0 }
 0x1ab   : > { %2027 = vmatpush3.bf16.xpose.msra.mxu0 %v1048_v58  ;;  %2028 = vmatprep.mubr.msk.bf16.mxu0 %vm2382_vm0, %v2381_v1 }
 0x1ac   : > { %2038 = vmatprep.subr.bf16.mxu0 %v2381_v1 }
 0x1b2   : > { %2029 = vmatmul.mubr.msk.bf16.vlgmr.msra.gmra.mxu0 %vm770_vm1, %v1041_v60 }
 0x1b3   : > { %2039 = vmatpush3.bf16.xpose.msra.mxu0 %v1186_v61  ;;  %2040 = vmatprep.mubr.msk.bf16.mxu0 %vm2382_vm0, %v2381_v1 }
 0x1b4   : > { %2050 = vmatprep.subr.bf16.mxu0 %v2381_v1 }
 0x1ba   : > { %2041 = vmatmul.mubr.msk.bf16.vlgmr.msra.gmra.mxu0 %vm770_vm1, %v1179_v62 }
 0x1bb   : > { %2066 = vmatprep.mubr.msk.bf16.mxu0 %vm2382_vm0, %v2381_v1 }
 0x1f8   : > { %v811_v63 = vpop.f32.mrf.mxu1 }
 0x1f9   : > { %v818_v0 = vmul.f32 0.17677669, %v811_v63 }
 0x1fa   : > { %v2006_v2 = vpop.f32.mrf.mxu1 }
 0x1fb   : > { %v821_v3 = vsel %vm820_vm2, %v818_v0, -inf }
 0x1fc   : > { %822 = vmax.xlane.f32.xlu0 %v821_v3  ;;  %v814_v4 = vpop.f32.mrf.mxu1 }
 0x1fd   : > { %v819_v5 = vmul.f32 0.17677669, %v814_v4 }
 0x1fe   : > { %v2007_v6 = vpop.f32.mrf.mxu1 }
 0x1ff   : > { %v824_v7 = vsel %vm820_vm2, %v819_v5, -inf }
 0x200   : > { %825 = vmax.xlane.f32.xlu1 %v824_v7 }
 0x26a   : > { %v945_v8 = vpop.f32.mrf.mxu0 }
 0x26b   : > { %v952_v9 = vmul.f32 0.17677669, %v945_v8 }
 0x26c   : > { %v2018_v10 = vpop.f32.mrf.mxu0 }
 0x26d   : > { %v954_v11 = vsel %vm820_vm2, %v952_v9, -inf }
 0x26e   : > { %v948_v12 = vpop.f32.mrf.mxu0  ;;  %955 = vmax.xlane.f32.xlu0 %v954_v11 }
 0x26f   : > { %v953_v13 = vmul.f32 0.17677669, %v948_v12 }
 0x270   : > { %v2019_v14 = vpop.f32.mrf.mxu0 }
 0x271   : > { %v957_v15 = vsel %vm820_vm2, %v953_v13, -inf }
 0x272   : > { %v1084_v16 = vpop.f32.mrf.mxu0  ;;  %958 = vmax.xlane.f32.xlu0 %v957_v15 }
 0x273   : > { %v1091_v17 = vmul.f32 0.17677669, %v1084_v16 }
 0x274   : > { %v2030_v18 = vpop.f32.mrf.mxu0 }
 0x275   : > { %v1093_v19 = vsel %vm820_vm2, %v1091_v17, -inf }
 0x276   : > { %v1087_v20 = vpop.f32.mrf.mxu0  ;;  %1094 = vmax.xlane.f32.xlu1 %v1093_v19 }
 0x277   : > { %v1092_v21 = vmul.f32 0.17677669, %v1087_v20 }
 0x278   : > { %v2031_v22 = vpop.f32.mrf.mxu0 }
 0x279   : > { %v1096_v24 = vsel %vm820_vm2, %v1092_v21, -inf }
 0x27a   : > { %v1222_v25 = vpop.f32.mrf.mxu0  ;;  %1097 = vmax.xlane.f32.xlu0 %v1096_v24 }
 0x27b   : > { %v1229_v26 = vmul.f32 0.17677669, %v1222_v25 }
 0x27c   : > { %v2042_v27 = vpop.f32.mrf.mxu0 }
 0x27d   : > { %v1231_v28 = vsel %vm820_vm2, %v1229_v26, -inf }
 0x27e   : > { %v1225_v29 = vpop.f32.mrf.mxu0  ;;  %1232 = vmax.xlane.f32.xlu1 %v1231_v28 }
 0x27f   : > { %v1230_v30 = vmul.f32 0.17677669, %v1225_v29 }
 0x280   : > { %v2043_v31 = vpop.f32.mrf.mxu0 }
 0x281   : > { %v1234_v32 = vsel %vm820_vm2, %v1230_v30, -inf }
 0x282   : > { %1235 = vmax.xlane.f32.xlu0 %v1234_v32 }
 0x285   : > { %v823_v33 = vpop.xlane.xlu0 %822 }
 0x286   : > { %v827_v34 = vsub.f32 %v818_v0, %v823_v33 }
 0x288   : > { %v829_v35 = vmul.f32 1.442695, %v827_v34 }
 0x289   : > { %v826_v36 = vpop.xlane.xlu1 %825 }
 0x28a   : > { %2212 = vpow2.f32 %v829_v35  ;;  %v828_v37 = vsub.f32 %v819_v5, %v826_v36 }
 0x28c   : > { %v831_v38 = vmul.f32 1.442695, %v828_v37 }
 0x28e   : > { %2214 = vpow2.f32 %v831_v38 }
 0x297   : > { %v2213_v39 = vpop.eup %2212 }
 0x298   : > { %v833_v40 = vsel %vm820_vm2, %v2213_v39, 0.0 }
 0x299   : > { %834 = vadd.xlane.f32.xlu1 %v833_v40 }
 0x29b   : > { %v2215_v41 = vpop.eup %2214 }
 0x29c   : > { %v836_v42 = vsel %vm820_vm2, %v2215_v41, 0.0 }
 0x29d   : > { %837 = vadd.xlane.f32.xlu0 %v836_v42 }
 0x2aa   : > { %978 = vrot.lane.b32.xlu1 %v2659_v53, %s2384_s23 }
 0x2f7   : > { %v956_v43 = vpop.xlane.xlu0 %955 }
 0x2f8   : > { %v960_v44 = vsub.f32 %v952_v9, %v956_v43 }
 0x2fa   : > { %v962_v45 = vmul.f32 1.442695, %v960_v44 }
 0x2fb   : > { %v959_v46 = vpop.xlane.xlu0 %958 }
 0x2fc   : > { %2216 = vpow2.f32 %v962_v45  ;;  %v961_v47 = vsub.f32 %v953_v13, %v959_v46 }
 0x2fe   : > { %v964_v48 = vmul.f32 1.442695, %v961_v47 }
 0x2ff   : > { %v1095_v49 = vpop.xlane.xlu1 %1094 }
 0x300   : > { %2218 = vpow2.f32 %v964_v48  ;;  %v1099_v50 = vsub.f32 %v1091_v17, %v1095_v49  ;;  %v2190_v48 = vld [vmem:[%s2826_s3 + $0x38] sm:$0xff]   ;;  %v2191_v49 = vld [vmem:[%s2826_s3 + $0x30] sm:$0xff]  }
 0x301   : > { %2051 = vmatpush3.bf16.msra.mxu0 %v2190_v48 }
 0x302   : > { %v1101_v51 = vmul.f32 1.442695, %v1099_v50  ;;  %2052 = vmatprep.subr.bf16.mxu0 %v2381_v1  ;;  %v2192_v50 = vld [vmem:[%s2826_s3 + $0x28] sm:$0xff]  }
 0x303   : > { %v1098_v52 = vpop.xlane.xlu0 %1097 }
 0x304   : > { %2220 = vpow2.f32 %v1101_v51  ;;  %v1100_v54 = vsub.f32 %v1092_v21, %v1098_v52  ;;  %v2193_v51 = vld [vmem:[%s2826_s3 + $0x20] sm:$0xff]  }
 0x305   : > { %2053 = vmatpush3.bf16.msra.mxu0 %v2191_v49 }
 0x306   : > { %v1103_v55 = vmul.f32 1.442695, %v1100_v54  ;;  %2054 = vmatprep.subr.bf16.mxu0 %v2381_v1 }
 0x307   : > { %v1233_v56 = vpop.xlane.xlu1 %1232 }
 0x308   : > { %2222 = vpow2.f32 %v1103_v55  ;;  %v1237_v57 = vsub.f32 %v1229_v26, %v1233_v56  ;;  %v2194_v56 = vld [vmem:[%s2826_s3 + $0x18] sm:$0xff]  }
 0x309   : > { %v2217_v58 = vpop.eup %2216  ;;  %2055 = vmatpush3.bf16.msra.mxu0 %v2192_v50 }
 0x30a   : > { %v1239_v59 = vmul.f32 1.442695, %v1237_v57  ;;  %v966_v60 = vsel %vm820_vm2, %v2217_v58, 0.0  ;;  %2056 = vmatprep.subr.bf16.mxu0 %v2381_v1 }
 0x30b   : > { %v1236_v61 = vpop.xlane.xlu0 %1235  ;;  %967 = vadd.xlane.f32.xlu1 %v966_v60  ;;  %v2195_v60 = vld [vmem:[%s2826_s3 + $0x10] sm:$0xff]  }
 0x30c   : > { %2224 = vpow2.f32 %v1239_v59  ;;  %v1238_v62 = vsub.f32 %v1230_v30, %v1236_v61 }
 0x30d   : > { %v2219_v63 = vpop.eup %2218  ;;  %2057 = vmatpush3.bf16.msra.mxu0 %v2193_v51 }
 0x30e   : > { %v1241_v0 = vmul.f32 1.442695, %v1238_v62  ;;  %v969_v2 = vsel %vm820_vm2, %v2219_v63, 0.0  ;;  %2058 = vmatprep.subr.bf16.mxu0 %v2381_v1 }
 0x30f   : > { %970 = vadd.xlane.f32.xlu0 %v969_v2 }
 0x310   : > { %2226 = vpow2.f32 %v1241_v0  ;;  %v2196_v0 = vld [vmem:[%s2826_s3 + $0x8] sm:$0xff]  }
 0x311   : > { %v2221_v3 = vpop.eup %2220  ;;  %2059 = vmatpush3.bf16.msra.mxu0 %v2194_v56 }
 0x312   : > { %v1105_v4 = vsel %vm820_vm2, %v2221_v3, 0.0  ;;  %2060 = vmatprep.subr.bf16.mxu0 %v2381_v1 }
 0x313   : > { %1106 = vadd.xlane.f32.xlu1 %v1105_v4 }
 0x315   : > { %v2223_v5 = vpop.eup %2222  ;;  %2061 = vmatpush3.bf16.msra.mxu0 %v2195_v60 }
 0x316   : > { %v1108_v6 = vsel %vm820_vm2, %v2223_v5, 0.0  ;;  %2062 = vmatprep.subr.bf16.mxu0 %v2381_v1 }
 0x317   : > { %1109 = vadd.xlane.f32.xlu0 %v1108_v6 }
 0x319   : > { %v2225_v7 = vpop.eup %2224  ;;  %2063 = vmatpush3.bf16.msra.mxu0 %v2196_v0  ;;  %v2208_v0 = vld [vmem:[%s2832_s9 + $0x10] sm:$0xff]  }
 0x31a   : > { %v1243_v8 = vsel %vm820_vm2, %v2225_v7, 0.0  ;;  %2064 = vmatprep.subr.bf16.mxu0 %v2381_v1 }
 0x31b   : > { %1244 = vadd.xlane.f32.xlu1 %v1243_v8 }
 0x31d   : > { %v2227_v9 = vpop.eup %2226 }
 0x31e   : > { %v1246_v10 = vsel %vm820_vm2, %v2227_v9, 0.0 }
 0x31f   : > { %1247 = vadd.xlane.f32.xlu0 %v1246_v10 }
 0x322   : > { %v835_v11 = vpop.xlane.xlu1 %834 }
 0x323   : > { %2228 = vrcp.f32 %v835_v11 }
 0x326   : > { %v838_v12 = vpop.xlane.xlu0 %837  ;;  %v979_v18 = vpop.permute.xlu1 %978 }
 0x327   : > { %2230 = vrcp.f32 %v838_v12 }
 0x32c   : > { %1254 = vrot.lane.b32.xlu1 %v2659_v53, %s2385_s15 }
 0x330   : > { %v2229_v13 = vpop.eup %2228 }
 0x331   : > { %v841_v15 = vmul.f32 %v2229_v13, %v2213_v39 }
 0x334   : > { %v2231_v14 = vpop.eup %2230 }
 0x335   : > { %1116 = vrot.lane.b32.xlu0 %v2659_v53, %s2383_s22  ;;  %v842_v16 = vmul.f32 %v2231_v14, %v2215_v41 }
 0x337   : > { %v843_v17 = vpack.c.bf16 %v842_v16, %v841_v15 }
 0x339   : > { %2011 = vmatmul.mubr.msk.bf16.vlgmr.msra.gmra.mxu1 %vm820_vm2, %v843_v17 }
 0x33a   : > { %2021 = vmatpush3.bf16.msra.mxu1 %v979_v18  ;;  %2022 = vmatprep.mubr.msk.bf16.mxu1 %vm2382_vm0, %v2381_v1 }
 0x33b   : > { %2032 = vmatprep.subr.bf16.mxu1 %v2381_v1 }
 0x394   : > { %v968_v19 = vpop.xlane.xlu1 %967 }
 0x395   : > { %2232 = vrcp.f32 %v968_v19  ;;  %v1886_v19 = vld [vmem:[%s2827_s4] ss:$0 sm:$0xff] }
 0x398   : > { %v971_v20 = vpop.xlane.xlu0 %970 }
 0x399   : > { %2234 = vrcp.f32 %v971_v20  ;;  %v498_v20 = vunpack.c.l.bf16 %v2623_v23 }
 0x39c   : > { %v1107_v21 = vpop.xlane.xlu1 %1106 }
 0x39d   : > { %2236 = vrcp.f32 %v1107_v21 }
 0x3a0   : > { %v1110_v22 = vpop.xlane.xlu0 %1109 }
 0x3a1   : > { %2238 = vrcp.f32 %v1110_v22 }
 0x3a2   : > { %v2233_v53 = vpop.eup %2232 }
 0x3a3   : > { %v974_v26 = vmul.f32 %v2233_v53, %v2217_v58 }
 0x3a4   : > { %v1245_v24 = vpop.xlane.xlu1 %1244 }
 0x3a5   : > { %2240 = vrcp.f32 %v1245_v24 }
 0x3a6   : > { %v2235_v25 = vpop.eup %2234 }
 0x3a7   : > { %v975_v27 = vmul.f32 %v2235_v25, %v2219_v63  ;;  %v499_v25 = vunpack.c.h.bf16 %v2623_v23 }
 0x3a8   : > { %v1248_v28 = vpop.xlane.xlu0 %1247  ;;  %v1255_v36 = vpop.permute.xlu1 %1254 }
 0x3a9   : > { %2242 = vrcp.f32 %v1248_v28  ;;  %v976_v29 = vpack.c.bf16 %v975_v27, %v974_v26 }
 0x3aa   : > { %v2237_v30 = vpop.eup %2236 }
 0x3ab   : > { %2023 = vmatmul.mubr.msk.bf16.vlgmr.msra.gmra.mxu1 %vm820_vm2, %v976_v29  ;;  %v1113_v33 = vmul.f32 %v2237_v30, %v2221_v3  ;;  %v2197_v3 = vld [vmem:[%s2826_s3] sm:$0xff]   ;;  %v2199_v30 = vld [vmem:[%s2830_s7 + $0x38] sm:$0xff]  }
 0x3ac   : > { %v1117_v31 = vpop.permute.xlu0 %1116  ;;  %2034 = vmatprep.mubr.msk.bf16.mxu1 %vm2382_vm0, %v2381_v1  ;;  %2065 = vmatpush3.bf16.msra.mxu0 %v2197_v3  ;;  %v2210_v3 = vld [vmem:[%s2832_s9] sm:$0xff]  }
 0x3ad   : > { %2033 = vmatpush3.bf16.msra.mxu1 %v1117_v31  ;;  %2090 = vmatprep.subr.bf16.mxu0 %v2381_v1 }
 0x3ae   : > { %v2239_v32 = vpop.eup %2238  ;;  %2044 = vmatprep.subr.bf16.mxu1 %v2381_v1 }
 0x3af   : > { %v1114_v34 = vmul.f32 %v2239_v32, %v2223_v5 }
 0x3b1   : > { %v1115_v35 = vpack.c.bf16 %v1114_v34, %v1113_v33 }
 0x3b2   : > { %v2241_v37 = vpop.eup %2240 }
 0x3b3   : > { %2035 = vmatmul.mubr.msk.bf16.vlgmr.msra.gmra.mxu1 %vm820_vm2, %v1115_v35  ;;  %v1251_v39 = vmul.f32 %v2241_v37, %v2225_v7 }
 0x3b4   : > { %2045 = vmatpush3.bf16.msra.mxu1 %v1255_v36  ;;  %2046 = vmatprep.mubr.msk.bf16.mxu1 %vm2382_vm0, %v2381_v1 }
 0x3b5   : > { %2070 = vmatprep.subr.bf16.mxu1 %v2381_v1 }
 0x3b6   : > { %v2243_v38 = vpop.eup %2242 }
 0x3b7   : > { %v1252_v40 = vmul.f32 %v2243_v38, %v2227_v9  ;;  %v2200_v38 = vld [vmem:[%s2830_s7 + $0x30] sm:$0xff]  }
 0x3b9   : > { %v1253_v41 = vpack.c.bf16 %v1252_v40, %v1251_v39  ;;  %v2201_v39 = vld [vmem:[%s2830_s7 + $0x28] sm:$0xff]   ;;  %v2202_v40 = vld [vmem:[%s2830_s7 + $0x20] sm:$0xff]  }
 0x3bb   : > { %2047 = vmatmul.mubr.msk.bf16.vlgmr.msra.gmra.mxu1 %vm820_vm2, %v1253_v41  ;;  %v2203_v41 = vld [vmem:[%s2830_s7 + $0x18] sm:$0xff]  }
 0x3bc   : > { %2086 = vmatprep.mubr.msk.bf16.mxu1 %vm2382_vm0, %v2381_v1  ;;  %2071 = vmatpush3.bf16.msra.mxu1 %v2199_v30 }
 0x3bd   : > { %2072 = vmatprep.subr.bf16.mxu1 %v2381_v1 }
 0x3c0   : > { %2073 = vmatpush3.bf16.msra.mxu1 %v2200_v38 }
 0x3c1   : > { %2074 = vmatprep.subr.bf16.mxu1 %v2381_v1 }
 0x3c4   : > { %2075 = vmatpush3.bf16.msra.mxu1 %v2201_v39 }
 0x3c5   : > { %2076 = vmatprep.subr.bf16.mxu1 %v2381_v1 }
 0x3c8   : > { %2077 = vmatpush3.bf16.msra.mxu1 %v2202_v40 }
 0x3c9   : > { %2078 = vmatprep.subr.bf16.mxu1 %v2381_v1 }
 0x3cc   : > { %2079 = vmatpush3.bf16.msra.mxu1 %v2203_v41  ;;  %v1914_v41 = vld [vmem:[%s2835_s12] ss:$0 sm:$0xff] }
 0x3cd   : > { %2080 = vmatprep.subr.bf16.mxu1 %v2381_v1 }
 0x3f9   : > { %v881_v42 = vpop.f32.mrf.mxu1 }
 0x3fa   : > { %v1919_v43 = vpack.c.bf16 %v881_v42, %v881_v42  ;;  %v2204_v42 = vld [vmem:[%s2830_s7 + $0x10] sm:$0xff]  }
 0x3fb   : > { %v2012_v44 = vpop.f32.mrf.mxu1  ;;  %2081 = vmatpush3.bf16.msra.mxu1 %v2204_v42 }
 0x3fc   : > { %897 = vst.msk [vmem:[#allocation2] sm:$0xf] %vm896_vm3, %v1919_v43  ;;  %v2205_v43 = vld [vmem:[%s2830_s7 + $0x8] sm:$0xff]   ;;  %2082 = vmatprep.subr.bf16.mxu1 %v2381_v1  ;;  %v2206_v44 = vld [vmem:[%s2830_s7] sm:$0xff]  }
 0x3fd   : > { %v884_v45 = vpop.f32.mrf.mxu1 }
 0x3fe   : > { %v1920_v46 = vpack.c.bf16 %v884_v45, %v884_v45  ;;  %v2207_v45 = vld [vmem:[%s2832_s9 + $0x18] sm:$0xff]  }
 0x3ff   : > { %v2013_v47 = vpop.f32.mrf.mxu1  ;;  %2083 = vmatpush3.bf16.msra.mxu1 %v2205_v43 }
 0x400   : > { %898 = vst.msk [vmem:[#allocation2 + $0x4] sm:$0xf] %vm896_vm3, %v1920_v46  ;;  %2084 = vmatprep.subr.bf16.mxu1 %v2381_v1 }
 0x403   : > { %2085 = vmatpush3.bf16.msra.mxu1 %v2206_v44 }
 0x46b   : > { %v1018_v52 = vpop.f32.mrf.mxu1 }
 0x46c   : > { %v1921_v54 = vpack.c.bf16 %v1018_v52, %v1018_v52 }
 0x46d   : > { %v2024_v55 = vpop.f32.mrf.mxu1 }
 0x46e   : > { %1031 = vrot.lane.b32.xlu1 %v1921_v54, %s2385_s15  ;;  %v1896_v55 = vld [vmem:[%s2828_s5] ss:$0 sm:$0xff] }
 0x46f   : > { %v1021_v57 = vpop.f32.mrf.mxu1 }
 0x470   : > { %v1922_v58 = vpack.c.bf16 %v1021_v57, %v1021_v57 }
 0x471   : > { %v2025_v59 = vpop.f32.mrf.mxu1 }
 0x472   : > { %1033 = vrot.lane.b32.xlu0 %v1922_v58, %s2385_s15  ;;  %v1897_v59 = vld [vmem:[#allocation5] ss:$0 sm:$0xff] }
 0x473   : > { %v1156_v61 = vpop.f32.mrf.mxu1 }
 0x474   : > { %v1923_v62 = vpack.c.bf16 %v1156_v61, %v1156_v61 }
 0x475   : > { %v2036_v63 = vpop.f32.mrf.mxu1 }
 0x476   : > { %1169 = vrot.lane.b32.xlu1 %v1923_v62, %s2383_s22 }
 0x477   : > { %v1159_v2 = vpop.f32.mrf.mxu1 }
 0x478   : > { %v1924_v4 = vpack.c.bf16 %v1159_v2, %v1159_v2  ;;  %v2209_v2 = vld [vmem:[%s2832_s9 + $0x8] sm:$0xff]  }
 0x479   : > { %v2037_v5 = vpop.f32.mrf.mxu1 }
 0x47a   : > { %1171 = vrot.lane.b32.xlu0 %v1924_v4, %s2383_s22  ;;  %v1898_v4 = vld [vmem:[#allocation7] ss:$0 sm:$0xff] }
 0x47b   : > { %v1294_v6 = vpop.f32.mrf.mxu1 }
 0x47c   : > { %v1925_v7 = vpack.c.bf16 %v1294_v6, %v1294_v6 }
 0x47d   : > { %v2048_v8 = vpop.f32.mrf.mxu1 }
 0x47e   : > { %1307 = vrot.lane.b32.xlu1 %v1925_v7, %s2384_s23 }
 0x47f   : > { %v1297_v9 = vpop.f32.mrf.mxu1 }
 0x480   : > { %v1926_v10 = vpack.c.bf16 %v1297_v9, %v1297_v9 }
 0x481   : > { %v2049_v11 = vpop.f32.mrf.mxu1 }
 0x482   : > { %1309 = vrot.lane.b32.xlu0 %v1926_v10, %s2384_s23 }
 0x4e0   : > { %v1032_v12 = vpop.permute.xlu1 %1031 }
 0x4e1   : > { %1038 = vst.msk [vmem:[#allocation2] sm:$0xf] %vm1037_vm4, %v1032_v12 }
 0x4e4   : > { %v1034_v13 = vpop.permute.xlu0 %1033 }
 0x4e5   : > { %1039 = vst.msk [vmem:[#allocation2 + $0x4] sm:$0xf] %vm1037_vm4, %v1034_v13 }
 0x4e8   : > { %v1170_v14 = vpop.permute.xlu1 %1169 }
 0x4e9   : > { %1176 = vst.msk [vmem:[#allocation2] sm:$0xf] %vm1175_vm5, %v1170_v14  ;;  %v1907_v14 = vld [vmem:[#allocation8] ss:$0 sm:$0xff] }
 0x4ec   : > { %v1172_v15 = vpop.permute.xlu0 %1171 }
 0x4ed   : > { %1177 = vst.msk [vmem:[#allocation2 + $0x4] sm:$0xf] %vm1175_vm5, %v1172_v15 }
 0x4f0   : > { %v1308_v16 = vpop.permute.xlu1 %1307 }
 0x4f1   : > { %1314 = vst.msk [vmem:[#allocation2] sm:$0xf] %vm1313_vm6, %v1308_v16 }
 0x4f4   : > { %v1310_v17 = vpop.permute.xlu0 %1309 }
 0x4f5   : > { %1315 = vst.msk [vmem:[#allocation2 + $0x4] sm:$0xf] %vm1313_vm6, %v1310_v17 }
 0x4fc   : > { %v2198_v18 = vld [vmem:[#allocation2] sm:$0xff]  }
 0x4fd   : > { %2067 = vmatmul.mubr.bf16.vlgmr.msra.gmra.mxu0 %v2198_v18 }
 0x4fe   : > { %2098 = vmatprep.mubr.msk.bf16.mxu0 %vm2382_vm0, %v2381_v1  ;;  %2091 = vmatpush3.bf16.msra.mxu0 %v2207_v45 }
 0x4ff   : > { %2092 = vmatprep.subr.bf16.mxu0 %v2381_v1 }
 0x502   : > { %2093 = vmatpush3.bf16.msra.mxu0 %v2208_v0 }
 0x503   : > { %2094 = vmatprep.subr.bf16.mxu0 %v2381_v1 }
 0x506   : > { %2095 = vmatpush3.bf16.msra.mxu0 %v2209_v2 }
 0x507   : > { %2096 = vmatprep.subr.bf16.mxu0 %v2381_v1 }
 0x50a   : > { %2097 = vmatpush3.bf16.msra.mxu0 %v2210_v3 }
 0x5bd   : > { %v1429_v21 = vpop.f32.mrf.mxu0 }
 0x5be   : > { %v1430_v22 = vadd.f32 %v1886_v19, %v1429_v21 }
 0x5bf   : > { %v2068_v53 = vpop.f32.mrf.mxu0 }
 0x5c0   : > { %v1436_v24 = vadd.f32 %v1430_v22, %v498_v20 }
 0x5c1   : > { %v1432_v26 = vpop.f32.mrf.mxu0 }
 0x5c2   : > { %v1433_v27 = vadd.f32 %v1886_v19, %v1432_v26  ;;  %1438 = vadd.xlane.f32.xlu1 %v1436_v24 }
 0x5c3   : > { %v2069_v28 = vpop.f32.mrf.mxu0 }
 0x5c4   : > { %v1437_v29 = vadd.f32 %v1433_v27, %v499_v25 }
 0x5c6   : > { %1440 = vadd.xlane.f32.xlu0 %v1437_v29 }
 0x64b   : > { %v1439_v31 = vpop.xlane.xlu1 %1438 }
 0x64c   : > { %v1443_v32 = vmul.f32 0.0078125, %v1439_v31 }
 0x64e   : > { %v1445_v33 = vsub.f32 %v1436_v24, %v1443_v32 }
 0x64f   : > { %v1441_v34 = vpop.xlane.xlu0 %1440 }
 0x650   : > { %v1444_v35 = vmul.f32 0.0078125, %v1441_v34  ;;  %v1447_v36 = vmul.f32 %v1445_v33, %v1445_v33 }
 0x652   : > { %v1446_v23 = vsub.f32 %v1437_v29, %v1444_v35  ;;  %1449 = vadd.xlane.f32.xlu0 %v1447_v36 }
 0x654   : > { %v1448_v37 = vmul.f32 %v1446_v23, %v1446_v23 }
 0x656   : > { %1451 = vadd.xlane.f32.xlu1 %v1448_v37  ;;  %v1913_v37 = vld [vmem:[%s2834_s11] ss:$0 sm:$0xff] }
 0x6db   : > { %v1450_v46 = vpop.xlane.xlu0 %1449 }
 0x6dc   : > { %v1453_v47 = vmul.f32 0.0078125, %v1450_v46 }
 0x6de   : > { %v1455_v48 = vadd.f32 1e-05, %v1453_v47 }
 0x6df   : > { %v1452_v49 = vpop.xlane.xlu1 %1451 }
 0x6e0   : > { %2244 = vrsqrt.f32 %v1455_v48  ;;  %v1454_v50 = vmul.f32 0.0078125, %v1452_v49 }
 0x6e2   : > { %v1456_v51 = vadd.f32 1e-05, %v1454_v50 }
 0x6e4   : > { %2246 = vrsqrt.f32 %v1456_v51 }
 0x6ed   : > { %v2245_v52 = vpop.eup %2244 }
 0x6ee   : > { %v1459_v54 = vmul.f32 %v2245_v52, %v1445_v33 }
 0x6f0   : > { %v1468_v58 = vmul.f32 %v1896_v55, %v1459_v54 }
 0x6f1   : > { %v2247_v56 = vpop.eup %2246 }
 0x6f2   : > { %v1460_v57 = vmul.f32 %v2247_v56, %v1446_v23  ;;  %v1477_v61 = vadd.f32 %v1897_v59, %v1468_v58 }
 0x6f4   : > { %v1469_v60 = vmul.f32 %v1896_v55, %v1460_v57 }
 0x6f6   : > { %v1478_v62 = vadd.f32 %v1897_v59, %v1469_v60 }
 0x6f8   : > { %v1479_v63 = vpack.c.bf16 %v1478_v62, %v1477_v61 }
 0x6fa   : > { %2087 = vmatmul.mubr.bf16.vlgmr.msra.gmra.mxu1 %v1479_v63 }
 0x7ba   : > { %v1585_v5 = vpop.f32.mrf.mxu1 }
 0x7bb   : > { %v1586_v7 = vadd.f32 %v1898_v4, %v1585_v5 }
 0x7bc   : > { %v2088_v6 = vpop.f32.mrf.mxu1 }
 0x7bd   : > { %v1592_v11 = vmax.f32 %v1586_v7, 0.0 }
 0x7be   : > { %v1588_v8 = vpop.f32.mrf.mxu1 }
 0x7bf   : > { %v1589_v9 = vadd.f32 %v1898_v4, %v1588_v8 }
 0x7c0   : > { %v2089_v10 = vpop.f32.mrf.mxu1 }
 0x7c1   : > { %v1593_v12 = vmax.f32 %v1589_v9, 0.0 }
 0x7c3   : > { %v1594_v13 = vpack.c.bf16 %v1593_v12, %v1592_v11 }
 0x7c5   : > { %2099 = vmatmul.mubr.msk.bf16.vlgmr.msra.gmra.mxu0 %vm1634_vm7, %v1594_v13 }
 0x885   : > { %v1672_v15 = vpop.f32.mrf.mxu0 }
 0x886   : > { %v1673_v1 = vadd.f32 %v1907_v14, %v1672_v15 }
 0x887   : > { %v2100_v16 = vpop.f32.mrf.mxu0 }
 0x888   : > { %v1679_v17 = vadd.f32 %v1673_v1, %v1477_v61 }
 0x889   : > { %v1675_v18 = vpop.f32.mrf.mxu0 }
 0x88a   : > { %v1676_v19 = vadd.f32 %v1907_v14, %v1675_v18  ;;  %1681 = vadd.xlane.f32.xlu0 %v1679_v17 }
 0x88b   : > { %v2101_v20 = vpop.f32.mrf.mxu0 }
 0x88c   : > { %v1680_v21 = vadd.f32 %v1676_v19, %v1478_v62 }
 0x88e   : > { %1683 = vadd.xlane.f32.xlu1 %v1680_v21 }
 0x913   : > { %v1682_v22 = vpop.xlane.xlu0 %1681 }
 0x914   : > { %v1685_v53 = vmul.f32 0.0078125, %v1682_v22 }
 0x916   : > { %v1687_v24 = vsub.f32 %v1679_v17, %v1685_v53 }
 0x917   : > { %v1684_v25 = vpop.xlane.xlu1 %1683 }
 0x918   : > { %v1686_v26 = vmul.f32 0.0078125, %v1684_v25  ;;  %v1689_v27 = vmul.f32 %v1687_v24, %v1687_v24 }
 0x91a   : > { %v1688_v28 = vsub.f32 %v1680_v21, %v1686_v26  ;;  %1691 = vadd.xlane.f32.xlu0 %v1689_v27 }
 0x91c   : > { %v1690_v29 = vmul.f32 %v1688_v28, %v1688_v28 }
 0x91e   : > { %1693 = vadd.xlane.f32.xlu1 %v1690_v29 }
 0x9a3   : > { %v1692_v30 = vpop.xlane.xlu0 %1691 }
 0x9a4   : > { %v1695_v31 = vmul.f32 0.0078125, %v1692_v30 }
 0x9a6   : > { %v1697_v32 = vadd.f32 1e-05, %v1695_v31 }
 0x9a7   : > { %v1694_v33 = vpop.xlane.xlu1 %1693 }
 0x9a8   : > { %2248 = vrsqrt.f32 %v1697_v32  ;;  %v1696_v34 = vmul.f32 0.0078125, %v1694_v33 }
 0x9aa   : > { %v1698_v35 = vadd.f32 1e-05, %v1696_v34 }
 0x9ac   : > { %2250 = vrsqrt.f32 %v1698_v35 }
 0x9b5   : > { %v2249_v36 = vpop.eup %2248 }
 0x9b6   : > { %v1701_v23 = vmul.f32 %v2249_v36, %v1687_v24 }
 0x9b8   : > { %v1710_v39 = vmul.f32 %v1913_v37, %v1701_v23 }
 0x9b9   : > { %v2251_v38 = vpop.eup %2250 }
 0x9ba   : > { %v1702_v40 = vmul.f32 %v2251_v38, %v1688_v28  ;;  %v1719_v43 = vadd.f32 %v1914_v41, %v1710_v39 }
 0x9bc   : > { %v1711_v42 = vmul.f32 %v1913_v37, %v1702_v40 }
 0x9be   : > { %v1720_v44 = vadd.f32 %v1914_v41, %v1711_v42 }
 0x9c0   : > { %v1932_v45 = vpack.c.bf16 %v1720_v44, %v1719_v43 }
 0x9c2   : > { %1933 = vst [vmem:[%s493_s29] sm:$0xff] %v1932_v45  }
 0x9c3 PF: > { %s26_s25 = sadd.s32 1, %s2374_s25  }
 0x9c4   : > { %p23_p5 = scmp.ge.s32.totalorder %s26_s25, 4  }
 0x9c6   :  { %25 = sbr.rel (!%p23_p5) target bundleno = 3 (0x3), region = 119 }
 0x9cb   :  { %1753 = vsyncpa [#allocation4], 1 }
 0x9cc   :  { %1755 = vsyncpa [#allocation4 + $0x1], 1 }
 0x9cd   :  { %1756 = vsyncpa [#allocation6], 1 }
 0x9ce   :  { %1757 = vsyncpa [#allocation9], 1 }

// kernel: reasoning_transformer_forward.7
= control target key start
LH: loop header
LB: loop body
LE: loop exit
PB: predicated region body
PF: predicated region fallthrough
CT: control target
= control target key end

     0   :  { %s2195_s25 = smov 0   ;;  %s2490_s0 = inlined_call_operand.vmem [shape: bf16[32,128], index: 0, kind: input, shape index: {}]   ;;  %s2491_s1 = inlined_call_operand.vmem [shape: bf16[128,384], index: 1, kind: input, shape index: {}]   ;;  %s2492_s2 = inlined_call_operand.vmem [shape: f32[1,384], index: 2, kind: input, shape index: {}]   ;;  %s2493_s3 = inlined_call_operand.vmem [shape: bf16[128,128], index: 3, kind: input, shape index: {}]   ;;  %s2494_s4 = inlined_call_operand.vmem [shape: f32[1,128], index: 4, kind: input, shape index: {}]   ;;  %s2495_s5 = inlined_call_operand.vmem [shape: f32[1,128], index: 5, kind: input, shape index: {}]   ;;  %s2496_s6 = inlined_call_operand.vmem [shape: f32[1,128], index: 6, kind: input, shape index: {}]   ;;  %s2497_s7 = inlined_call_operand.vmem [shape: bf16[128,64], index: 7, kind: input, shape index: {}]   ;;  %s2498_s8 = inlined_call_operand.vmem [shape: f32[1,64], index: 8, kind: input, shape index: {}]   ;;  %s2499_s9 = inlined_call_operand.vmem [shape: bf16[64,128], index: 9, kind: input, shape index: {}]   ;;  %s2500_s10 = inlined_call_operand.vmem [shape: f32[1,128], index: 10, kind: input, shape index: {}]   ;;  %s2501_s11 = inlined_call_operand.vmem [shape: f32[1,128], index: 11, kind: input, shape index: {}]   ;;  %s2502_s12 = inlined_call_operand.vmem [shape: f32[1,128], index: 12, kind: input, shape index: {}]   ;;  %s2503_s13 = inlined_call_operand.vmem [shape: bf16[32,128], index: 13, kind: output, shape index: {}]  }
   0x1 LB: > { %s1736_s26 = sadd.s32 4294967295, %s2117_s25   ;;  %p1740_p0 = scmp.ge.s32.totalorder %s2117_s25, 1  ;;  %s2117_s25 = sphi %s2195_s25, %s23_s25  }
   0x2   : > { %p388_p1 = scmp.lt.s32.totalorder %s2117_s25, 3 }
   0x4   : > { %p389_p2 = pnand %p1740_p0, %p388_p1 }
   0x5   : > { %s1741_s29 = sshll.u32 (!%p389_p2), %s1736_s26, 1  ;;  %s2122_s22 = smov (!%p389_p2), 64  }
   0x6   : > { %392 = sbr.rel (%p389_p2) target bundleno = 2443 (0x98b), region = 72  ;;  %p433_p3 = scmp.lt.s32.totalorder (!%p389_p2), %s1741_s29, 3 }
   0x7   : > { %s2124_s24 = smov (!%p389_p2), 32  }
   0xb   : > { %v2016_v0 = vld [vmem:[%s2491_s1 + $0xac] ss:$12 sps:$4 sm:$0xff]   ;;  %v2018_v1 = vld [vmem:[%s2491_s1 + $0xa8] ss:$12 sps:$4 sm:$0xff]   ;;  %v2119_v2 = vmov 0   ;;  %v2120_v4 = vmov 0.0   ;;  %v483_v27 = vlaneseq }
   0xc   : > { %664 = vmatprep.mubr.bf16.mxu0 %v2119_v2  ;;  %632 = vmatprep.subr.bf16.mxu0 %v2016_v0  ;;  %v2019_v3 = vld [vmem:[%s2491_s1 + $0x94] ss:$12 sps:$4 sm:$0xff]   ;;  %v2021_v5 = vld [vmem:[%s2491_s1 + $0x90] ss:$12 sps:$4 sm:$0xff]   ;;  %s2505_s29 = smov (!%p433_p3, %s1741_s29), 3  ;;  %vm2121_vm0 = vmmov 0  }
   0xd   : > { %1882 = vmatprep.subr.bf16.mxu1 %v2120_v4  ;;  %633 = vmatpush1.bf16.msra.mxu0 %v2018_v1  ;;  %v2022_v6 = vld [vmem:[%s2491_s1 + $0x7c] ss:$12 sps:$4 sm:$0xff]   ;;  %v2024_v7 = vld [vmem:[%s2491_s1 + $0x78] ss:$12 sps:$4 sm:$0xff]   ;;  %v2027_v9 = vld [vmem:[%s2491_s1 + $0x60] ss:$12 sps:$4 sm:$0xff]  }
   0xe   : > { %634 = vmatprep.subr.bf16.mxu0 %v2019_v3  ;;  %v2025_v8 = vld [vmem:[%s2491_s1 + $0x64] ss:$12 sps:$4 sm:$0xff]   ;;  %s1742_s28 = sshll.u32 %s2505_s29, 2  ;;  %v2028_v11 = vld [vmem:[%s2491_s1 + $0x4c] ss:$12 sps:$4 sm:$0xff]   ;;  %1898 = vmatprep.mubr.msk.bf16.mxu1 %vm2121_vm0, %v2120_v4  ;;  %v484_v28 = vshrl.u32 %v483_v27, 7 }
   0xf   : > { %v2041_v10 = vld [vmem:[%s2491_s1 + $0xb0] ss:$12 sps:$4 sm:$0xff]   ;;  %v2042_v12 = vld [vmem:[%s2491_s1 + $0x98] ss:$12 sps:$4 sm:$0xff]   ;;  %v2030_v13 = vld [vmem:[%s2491_s1 + $0x48] ss:$12 sps:$4 sm:$0xff]   ;;  %s436_s23 = scalar_lea.vmem %s2490_s0, %s1742_s28  ;;  %s442_s14 = scalar_lea.vmem %s2503_s13, %s1742_s28 }
  0x10   : > { %1883 = vmatpush3.bf16.msra.mxu1 %v2041_v10  ;;  %v2031_v14 = vld [vmem:[%s2491_s1 + $0x34] ss:$12 sps:$4 sm:$0xff]   ;;  %v2033_v16 = vld [vmem:[%s2491_s1 + $0x30] ss:$12 sps:$4 sm:$0xff]   ;;  %v2036_v19 = vld [vmem:[%s2491_s1 + $0x18] ss:$12 sps:$4 sm:$0xff]  }
  0x11   : > { %635 = vmatpush1.bf16.msra.mxu0 %v2021_v5  ;;  %1884 = vmatprep.subr.bf16.mxu1 %v2120_v4  ;;  %v2043_v15 = vld [vmem:[%s2491_s1 + $0x80] ss:$12 sps:$4 sm:$0xff]   ;;  %v2034_v17 = vld [vmem:[%s2491_s1 + $0x1c] ss:$12 sps:$4 sm:$0xff]   ;;  %v2037_v20 = vld [vmem:[%s2491_s1 + $0x4] ss:$12 sps:$4 sm:$0xff]  }
  0x12   : > { %636 = vmatprep.subr.bf16.mxu0 %v2022_v6  ;;  %v2044_v18 = vld [vmem:[%s2491_s1 + $0x68] ss:$12 sps:$4 sm:$0xff]   ;;  %v2045_v21 = vld [vmem:[%s2491_s1 + $0x50] ss:$12 sps:$4 sm:$0xff]   ;;  %v2039_v22 = vld [vmem:[%s2491_s1] ss:$12 sps:$4 sm:$0xff]  }
  0x13   : > { %v2278_v23 = vld [vmem:[%s436_s23] sm:$0xff]   ;;  %v2048_v26 = vld [vmem:[%s2491_s1 + $0x8] ss:$12 sps:$4 sm:$0xff]   ;;  %v489_v29 = vsub.s32 1, %v484_v28  ;;  %v485_v33 = vsub.s32 0, %v484_v28  ;;  %vm719_vm1 = vcmask 261120  }
  0x14   : > { %1885 = vmatpush3.bf16.msra.mxu1 %v2042_v12  ;;  %v2046_v24 = vld [vmem:[%s2491_s1 + $0x38] ss:$12 sps:$4 sm:$0xff]   ;;  %v2047_v25 = vld [vmem:[%s2491_s1 + $0x20] ss:$12 sps:$4 sm:$0xff]   ;;  %s2123_s23 = smov 96   ;;  %v493_v45 = vsub.s32 2, %v484_v28 }
  0x15   : > { %637 = vmatpush1.bf16.msra.mxu0 %v2024_v7  ;;  %1886 = vmatprep.subr.bf16.mxu1 %v2120_v4  ;;  %v481_v31 = vld [vmem:[%s2492_s2] sm:$0x7]  ;;  %vm769_vm2 = vcmask 130048   ;;  %vm845_vm3 = vcmask 257024   ;;  %vm986_vm4 = vcmask 519424   ;;  %vm1124_vm5 = vcmask 781824  }
  0x16   : > { %638 = vmatprep.subr.bf16.mxu0 %v2025_v8  ;;  %v490_v34 = vrot.slane %v481_v31, %v489_v29  ;;  %v486_v37 = vrot.slane %v481_v31, %v485_v33  ;;  %v494_v46 = vrot.slane %v481_v31, %v493_v45  ;;  %vm1262_vm6 = vcmask 1044224  }
  0x17   : > { %vm1583_vm7 = vcmask 523264  }
  0x18   : > { %1887 = vmatpush3.bf16.msra.mxu1 %v2043_v15 }
  0x19   : > { %639 = vmatpush1.bf16.msra.mxu0 %v2027_v9  ;;  %1888 = vmatprep.subr.bf16.mxu1 %v2120_v4 }
  0x1a   : > { %640 = vmatprep.subr.bf16.mxu0 %v2028_v11 }
  0x1c   : > { %1889 = vmatpush3.bf16.msra.mxu1 %v2044_v18 }
  0x1d   : > { %641 = vmatpush1.bf16.msra.mxu0 %v2030_v13  ;;  %1890 = vmatprep.subr.bf16.mxu1 %v2120_v4 }
  0x1e   : > { %642 = vmatprep.subr.bf16.mxu0 %v2031_v14 }
  0x20   : > { %1891 = vmatpush3.bf16.msra.mxu1 %v2045_v21 }
  0x21   : > { %643 = vmatpush1.bf16.msra.mxu0 %v2033_v16  ;;  %1892 = vmatprep.subr.bf16.mxu1 %v2120_v4 }
  0x22   : > { %644 = vmatprep.subr.bf16.mxu0 %v2034_v17 }
  0x24   : > { %1893 = vmatpush3.bf16.msra.mxu1 %v2046_v24 }
  0x25   : > { %645 = vmatpush1.bf16.msra.mxu0 %v2036_v19  ;;  %1894 = vmatprep.subr.bf16.mxu1 %v2120_v4 }
  0x26   : > { %646 = vmatprep.subr.bf16.mxu0 %v2037_v20 }
  0x28   : > { %1895 = vmatpush3.bf16.msra.mxu1 %v2047_v25 }
  0x29   : > { %647 = vmatpush1.bf16.msra.mxu0 %v2039_v22  ;;  %1896 = vmatprep.subr.bf16.mxu1 %v2120_v4 }
  0x2a   : > { %1914 = vmatprep.subr.bf16.mxu0 %v2120_v4 }
  0x2c   : > { %665 = vmatmul.mubr.bf16.vlgmr.msra.gmra.mxu0 %v2278_v23  ;;  %1897 = vmatpush3.bf16.msra.mxu1 %v2048_v26 }
  0x2d   : > { %1902 = vmatprep.subr.bf16.mxu1 %v2120_v4  ;;  %1916 = vmatprep.mubr.msk.bf16.mxu0 %vm2121_vm0, %v2120_v4 }
  0x2f   : > { %1899 = vmatmul.mubr.bf16.vlgmr.msra.gmra.mxu1 %v2278_v23 }
  0x30   : > { %1904 = vmatprep.mubr.msk.bf16.mxu1 %vm2121_vm0, %v2120_v4 }
  0xec   : > { %v666_v30 = vpop.f32.mrf.mxu0 }
  0xed   : > { %v667_v42 = vadd.f32 %v666_v30, %v486_v37 }
  0xee   : > { %v668_v32 = vpop.f32.mrf.mxu0 }
  0xef   : > { %v669_v38 = vadd.f32 %v668_v32, %v490_v34  ;;  %v709_v47 = vpop.f32.mrf.mxu1 }
  0xf0   : > { %v670_v35 = vpop.f32.mrf.mxu0  ;;  %v710_v49 = vadd.f32 %v709_v47, %v494_v46 }
  0xf1   : > { %v671_v40 = vadd.f32 %v670_v35, %v486_v37  ;;  %v1900_v48 = vpop.f32.mrf.mxu1 }
  0xf2   : > { %v672_v36 = vpop.f32.mrf.mxu0 }
  0xf3   : > { %v673_v39 = vadd.f32 %v672_v36, %v490_v34  ;;  %v716_v44 = vpack.c.bf16 %v671_v40, %v667_v42  ;;  %v712_v50 = vpop.f32.mrf.mxu1 }
  0xf4   : > { %v713_v51 = vadd.f32 %v712_v50, %v494_v46 }
  0xf5   : > { %v717_v41 = vpack.c.bf16 %v673_v39, %v669_v38  ;;  %v1901_v52 = vpop.f32.mrf.mxu1 }
  0xf6   : > { %v2317_v53 = vpack.c.bf16 %v713_v51, %v710_v49 }
  0xf7   : > { %991 = vrot.lane.b32.xlu1 %v717_v41, %s2122_s22  ;;  %852 = vrot.lane.b32.xlu0 %v717_v41, %s2123_s23  ;;  %v724_v43 = vsel %vm719_vm1, %v717_v41, 0 }
  0xf8   : > { %1903 = vmatpush3.bf16.xpose.msra.mxu1 %v724_v43 }
  0xf9   : > { %1908 = vmatprep.subr.bf16.mxu1 %v2120_v4 }
  0xfb   : > { %989 = vrot.lane.b32.xlu1 %v716_v44, %s2122_s22  ;;  %849 = vrot.lane.b32.xlu0 %v716_v44, %s2123_s23 }
  0xff   : > { %1127 = vrot.lane.b32.xlu1 %v716_v44, %s2124_s24  ;;  %1129 = vrot.lane.b32.xlu0 %v717_v41, %s2124_s24 }
 0x100   : > { %1905 = vmatmul.mubr.msk.bf16.vlgmr.msra.gmra.mxu1 %vm719_vm1, %v716_v44 }
 0x101   : > { %1910 = vmatprep.mubr.msk.bf16.mxu1 %vm2121_vm0, %v2120_v4  ;;  %1909 = vmatpush3.bf16.msra.mxu1 %v2317_v53 }
 0x102   : > { %1920 = vmatprep.subr.bf16.mxu1 %v2120_v4 }
 0x169   : > { %v853_v54 = vpop.permute.xlu0 %852  ;;  %v992_v56 = vpop.permute.xlu1 %991 }
 0x16a   : > { %v858_v55 = vsel %vm719_vm1, %v853_v54, 0  ;;  %v997_v58 = vsel %vm719_vm1, %v992_v56, 0 }
 0x16b   : > { %1915 = vmatpush3.bf16.xpose.msra.mxu0 %v858_v55 }
 0x16c   : > { %1926 = vmatprep.subr.bf16.mxu0 %v2120_v4 }
 0x16d   : > { %v850_v57 = vpop.permute.xlu0 %849  ;;  %v990_v60 = vpop.permute.xlu1 %989 }
 0x171   : > { %v1130_v59 = vpop.permute.xlu0 %1129  ;;  %v1128_v62 = vpop.permute.xlu1 %1127 }
 0x172   : > { %1917 = vmatmul.mubr.msk.bf16.vlgmr.msra.gmra.mxu0 %vm719_vm1, %v850_v57  ;;  %v1135_v61 = vsel %vm719_vm1, %v1130_v59, 0 }
 0x173   : > { %1927 = vmatpush3.bf16.xpose.msra.mxu0 %v997_v58  ;;  %1928 = vmatprep.mubr.msk.bf16.mxu0 %vm2121_vm0, %v2120_v4 }
 0x174   : > { %1938 = vmatprep.subr.bf16.mxu0 %v2120_v4 }
 0x17a   : > { %1929 = vmatmul.mubr.msk.bf16.vlgmr.msra.gmra.mxu0 %vm719_vm1, %v990_v60 }
 0x17b   : > { %1939 = vmatpush3.bf16.xpose.msra.mxu0 %v1135_v61  ;;  %1940 = vmatprep.mubr.msk.bf16.mxu0 %vm2121_vm0, %v2120_v4 }
 0x17c   : > { %1950 = vmatprep.subr.bf16.mxu0 %v2120_v4 }
 0x182   : > { %1941 = vmatmul.mubr.msk.bf16.vlgmr.msra.gmra.mxu0 %vm719_vm1, %v1128_v62 }
 0x183   : > { %1966 = vmatprep.mubr.msk.bf16.mxu0 %vm2121_vm0, %v2120_v4 }
 0x1c0   : > { %v760_v63 = vpop.f32.mrf.mxu1 }
 0x1c1   : > { %v767_v0 = vmul.f32 0.17677669, %v760_v63 }
 0x1c2   : > { %v1906_v1 = vpop.f32.mrf.mxu1 }
 0x1c3   : > { %v770_v2 = vsel %vm769_vm2, %v767_v0, -inf }
 0x1c4   : > { %771 = vmax.xlane.f32.xlu0 %v770_v2  ;;  %v763_v3 = vpop.f32.mrf.mxu1 }
 0x1c5   : > { %v768_v5 = vmul.f32 0.17677669, %v763_v3 }
 0x1c6   : > { %v1907_v6 = vpop.f32.mrf.mxu1 }
 0x1c7   : > { %v773_v7 = vsel %vm769_vm2, %v768_v5, -inf }
 0x1c8   : > { %774 = vmax.xlane.f32.xlu1 %v773_v7 }
 0x232   : > { %v894_v8 = vpop.f32.mrf.mxu0 }
 0x233   : > { %v901_v9 = vmul.f32 0.17677669, %v894_v8 }
 0x234   : > { %v1918_v10 = vpop.f32.mrf.mxu0 }
 0x235   : > { %v903_v11 = vsel %vm769_vm2, %v901_v9, -inf }
 0x236   : > { %v897_v12 = vpop.f32.mrf.mxu0  ;;  %904 = vmax.xlane.f32.xlu0 %v903_v11 }
 0x237   : > { %v902_v13 = vmul.f32 0.17677669, %v897_v12 }
 0x238   : > { %v1919_v14 = vpop.f32.mrf.mxu0 }
 0x239   : > { %v906_v15 = vsel %vm769_vm2, %v902_v13, -inf }
 0x23a   : > { %v1033_v16 = vpop.f32.mrf.mxu0  ;;  %907 = vmax.xlane.f32.xlu0 %v906_v15 }
 0x23b   : > { %v1040_v17 = vmul.f32 0.17677669, %v1033_v16 }
 0x23c   : > { %v1930_v18 = vpop.f32.mrf.mxu0 }
 0x23d   : > { %v1042_v19 = vsel %vm769_vm2, %v1040_v17, -inf }
 0x23e   : > { %v1036_v20 = vpop.f32.mrf.mxu0  ;;  %1043 = vmax.xlane.f32.xlu1 %v1042_v19 }
 0x23f   : > { %v1041_v21 = vmul.f32 0.17677669, %v1036_v20 }
 0x240   : > { %v1931_v22 = vpop.f32.mrf.mxu0 }
 0x241   : > { %v1045_v24 = vsel %vm769_vm2, %v1041_v21, -inf }
 0x242   : > { %v1171_v25 = vpop.f32.mrf.mxu0  ;;  %1046 = vmax.xlane.f32.xlu0 %v1045_v24 }
 0x243   : > { %v1178_v26 = vmul.f32 0.17677669, %v1171_v25 }
 0x244   : > { %v1942_v27 = vpop.f32.mrf.mxu0 }
 0x245   : > { %v1180_v28 = vsel %vm769_vm2, %v1178_v26, -inf }
 0x246   : > { %v1174_v29 = vpop.f32.mrf.mxu0  ;;  %1181 = vmax.xlane.f32.xlu1 %v1180_v28 }
 0x247   : > { %v1179_v30 = vmul.f32 0.17677669, %v1174_v29 }
 0x248   : > { %v1943_v31 = vpop.f32.mrf.mxu0 }
 0x249   : > { %v1183_v32 = vsel %vm769_vm2, %v1179_v30, -inf }
 0x24a   : > { %1184 = vmax.xlane.f32.xlu0 %v1183_v32 }
 0x24d   : > { %v772_v33 = vpop.xlane.xlu0 %771 }
 0x24e   : > { %v776_v34 = vsub.f32 %v767_v0, %v772_v33 }
 0x250   : > { %v778_v35 = vmul.f32 1.442695, %v776_v34 }
 0x251   : > { %v775_v36 = vpop.xlane.xlu1 %774 }
 0x252   : > { %2071 = vpow2.f32 %v778_v35  ;;  %v777_v37 = vsub.f32 %v768_v5, %v775_v36 }
 0x254   : > { %v780_v38 = vmul.f32 1.442695, %v777_v37 }
 0x256   : > { %2073 = vpow2.f32 %v780_v38 }
 0x25f   : > { %v2072_v39 = vpop.eup %2071 }
 0x260   : > { %v782_v40 = vsel %vm769_vm2, %v2072_v39, 0.0 }
 0x261   : > { %783 = vadd.xlane.f32.xlu1 %v782_v40 }
 0x263   : > { %v2074_v41 = vpop.eup %2073 }
 0x264   : > { %v785_v42 = vsel %vm769_vm2, %v2074_v41, 0.0 }
 0x265   : > { %786 = vadd.xlane.f32.xlu0 %v785_v42 }
 0x272   : > { %927 = vrot.lane.b32.xlu1 %v2317_v53, %s2123_s23 }
 0x2bf   : > { %v905_v43 = vpop.xlane.xlu0 %904 }
 0x2c0   : > { %v909_v44 = vsub.f32 %v901_v9, %v905_v43 }
 0x2c2   : > { %v911_v45 = vmul.f32 1.442695, %v909_v44 }
 0x2c3   : > { %v908_v46 = vpop.xlane.xlu0 %907 }
 0x2c4   : > { %2075 = vpow2.f32 %v911_v45  ;;  %v910_v47 = vsub.f32 %v902_v13, %v908_v46 }
 0x2c6   : > { %v913_v48 = vmul.f32 1.442695, %v910_v47 }
 0x2c7   : > { %v1044_v49 = vpop.xlane.xlu1 %1043 }
 0x2c8   : > { %2077 = vpow2.f32 %v913_v48  ;;  %v1048_v50 = vsub.f32 %v1040_v17, %v1044_v49  ;;  %v2049_v48 = vld [vmem:[%s2493_s3 + $0x38] sm:$0xff]   ;;  %v2050_v49 = vld [vmem:[%s2493_s3 + $0x30] sm:$0xff]  }
 0x2c9   : > { %1951 = vmatpush3.bf16.msra.mxu0 %v2049_v48 }
 0x2ca   : > { %v1050_v51 = vmul.f32 1.442695, %v1048_v50  ;;  %1952 = vmatprep.subr.bf16.mxu0 %v2120_v4  ;;  %v2051_v50 = vld [vmem:[%s2493_s3 + $0x28] sm:$0xff]  }
 0x2cb   : > { %v1047_v52 = vpop.xlane.xlu0 %1046 }
 0x2cc   : > { %2079 = vpow2.f32 %v1050_v51  ;;  %v1049_v54 = vsub.f32 %v1041_v21, %v1047_v52  ;;  %v2052_v51 = vld [vmem:[%s2493_s3 + $0x20] sm:$0xff]  }
 0x2cd   : > { %1953 = vmatpush3.bf16.msra.mxu0 %v2050_v49 }
 0x2ce   : > { %v1052_v55 = vmul.f32 1.442695, %v1049_v54  ;;  %1954 = vmatprep.subr.bf16.mxu0 %v2120_v4 }
 0x2cf   : > { %v1182_v56 = vpop.xlane.xlu1 %1181 }
 0x2d0   : > { %2081 = vpow2.f32 %v1052_v55  ;;  %v1186_v57 = vsub.f32 %v1178_v26, %v1182_v56  ;;  %v2053_v56 = vld [vmem:[%s2493_s3 + $0x18] sm:$0xff]  }
 0x2d1   : > { %v2076_v58 = vpop.eup %2075  ;;  %1955 = vmatpush3.bf16.msra.mxu0 %v2051_v50 }
 0x2d2   : > { %v1188_v59 = vmul.f32 1.442695, %v1186_v57  ;;  %v915_v60 = vsel %vm769_vm2, %v2076_v58, 0.0  ;;  %1956 = vmatprep.subr.bf16.mxu0 %v2120_v4 }
 0x2d3   : > { %v1185_v61 = vpop.xlane.xlu0 %1184  ;;  %916 = vadd.xlane.f32.xlu1 %v915_v60  ;;  %v2054_v60 = vld [vmem:[%s2493_s3 + $0x10] sm:$0xff]  }
 0x2d4   : > { %2083 = vpow2.f32 %v1188_v59  ;;  %v1187_v62 = vsub.f32 %v1179_v30, %v1185_v61 }
 0x2d5   : > { %v2078_v63 = vpop.eup %2077  ;;  %1957 = vmatpush3.bf16.msra.mxu0 %v2052_v51 }
 0x2d6   : > { %v1190_v0 = vmul.f32 1.442695, %v1187_v62  ;;  %v918_v1 = vsel %vm769_vm2, %v2078_v63, 0.0  ;;  %1958 = vmatprep.subr.bf16.mxu0 %v2120_v4 }
 0x2d7   : > { %919 = vadd.xlane.f32.xlu0 %v918_v1 }
 0x2d8   : > { %2085 = vpow2.f32 %v1190_v0  ;;  %v2055_v0 = vld [vmem:[%s2493_s3 + $0x8] sm:$0xff]  }
 0x2d9   : > { %v2080_v2 = vpop.eup %2079  ;;  %1959 = vmatpush3.bf16.msra.mxu0 %v2053_v56 }
 0x2da   : > { %v1054_v3 = vsel %vm769_vm2, %v2080_v2, 0.0  ;;  %1960 = vmatprep.subr.bf16.mxu0 %v2120_v4 }
 0x2db   : > { %1055 = vadd.xlane.f32.xlu1 %v1054_v3 }
 0x2dd   : > { %v2082_v5 = vpop.eup %2081  ;;  %1961 = vmatpush3.bf16.msra.mxu0 %v2054_v60 }
 0x2de   : > { %v1057_v6 = vsel %vm769_vm2, %v2082_v5, 0.0  ;;  %1962 = vmatprep.subr.bf16.mxu0 %v2120_v4 }
 0x2df   : > { %1058 = vadd.xlane.f32.xlu0 %v1057_v6 }
 0x2e1   : > { %v2084_v7 = vpop.eup %2083  ;;  %1963 = vmatpush3.bf16.msra.mxu0 %v2055_v0  ;;  %v2067_v0 = vld [vmem:[%s2499_s9 + $0x10] sm:$0xff]  }
 0x2e2   : > { %v1192_v8 = vsel %vm769_vm2, %v2084_v7, 0.0  ;;  %1964 = vmatprep.subr.bf16.mxu0 %v2120_v4 }
 0x2e3   : > { %1193 = vadd.xlane.f32.xlu1 %v1192_v8 }
 0x2e5   : > { %v2086_v9 = vpop.eup %2085 }
 0x2e6   : > { %v1195_v10 = vsel %vm769_vm2, %v2086_v9, 0.0 }
 0x2e7   : > { %1196 = vadd.xlane.f32.xlu0 %v1195_v10 }
 0x2ea   : > { %v784_v11 = vpop.xlane.xlu1 %783 }
 0x2eb   : > { %2087 = vrcp.f32 %v784_v11 }
 0x2ee   : > { %v787_v12 = vpop.xlane.xlu0 %786  ;;  %v928_v18 = vpop.permute.xlu1 %927 }
 0x2ef   : > { %2089 = vrcp.f32 %v787_v12 }
 0x2f4   : > { %1203 = vrot.lane.b32.xlu1 %v2317_v53, %s2124_s24 }
 0x2f8   : > { %v2088_v13 = vpop.eup %2087 }
 0x2f9   : > { %v790_v15 = vmul.f32 %v2088_v13, %v2072_v39 }
 0x2fc   : > { %v2090_v14 = vpop.eup %2089 }
 0x2fd   : > { %1065 = vrot.lane.b32.xlu0 %v2317_v53, %s2122_s22  ;;  %v791_v16 = vmul.f32 %v2090_v14, %v2074_v41 }
 0x2ff   : > { %v792_v17 = vpack.c.bf16 %v791_v16, %v790_v15 }
 0x301   : > { %1911 = vmatmul.mubr.msk.bf16.vlgmr.msra.gmra.mxu1 %vm769_vm2, %v792_v17 }
 0x302   : > { %1921 = vmatpush3.bf16.msra.mxu1 %v928_v18  ;;  %1922 = vmatprep.mubr.msk.bf16.mxu1 %vm2121_vm0, %v2120_v4 }
 0x303   : > { %1932 = vmatprep.subr.bf16.mxu1 %v2120_v4 }
 0x35c   : > { %v917_v19 = vpop.xlane.xlu1 %916 }
 0x35d   : > { %2091 = vrcp.f32 %v917_v19  ;;  %v1786_v19 = vld [vmem:[%s2494_s4] ss:$0 sm:$0xff] }
 0x360   : > { %v920_v20 = vpop.xlane.xlu0 %919 }
 0x361   : > { %2093 = vrcp.f32 %v920_v20  ;;  %v447_v20 = vunpack.c.l.bf16 %v2278_v23 }
 0x364   : > { %v1056_v21 = vpop.xlane.xlu1 %1055 }
 0x365   : > { %2095 = vrcp.f32 %v1056_v21 }
 0x368   : > { %v1059_v22 = vpop.xlane.xlu0 %1058 }
 0x369   : > { %2097 = vrcp.f32 %v1059_v22 }
 0x36a   : > { %v2092_v53 = vpop.eup %2091 }
 0x36b   : > { %v923_v26 = vmul.f32 %v2092_v53, %v2076_v58 }
 0x36c   : > { %v1194_v24 = vpop.xlane.xlu1 %1193 }
 0x36d   : > { %2099 = vrcp.f32 %v1194_v24 }
 0x36e   : > { %v2094_v25 = vpop.eup %2093 }
 0x36f   : > { %v924_v27 = vmul.f32 %v2094_v25, %v2078_v63  ;;  %v448_v25 = vunpack.c.h.bf16 %v2278_v23 }
 0x370   : > { %v1197_v28 = vpop.xlane.xlu0 %1196  ;;  %v1204_v36 = vpop.permute.xlu1 %1203 }
 0x371   : > { %2101 = vrcp.f32 %v1197_v28  ;;  %v925_v29 = vpack.c.bf16 %v924_v27, %v923_v26 }
 0x372   : > { %v2096_v30 = vpop.eup %2095 }
 0x373   : > { %1923 = vmatmul.mubr.msk.bf16.vlgmr.msra.gmra.mxu1 %vm769_vm2, %v925_v29  ;;  %v1062_v33 = vmul.f32 %v2096_v30, %v2080_v2  ;;  %v2056_v2 = vld [vmem:[%s2493_s3] sm:$0xff]   ;;  %v2058_v30 = vld [vmem:[%s2497_s7 + $0x38] sm:$0xff]  }
 0x374   : > { %v1066_v31 = vpop.permute.xlu0 %1065  ;;  %1934 = vmatprep.mubr.msk.bf16.mxu1 %vm2121_vm0, %v2120_v4  ;;  %1965 = vmatpush3.bf16.msra.mxu0 %v2056_v2  ;;  %v2069_v2 = vld [vmem:[%s2499_s9] sm:$0xff]  }
 0x375   : > { %1933 = vmatpush3.bf16.msra.mxu1 %v1066_v31  ;;  %1990 = vmatprep.subr.bf16.mxu0 %v2120_v4 }
 0x376   : > { %v2098_v32 = vpop.eup %2097  ;;  %1944 = vmatprep.subr.bf16.mxu1 %v2120_v4 }
 0x377   : > { %v1063_v34 = vmul.f32 %v2098_v32, %v2082_v5 }
 0x379   : > { %v1064_v35 = vpack.c.bf16 %v1063_v34, %v1062_v33 }
 0x37a   : > { %v2100_v37 = vpop.eup %2099 }
 0x37b   : > { %1935 = vmatmul.mubr.msk.bf16.vlgmr.msra.gmra.mxu1 %vm769_vm2, %v1064_v35  ;;  %v1200_v39 = vmul.f32 %v2100_v37, %v2084_v7 }
 0x37c   : > { %1945 = vmatpush3.bf16.msra.mxu1 %v1204_v36  ;;  %1946 = vmatprep.mubr.msk.bf16.mxu1 %vm2121_vm0, %v2120_v4 }
 0x37d   : > { %1970 = vmatprep.subr.bf16.mxu1 %v2120_v4 }
 0x37e   : > { %v2102_v38 = vpop.eup %2101 }
 0x37f   : > { %v1201_v40 = vmul.f32 %v2102_v38, %v2086_v9  ;;  %v2059_v38 = vld [vmem:[%s2497_s7 + $0x30] sm:$0xff]  }
 0x381   : > { %v1202_v41 = vpack.c.bf16 %v1201_v40, %v1200_v39  ;;  %v2060_v39 = vld [vmem:[%s2497_s7 + $0x28] sm:$0xff]   ;;  %v2061_v40 = vld [vmem:[%s2497_s7 + $0x20] sm:$0xff]  }
 0x383   : > { %1947 = vmatmul.mubr.msk.bf16.vlgmr.msra.gmra.mxu1 %vm769_vm2, %v1202_v41  ;;  %v2062_v41 = vld [vmem:[%s2497_s7 + $0x18] sm:$0xff]  }
 0x384   : > { %1986 = vmatprep.mubr.msk.bf16.mxu1 %vm2121_vm0, %v2120_v4  ;;  %1971 = vmatpush3.bf16.msra.mxu1 %v2058_v30 }
 0x385   : > { %1972 = vmatprep.subr.bf16.mxu1 %v2120_v4 }
 0x388   : > { %1973 = vmatpush3.bf16.msra.mxu1 %v2059_v38 }
 0x389   : > { %1974 = vmatprep.subr.bf16.mxu1 %v2120_v4 }
 0x38c   : > { %1975 = vmatpush3.bf16.msra.mxu1 %v2060_v39 }
 0x38d   : > { %1976 = vmatprep.subr.bf16.mxu1 %v2120_v4 }
 0x390   : > { %1977 = vmatpush3.bf16.msra.mxu1 %v2061_v40 }
 0x391   : > { %1978 = vmatprep.subr.bf16.mxu1 %v2120_v4 }
 0x394   : > { %1979 = vmatpush3.bf16.msra.mxu1 %v2062_v41  ;;  %v1814_v41 = vld [vmem:[%s2502_s12] ss:$0 sm:$0xff] }
 0x395   : > { %1980 = vmatprep.subr.bf16.mxu1 %v2120_v4 }
 0x3c1   : > { %v830_v42 = vpop.f32.mrf.mxu1 }
 0x3c2   : > { %v1819_v43 = vpack.c.bf16 %v830_v42, %v830_v42  ;;  %v2063_v42 = vld [vmem:[%s2497_s7 + $0x10] sm:$0xff]  }
 0x3c3   : > { %v1912_v44 = vpop.f32.mrf.mxu1  ;;  %1981 = vmatpush3.bf16.msra.mxu1 %v2063_v42 }
 0x3c4   : > { %846 = vst.msk [vmem:[#allocation2] sm:$0xf] %vm845_vm3, %v1819_v43  ;;  %v2064_v43 = vld [vmem:[%s2497_s7 + $0x8] sm:$0xff]   ;;  %1982 = vmatprep.subr.bf16.mxu1 %v2120_v4  ;;  %v2065_v44 = vld [vmem:[%s2497_s7] sm:$0xff]  }
 0x3c5   : > { %v833_v45 = vpop.f32.mrf.mxu1 }
 0x3c6   : > { %v1820_v46 = vpack.c.bf16 %v833_v45, %v833_v45  ;;  %v2066_v45 = vld [vmem:[%s2499_s9 + $0x18] sm:$0xff]  }
 0x3c7   : > { %v1913_v47 = vpop.f32.mrf.mxu1  ;;  %1983 = vmatpush3.bf16.msra.mxu1 %v2064_v43 }
 0x3c8   : > { %847 = vst.msk [vmem:[#allocation2 + $0x4] sm:$0xf] %vm845_vm3, %v1820_v46  ;;  %1984 = vmatprep.subr.bf16.mxu1 %v2120_v4 }
 0x3cb   : > { %1985 = vmatpush3.bf16.msra.mxu1 %v2065_v44 }
 0x433   : > { %v967_v52 = vpop.f32.mrf.mxu1 }
 0x434   : > { %v1821_v54 = vpack.c.bf16 %v967_v52, %v967_v52 }
 0x435   : > { %v1924_v55 = vpop.f32.mrf.mxu1 }
 0x436   : > { %980 = vrot.lane.b32.xlu1 %v1821_v54, %s2124_s24  ;;  %v1796_v55 = vld [vmem:[%s2495_s5] ss:$0 sm:$0xff] }
 0x437   : > { %v970_v57 = vpop.f32.mrf.mxu1 }
 0x438   : > { %v1822_v58 = vpack.c.bf16 %v970_v57, %v970_v57 }
 0x439   : > { %v1925_v59 = vpop.f32.mrf.mxu1 }
 0x43a   : > { %982 = vrot.lane.b32.xlu0 %v1822_v58, %s2124_s24  ;;  %v1797_v59 = vld [vmem:[%s2496_s6] ss:$0 sm:$0xff] }
 0x43b   : > { %v1105_v61 = vpop.f32.mrf.mxu1 }
 0x43c   : > { %v1823_v62 = vpack.c.bf16 %v1105_v61, %v1105_v61 }
 0x43d   : > { %v1936_v63 = vpop.f32.mrf.mxu1 }
 0x43e   : > { %1118 = vrot.lane.b32.xlu1 %v1823_v62, %s2122_s22 }
 0x43f   : > { %v1108_v1 = vpop.f32.mrf.mxu1 }
 0x440   : > { %v1824_v3 = vpack.c.bf16 %v1108_v1, %v1108_v1  ;;  %v2068_v1 = vld [vmem:[%s2499_s9 + $0x8] sm:$0xff]  }
 0x441   : > { %v1937_v5 = vpop.f32.mrf.mxu1 }
 0x442   : > { %1120 = vrot.lane.b32.xlu0 %v1824_v3, %s2122_s22  ;;  %v1798_v3 = vld [vmem:[%s2498_s8] ss:$0 sm:$0xff] }
 0x443   : > { %v1243_v6 = vpop.f32.mrf.mxu1 }
 0x444   : > { %v1825_v7 = vpack.c.bf16 %v1243_v6, %v1243_v6 }
 0x445   : > { %v1948_v8 = vpop.f32.mrf.mxu1 }
 0x446   : > { %1256 = vrot.lane.b32.xlu1 %v1825_v7, %s2123_s23 }
 0x447   : > { %v1246_v9 = vpop.f32.mrf.mxu1 }
 0x448   : > { %v1826_v10 = vpack.c.bf16 %v1246_v9, %v1246_v9 }
 0x449   : > { %v1949_v11 = vpop.f32.mrf.mxu1 }
 0x44a   : > { %1258 = vrot.lane.b32.xlu0 %v1826_v10, %s2123_s23 }
 0x4a8   : > { %v981_v12 = vpop.permute.xlu1 %980 }
 0x4a9   : > { %987 = vst.msk [vmem:[#allocation2] sm:$0xf] %vm986_vm4, %v981_v12 }
 0x4ac   : > { %v983_v13 = vpop.permute.xlu0 %982 }
 0x4ad   : > { %988 = vst.msk [vmem:[#allocation2 + $0x4] sm:$0xf] %vm986_vm4, %v983_v13 }
 0x4b0   : > { %v1119_v14 = vpop.permute.xlu1 %1118 }
 0x4b1   : > { %1125 = vst.msk [vmem:[#allocation2] sm:$0xf] %vm1124_vm5, %v1119_v14 }
 0x4b4   : > { %v1121_v15 = vpop.permute.xlu0 %1120 }
 0x4b5   : > { %1126 = vst.msk [vmem:[#allocation2 + $0x4] sm:$0xf] %vm1124_vm5, %v1121_v15 }
 0x4b8   : > { %v1257_v16 = vpop.permute.xlu1 %1256 }
 0x4b9   : > { %1263 = vst.msk [vmem:[#allocation2] sm:$0xf] %vm1262_vm6, %v1257_v16 }
 0x4bc   : > { %v1259_v17 = vpop.permute.xlu0 %1258 }
 0x4bd   : > { %1264 = vst.msk [vmem:[#allocation2 + $0x4] sm:$0xf] %vm1262_vm6, %v1259_v17 }
 0x4c4   : > { %v2057_v18 = vld [vmem:[#allocation2] sm:$0xff]  }
 0x4c5   : > { %1967 = vmatmul.mubr.bf16.vlgmr.msra.gmra.mxu0 %v2057_v18 }
 0x4c6   : > { %1998 = vmatprep.mubr.msk.bf16.mxu0 %vm2121_vm0, %v2120_v4  ;;  %1991 = vmatpush3.bf16.msra.mxu0 %v2066_v45 }
 0x4c7   : > { %1992 = vmatprep.subr.bf16.mxu0 %v2120_v4 }
 0x4ca   : > { %1993 = vmatpush3.bf16.msra.mxu0 %v2067_v0 }
 0x4cb   : > { %1994 = vmatprep.subr.bf16.mxu0 %v2120_v4 }
 0x4ce   : > { %1995 = vmatpush3.bf16.msra.mxu0 %v2068_v1 }
 0x4cf   : > { %1996 = vmatprep.subr.bf16.mxu0 %v2120_v4  ;;  %v1807_v4 = vld [vmem:[%s2500_s10] ss:$0 sm:$0xff] }
 0x4d2   : > { %1997 = vmatpush3.bf16.msra.mxu0 %v2069_v2 }
 0x585   : > { %v1378_v21 = vpop.f32.mrf.mxu0 }
 0x586   : > { %v1379_v22 = vadd.f32 %v1786_v19, %v1378_v21 }
 0x587   : > { %v1968_v53 = vpop.f32.mrf.mxu0 }
 0x588   : > { %v1385_v24 = vadd.f32 %v1379_v22, %v447_v20 }
 0x589   : > { %v1381_v26 = vpop.f32.mrf.mxu0 }
 0x58a   : > { %v1382_v27 = vadd.f32 %v1786_v19, %v1381_v26  ;;  %1387 = vadd.xlane.f32.xlu1 %v1385_v24 }
 0x58b   : > { %v1969_v28 = vpop.f32.mrf.mxu0 }
 0x58c   : > { %v1386_v29 = vadd.f32 %v1382_v27, %v448_v25 }
 0x58e   : > { %1389 = vadd.xlane.f32.xlu0 %v1386_v29 }
 0x613   : > { %v1388_v31 = vpop.xlane.xlu1 %1387 }
 0x614   : > { %v1392_v32 = vmul.f32 0.0078125, %v1388_v31 }
 0x616   : > { %v1394_v33 = vsub.f32 %v1385_v24, %v1392_v32 }
 0x617   : > { %v1390_v34 = vpop.xlane.xlu0 %1389 }
 0x618   : > { %v1393_v35 = vmul.f32 0.0078125, %v1390_v34  ;;  %v1396_v36 = vmul.f32 %v1394_v33, %v1394_v33 }
 0x61a   : > { %v1395_v23 = vsub.f32 %v1386_v29, %v1393_v35  ;;  %1398 = vadd.xlane.f32.xlu0 %v1396_v36 }
 0x61c   : > { %v1397_v37 = vmul.f32 %v1395_v23, %v1395_v23 }
 0x61e   : > { %1400 = vadd.xlane.f32.xlu1 %v1397_v37  ;;  %v1813_v37 = vld [vmem:[%s2501_s11] ss:$0 sm:$0xff] }
 0x6a3   : > { %v1399_v46 = vpop.xlane.xlu0 %1398 }
 0x6a4   : > { %v1402_v47 = vmul.f32 0.0078125, %v1399_v46 }
 0x6a6   : > { %v1404_v48 = vadd.f32 1e-05, %v1402_v47 }
 0x6a7   : > { %v1401_v49 = vpop.xlane.xlu1 %1400 }
 0x6a8   : > { %2103 = vrsqrt.f32 %v1404_v48  ;;  %v1403_v50 = vmul.f32 0.0078125, %v1401_v49 }
 0x6aa   : > { %v1405_v51 = vadd.f32 1e-05, %v1403_v50 }
 0x6ac   : > { %2105 = vrsqrt.f32 %v1405_v51 }
 0x6b5   : > { %v2104_v52 = vpop.eup %2103 }
 0x6b6   : > { %v1408_v54 = vmul.f32 %v2104_v52, %v1394_v33 }
 0x6b8   : > { %v1417_v58 = vmul.f32 %v1796_v55, %v1408_v54 }
 0x6b9   : > { %v2106_v56 = vpop.eup %2105 }
 0x6ba   : > { %v1409_v57 = vmul.f32 %v2106_v56, %v1395_v23  ;;  %v1426_v61 = vadd.f32 %v1797_v59, %v1417_v58 }
 0x6bc   : > { %v1418_v60 = vmul.f32 %v1796_v55, %v1409_v57 }
 0x6be   : > { %v1427_v62 = vadd.f32 %v1797_v59, %v1418_v60 }
 0x6c0   : > { %v1428_v63 = vpack.c.bf16 %v1427_v62, %v1426_v61 }
 0x6c2   : > { %1987 = vmatmul.mubr.bf16.vlgmr.msra.gmra.mxu1 %v1428_v63 }
 0x782   : > { %v1534_v5 = vpop.f32.mrf.mxu1 }
 0x783   : > { %v1535_v7 = vadd.f32 %v1798_v3, %v1534_v5 }
 0x784   : > { %v1988_v6 = vpop.f32.mrf.mxu1 }
 0x785   : > { %v1541_v11 = vmax.f32 %v1535_v7, 0.0 }
 0x786   : > { %v1537_v8 = vpop.f32.mrf.mxu1 }
 0x787   : > { %v1538_v9 = vadd.f32 %v1798_v3, %v1537_v8 }
 0x788   : > { %v1989_v10 = vpop.f32.mrf.mxu1 }
 0x789   : > { %v1542_v12 = vmax.f32 %v1538_v9, 0.0 }
 0x78b   : > { %v1543_v13 = vpack.c.bf16 %v1542_v12, %v1541_v11 }
 0x78d   : > { %1999 = vmatmul.mubr.msk.bf16.vlgmr.msra.gmra.mxu0 %vm1583_vm7, %v1543_v13 }
 0x84d   : > { %v1621_v14 = vpop.f32.mrf.mxu0 }
 0x84e   : > { %v1622_v15 = vadd.f32 %v1807_v4, %v1621_v14 }
 0x84f   : > { %v2000_v16 = vpop.f32.mrf.mxu0 }
 0x850   : > { %v1628_v17 = vadd.f32 %v1622_v15, %v1426_v61 }
 0x851   : > { %v1624_v18 = vpop.f32.mrf.mxu0 }
 0x852   : > { %v1625_v19 = vadd.f32 %v1807_v4, %v1624_v18  ;;  %1630 = vadd.xlane.f32.xlu0 %v1628_v17 }
 0x853   : > { %v2001_v20 = vpop.f32.mrf.mxu0 }
 0x854   : > { %v1629_v21 = vadd.f32 %v1625_v19, %v1427_v62 }
 0x856   : > { %1632 = vadd.xlane.f32.xlu1 %v1629_v21 }
 0x8db   : > { %v1631_v22 = vpop.xlane.xlu0 %1630 }
 0x8dc   : > { %v1634_v53 = vmul.f32 0.0078125, %v1631_v22 }
 0x8de   : > { %v1636_v24 = vsub.f32 %v1628_v17, %v1634_v53 }
 0x8df   : > { %v1633_v25 = vpop.xlane.xlu1 %1632 }
 0x8e0   : > { %v1635_v26 = vmul.f32 0.0078125, %v1633_v25  ;;  %v1638_v27 = vmul.f32 %v1636_v24, %v1636_v24 }
 0x8e2   : > { %v1637_v28 = vsub.f32 %v1629_v21, %v1635_v26  ;;  %1640 = vadd.xlane.f32.xlu0 %v1638_v27 }
 0x8e4   : > { %v1639_v29 = vmul.f32 %v1637_v28, %v1637_v28 }
 0x8e6   : > { %1642 = vadd.xlane.f32.xlu1 %v1639_v29 }
 0x96b   : > { %v1641_v30 = vpop.xlane.xlu0 %1640 }
 0x96c   : > { %v1644_v31 = vmul.f32 0.0078125, %v1641_v30 }
 0x96e   : > { %v1646_v32 = vadd.f32 1e-05, %v1644_v31 }
 0x96f   : > { %v1643_v33 = vpop.xlane.xlu1 %1642 }
 0x970   : > { %2107 = vrsqrt.f32 %v1646_v32  ;;  %v1645_v34 = vmul.f32 0.0078125, %v1643_v33 }
 0x972   : > { %v1647_v35 = vadd.f32 1e-05, %v1645_v34 }
 0x974   : > { %2109 = vrsqrt.f32 %v1647_v35 }
 0x97d   : > { %v2108_v36 = vpop.eup %2107 }
 0x97e   : > { %v1650_v23 = vmul.f32 %v2108_v36, %v1636_v24 }
 0x980   : > { %v1659_v39 = vmul.f32 %v1813_v37, %v1650_v23 }
 0x981   : > { %v2110_v38 = vpop.eup %2109 }
 0x982   : > { %v1651_v40 = vmul.f32 %v2110_v38, %v1637_v28  ;;  %v1668_v43 = vadd.f32 %v1814_v41, %v1659_v39 }
 0x984   : > { %v1660_v42 = vmul.f32 %v1813_v37, %v1651_v40 }
 0x986   : > { %v1669_v44 = vadd.f32 %v1814_v41, %v1660_v42 }
 0x988   : > { %v1832_v45 = vpack.c.bf16 %v1669_v44, %v1668_v43 }
 0x98a   : > { %1833 = vst [vmem:[%s442_s14] sm:$0xff] %v1832_v45  }
 0x98b PF: > { %s23_s25 = sadd.s32 1, %s2117_s25  }
 0x98c   : > { %p20_p4 = scmp.ge.s32.totalorder %s23_s25, 4  }
 0x98e   :  { %22 = sbr.rel (!%p20_p4) target bundleno = 1 (0x1), region = 102 }

// kernel: reasoning_transformer_forward.11
= control target key start
LH: loop header
LB: loop body
LE: loop exit
PB: predicated region body
PF: predicated region fallthrough
CT: control target
= control target key end

     0   :  { %s2401_s18 = smov 0   ;;  %s2755_s0 = inlined_call_operand.vmem [shape: bf16[32,128], index: 0, kind: input, shape index: {}]   ;;  %s2756_s1 = inlined_call_operand.vmem [shape: bf16[128,384], index: 1, kind: input, shape index: {}]   ;;  %s2757_s2 = inlined_call_operand.vmem [shape: f32[1,384], index: 2, kind: input, shape index: {}]   ;;  %s2758_s3 = inlined_call_operand.vmem [shape: bf16[128,128], index: 3, kind: input, shape index: {}]   ;;  %s2759_s4 = inlined_call_operand.vmem [shape: f32[1,128], index: 4, kind: input, shape index: {}]   ;;  %s2760_s5 = inlined_call_operand.vmem [shape: f32[1,128], index: 5, kind: input, shape index: {}]   ;;  %s2761_s6 = inlined_call_operand.vmem [shape: f32[1,128], index: 6, kind: input, shape index: {}]   ;;  %s2762_s7 = inlined_call_operand.vmem [shape: bf16[128,64], index: 7, kind: input, shape index: {}]   ;;  %s2763_s8 = inlined_call_operand.vmem [shape: f32[1,64], index: 8, kind: input, shape index: {}]   ;;  %s2764_s9 = inlined_call_operand.vmem [shape: bf16[64,128], index: 9, kind: input, shape index: {}]   ;;  %s2765_s10 = inlined_call_operand.vmem [shape: f32[1,128], index: 10, kind: input, shape index: {}]   ;;  %s2766_s11 = inlined_call_operand.vmem [shape: f32[1,128], index: 11, kind: input, shape index: {}]   ;;  %s2767_s12 = inlined_call_operand.vmem [shape: f32[1,128], index: 12, kind: input, shape index: {}]   ;;  %s2768_s13 = inlined_call_operand.vmem [shape: bf16[128,64], index: 13, kind: input, shape index: {}]   ;;  %s2769_s14 = inlined_call_operand.vmem [shape: f32[1,64], index: 14, kind: input, shape index: {}]   ;;  %s2770_s15 = inlined_call_operand.vmem [shape: f32[32,64], index: 15, kind: output, shape index: {}]  }
   0x1 LB: > { %s1895_s19 = sadd.s32 4294967295, %s2313_s18   ;;  %p1899_p0 = scmp.ge.s32.totalorder %s2313_s18, 1  ;;  %s2313_s18 = sphi %s2401_s18, %s25_s18  }
   0x2   : > { %p438_p1 = scmp.lt.s32.totalorder %s2313_s18, 3 }
   0x4   : > { %p439_p2 = pnand %p1899_p0, %p438_p1 }
   0x5   : > { %s1900_s22 = sshll.u32 (!%p439_p2), %s1895_s19, 1  ;;  %s2318_s23 = smov (!%p439_p2), 96  }
   0x6   : > { %442 = sbr.rel (%p439_p2) target bundleno = 3093 (0xc15), region = 80  ;;  %p487_p3 = scmp.lt.s32.totalorder (!%p439_p2), %s1900_s22, 3 }
   0x7   : > { %s2319_s25 = smov (!%p439_p2), 32   ;;  %s2320_s26 = smov (!%p439_p2), 64  }
   0xb   : > { %v2204_v0 = vld [vmem:[%s2756_s1 + $0xac] ss:$12 sps:$4 sm:$0xff]   ;;  %v2206_v1 = vld [vmem:[%s2756_s1 + $0xa8] ss:$12 sps:$4 sm:$0xff]   ;;  %v2315_v2 = vmov 0   ;;  %s2772_s22 = smov (!%p487_p3, %s1900_s22), 3  ;;  %v537_v19 = vlaneseq }
   0xc   : > { %718 = vmatprep.mubr.bf16.mxu0 %v2315_v2  ;;  %686 = vmatprep.subr.bf16.mxu0 %v2204_v0  ;;  %v2207_v3 = vld [vmem:[%s2756_s1 + $0x94] ss:$12 sps:$4 sm:$0xff]   ;;  %v2209_v4 = vld [vmem:[%s2756_s1 + $0x90] ss:$12 sps:$4 sm:$0xff]   ;;  %v2212_v6 = vld [vmem:[%s2756_s1 + $0x78] ss:$12 sps:$4 sm:$0xff]  }
   0xd   : > { %687 = vmatpush1.bf16.msra.mxu0 %v2206_v1  ;;  %v2210_v5 = vld [vmem:[%s2756_s1 + $0x7c] ss:$12 sps:$4 sm:$0xff]   ;;  %v2213_v7 = vld [vmem:[%s2756_s1 + $0x64] ss:$12 sps:$4 sm:$0xff]   ;;  %v2215_v8 = vld [vmem:[%s2756_s1 + $0x60] ss:$12 sps:$4 sm:$0xff]  }
   0xe   : > { %688 = vmatprep.subr.bf16.mxu0 %v2207_v3  ;;  %s1901_s24 = sshll.u32 %s2772_s22, 2  ;;  %v2216_v9 = vld [vmem:[%s2756_s1 + $0x4c] ss:$12 sps:$4 sm:$0xff]   ;;  %v2218_v10 = vld [vmem:[%s2756_s1 + $0x48] ss:$12 sps:$4 sm:$0xff]   ;;  %v2316_v18 = vmov 0.0  }
   0xf   : > { %v2219_v11 = vld [vmem:[%s2756_s1 + $0x34] ss:$12 sps:$4 sm:$0xff]   ;;  %v2221_v12 = vld [vmem:[%s2756_s1 + $0x30] ss:$12 sps:$4 sm:$0xff]   ;;  %v2224_v14 = vld [vmem:[%s2756_s1 + $0x18] ss:$12 sps:$4 sm:$0xff]   ;;  %s490_s29 = scalar_lea.vmem %s2755_s0, %s1901_s24  ;;  %2050 = vmatprep.subr.bf16.mxu1 %v2316_v18 }
  0x10   : > { %v2222_v13 = vld [vmem:[%s2756_s1 + $0x1c] ss:$12 sps:$4 sm:$0xff]   ;;  %v2225_v15 = vld [vmem:[%s2756_s1 + $0x4] ss:$12 sps:$4 sm:$0xff]   ;;  %v2227_v16 = vld [vmem:[%s2756_s1] ss:$12 sps:$4 sm:$0xff]  }
  0x11   : > { %689 = vmatpush1.bf16.msra.mxu0 %v2209_v4  ;;  %v2463_v17 = vld [vmem:[%s490_s29] sm:$0xff]   ;;  %vm2317_vm0 = vmmov 0   ;;  %v2472_v20 = vshrl.u32 %v537_v19, 7  ;;  %vm773_vm1 = vcmask 261120   ;;  %v2229_v37 = vld [vmem:[%s2756_s1 + $0xb0] ss:$12 sps:$4 sm:$0xff]  }
  0x12   : > { %690 = vmatprep.subr.bf16.mxu0 %v2210_v5  ;;  %2066 = vmatprep.mubr.msk.bf16.mxu1 %vm2317_vm0, %v2316_v18  ;;  %v2478_v23 = vld [vmem:[%s2757_s2] sm:$0x7]  ;;  %v2230_v38 = vld [vmem:[%s2756_s1 + $0x98] ss:$12 sps:$4 sm:$0xff]   ;;  %v2232_v40 = vld [vmem:[%s2756_s1 + $0x68] ss:$12 sps:$4 sm:$0xff]  }
  0x13   : > { %v543_v21 = vsub.s32 1, %v2472_v20  ;;  %v539_v28 = vsub.s32 0, %v2472_v20  ;;  %2051 = vmatpush3.bf16.msra.mxu1 %v2229_v37  ;;  %v2231_v39 = vld [vmem:[%s2756_s1 + $0x80] ss:$12 sps:$4 sm:$0xff]   ;;  %v2233_v41 = vld [vmem:[%s2756_s1 + $0x50] ss:$12 sps:$4 sm:$0xff]  }
  0x14   : > { %2052 = vmatprep.subr.bf16.mxu1 %v2316_v18  ;;  %v2234_v42 = vld [vmem:[%s2756_s1 + $0x38] ss:$12 sps:$4 sm:$0xff]   ;;  %v2235_v43 = vld [vmem:[%s2756_s1 + $0x20] ss:$12 sps:$4 sm:$0xff]   ;;  %v2236_v44 = vld [vmem:[%s2756_s1 + $0x8] ss:$12 sps:$4 sm:$0xff]  }
  0x15   : > { %691 = vmatpush1.bf16.msra.mxu0 %v2212_v6  ;;  %v544_v25 = vrot.slane %v2478_v23, %v543_v21  ;;  %v540_v32 = vrot.slane %v2478_v23, %v539_v28  ;;  %vm823_vm2 = vcmask 130048   ;;  %v547_v63 = vsub.s32 2, %v2472_v20  ;;  %s1903_s24 = sshll.u32 %s2772_s22, 3 }
  0x16   : > { %692 = vmatprep.subr.bf16.mxu0 %v2213_v7  ;;  %vm899_vm3 = vcmask 257024   ;;  %vm1040_vm4 = vcmask 519424   ;;  %vm1178_vm5 = vcmask 781824   ;;  %vm1316_vm6 = vcmask 1044224  }
  0x17   : > { %2053 = vmatpush3.bf16.msra.mxu1 %v2230_v38  ;;  %v548_v1 = vrot.slane %v2478_v23, %v547_v63  ;;  %vm1637_vm7 = vcmask 523264  }
  0x18   : > { %2054 = vmatprep.subr.bf16.mxu1 %v2316_v18 }
  0x19   : > { %693 = vmatpush1.bf16.msra.mxu0 %v2215_v8 }
  0x1a   : > { %694 = vmatprep.subr.bf16.mxu0 %v2216_v9 }
  0x1b   : > { %2055 = vmatpush3.bf16.msra.mxu1 %v2231_v39 }
  0x1c   : > { %2056 = vmatprep.subr.bf16.mxu1 %v2316_v18 }
  0x1d   : > { %695 = vmatpush1.bf16.msra.mxu0 %v2218_v10 }
  0x1e   : > { %696 = vmatprep.subr.bf16.mxu0 %v2219_v11 }
  0x1f   : > { %2057 = vmatpush3.bf16.msra.mxu1 %v2232_v40 }
  0x20   : > { %2058 = vmatprep.subr.bf16.mxu1 %v2316_v18 }
  0x21   : > { %697 = vmatpush1.bf16.msra.mxu0 %v2221_v12 }
  0x22   : > { %698 = vmatprep.subr.bf16.mxu0 %v2222_v13 }
  0x23   : > { %2059 = vmatpush3.bf16.msra.mxu1 %v2233_v41 }
  0x24   : > { %2060 = vmatprep.subr.bf16.mxu1 %v2316_v18 }
  0x25   : > { %699 = vmatpush1.bf16.msra.mxu0 %v2224_v14 }
  0x26   : > { %700 = vmatprep.subr.bf16.mxu0 %v2225_v15 }
  0x27   : > { %2061 = vmatpush3.bf16.msra.mxu1 %v2234_v42 }
  0x28   : > { %2062 = vmatprep.subr.bf16.mxu1 %v2316_v18 }
  0x29   : > { %701 = vmatpush1.bf16.msra.mxu0 %v2227_v16 }
  0x2a   : > { %2070 = vmatprep.subr.bf16.mxu0 %v2316_v18 }
  0x2b   : > { %2063 = vmatpush3.bf16.msra.mxu1 %v2235_v43 }
  0x2c   : > { %719 = vmatmul.mubr.bf16.vlgmr.msra.gmra.mxu0 %v2463_v17  ;;  %2064 = vmatprep.subr.bf16.mxu1 %v2316_v18 }
  0x2d   : > { %2072 = vmatprep.mubr.msk.bf16.mxu0 %vm2317_vm0, %v2316_v18 }
  0x2f   : > { %2065 = vmatpush3.bf16.msra.mxu1 %v2236_v44 }
  0x30   : > { %2088 = vmatprep.subr.bf16.mxu1 %v2316_v18 }
  0x32   : > { %2067 = vmatmul.mubr.bf16.vlgmr.msra.gmra.mxu1 %v2463_v17 }
  0x33   : > { %2090 = vmatprep.mubr.msk.bf16.mxu1 %vm2317_vm0, %v2316_v18 }
  0xec   : > { %v720_v22 = vpop.f32.mrf.mxu0 }
  0xed   : > { %v721_v35 = vadd.f32 %v720_v22, %v540_v32 }
  0xee   : > { %v722_v24 = vpop.f32.mrf.mxu0 }
  0xef   : > { %v723_v29 = vadd.f32 %v722_v24, %v544_v25 }
  0xf0   : > { %v724_v26 = vpop.f32.mrf.mxu0 }
  0xf1   : > { %v725_v34 = vadd.f32 %v724_v26, %v540_v32 }
  0xf2   : > { %v726_v27 = vpop.f32.mrf.mxu0  ;;  %v763_v0 = vpop.f32.mrf.mxu1 }
  0xf3   : > { %v727_v30 = vadd.f32 %v726_v27, %v544_v25  ;;  %v2488_v36 = vpack.c.bf16 %v725_v34, %v721_v35  ;;  %v764_v3 = vadd.f32 %v763_v0, %v548_v1 }
  0xf4   : > { %v2068_v2 = vpop.f32.mrf.mxu1 }
  0xf5   : > { %v2482_v31 = vpack.c.bf16 %v727_v30, %v723_v29 }
  0xf6   : > { %v766_v4 = vpop.f32.mrf.mxu1 }
  0xf7   : > { %v778_v33 = vsel %vm773_vm1, %v2482_v31, 0  ;;  %v767_v5 = vadd.f32 %v766_v4, %v548_v1 }
  0xf8   : > { %2071 = vmatpush3.bf16.xpose.msra.mxu0 %v778_v33  ;;  %v2069_v6 = vpop.f32.mrf.mxu1 }
  0xf9   : > { %2076 = vmatprep.subr.bf16.mxu0 %v2316_v18  ;;  %v2539_v7 = vpack.c.bf16 %v767_v5, %v764_v3 }
  0xff   : > { %2073 = vmatmul.mubr.msk.bf16.vlgmr.msra.gmra.mxu0 %vm773_vm1, %v2488_v36 }
 0x100   : > { %2078 = vmatprep.mubr.msk.bf16.mxu0 %vm2317_vm0, %v2316_v18  ;;  %2077 = vmatpush3.bf16.msra.mxu0 %v2539_v7 }
 0x101   : > { %2082 = vmatprep.subr.bf16.mxu0 %v2316_v18 }
 0x1bf   : > { %v814_v45 = vpop.f32.mrf.mxu0 }
 0x1c0   : > { %v821_v46 = vmul.f32 0.17677669, %v814_v45 }
 0x1c1   : > { %v2074_v47 = vpop.f32.mrf.mxu0 }
 0x1c2   : > { %v824_v48 = vsel %vm823_vm2, %v821_v46, -inf }
 0x1c3   : > { %825 = vmax.xlane.f32.xlu0 %v824_v48  ;;  %v817_v49 = vpop.f32.mrf.mxu0 }
 0x1c4   : > { %v822_v50 = vmul.f32 0.17677669, %v817_v49 }
 0x1c5   : > { %v2075_v51 = vpop.f32.mrf.mxu0 }
 0x1c6   : > { %v827_v52 = vsel %vm823_vm2, %v822_v50, -inf }
 0x1c7   : > { %828 = vmax.xlane.f32.xlu0 %v827_v52 }
 0x1dd   : > { %906 = vrot.lane.b32.xlu0 %v2482_v31, %s2318_s23 }
 0x1e1   : > { %1183 = vrot.lane.b32.xlu0 %v2482_v31, %s2319_s25 }
 0x24c   : > { %v826_v53 = vpop.xlane.xlu0 %825 }
 0x24d   : > { %v830_v54 = vsub.f32 %v821_v46, %v826_v53 }
 0x24f   : > { %v832_v55 = vmul.f32 1.442695, %v830_v54 }
 0x250   : > { %v829_v56 = vpop.xlane.xlu0 %828 }
 0x251   : > { %2267 = vpow2.f32 %v832_v55  ;;  %v831_v57 = vsub.f32 %v822_v50, %v829_v56 }
 0x253   : > { %v834_v58 = vmul.f32 1.442695, %v831_v57 }
 0x254   : > { %v907_v14 = vpop.permute.xlu0 %906 }
 0x255   : > { %2269 = vpow2.f32 %v834_v58  ;;  %v912_v19 = vsel %vm773_vm1, %v907_v14, 0 }
 0x258   : > { %v1184_v22 = vpop.permute.xlu0 %1183 }
 0x259   : > { %v1189_v24 = vsel %vm773_vm1, %v1184_v22, 0 }
 0x25e   : > { %v2268_v59 = vpop.eup %2267 }
 0x25f   : > { %v836_v60 = vsel %vm823_vm2, %v2268_v59, 0.0 }
 0x260   : > { %837 = vadd.xlane.f32.xlu1 %v836_v60 }
 0x262   : > { %v2270_v61 = vpop.eup %2269 }
 0x263   : > { %v839_v62 = vsel %vm823_vm2, %v2270_v61, 0.0 }
 0x264   : > { %840 = vadd.xlane.f32.xlu1 %v839_v62 }
 0x275   : > { %903 = vrot.lane.b32.xlu1 %v2488_v36, %s2318_s23 }
 0x279   : > { %1045 = vrot.lane.b32.xlu1 %v2482_v31, %s2320_s26 }
 0x27d   : > { %1043 = vrot.lane.b32.xlu1 %v2488_v36, %s2320_s26 }
 0x281   : > { %1181 = vrot.lane.b32.xlu1 %v2488_v36, %s2319_s25 }
 0x2e9   : > { %v838_v8 = vpop.xlane.xlu1 %837 }
 0x2ea   : > { %2271 = vrcp.f32 %v838_v8 }
 0x2ed   : > { %v841_v9 = vpop.xlane.xlu1 %840 }
 0x2ee   : > { %2273 = vrcp.f32 %v841_v9 }
 0x2f1   : > { %v904_v16 = vpop.permute.xlu1 %903 }
 0x2f5   : > { %v1046_v20 = vpop.permute.xlu1 %1045 }
 0x2f6   : > { %v1051_v21 = vsel %vm773_vm1, %v1046_v20, 0 }
 0x2f7   : > { %v2272_v10 = vpop.eup %2271 }
 0x2f8   : > { %v844_v12 = vmul.f32 %v2272_v10, %v2268_v59 }
 0x2f9   : > { %v1044_v23 = vpop.permute.xlu1 %1043 }
 0x2fb   : > { %v2274_v11 = vpop.eup %2273 }
 0x2fc   : > { %v845_v13 = vmul.f32 %v2274_v11, %v2270_v61 }
 0x2fd   : > { %v1182_v25 = vpop.permute.xlu1 %1181 }
 0x2fe   : > { %v846_v15 = vpack.c.bf16 %v845_v13, %v844_v12 }
 0x300   : > { %2079 = vmatmul.mubr.msk.bf16.vlgmr.msra.gmra.mxu0 %vm823_vm2, %v846_v15 }
 0x301   : > { %2083 = vmatpush3.bf16.xpose.msra.mxu0 %v912_v19  ;;  %2084 = vmatprep.mubr.msk.bf16.mxu0 %vm2317_vm0, %v2316_v18 }
 0x302   : > { %2094 = vmatprep.subr.bf16.mxu0 %v2316_v18 }
 0x308   : > { %2085 = vmatmul.mubr.msk.bf16.vlgmr.msra.gmra.mxu0 %vm773_vm1, %v904_v16 }
 0x309   : > { %2095 = vmatpush3.bf16.xpose.msra.mxu0 %v1051_v21  ;;  %2096 = vmatprep.mubr.msk.bf16.mxu0 %vm2317_vm0, %v2316_v18 }
 0x30a   : > { %2106 = vmatprep.subr.bf16.mxu0 %v2316_v18 }
 0x310   : > { %2097 = vmatmul.mubr.msk.bf16.vlgmr.msra.gmra.mxu0 %vm773_vm1, %v1044_v23 }
 0x311   : > { %2107 = vmatpush3.bf16.xpose.msra.mxu0 %v1189_v24  ;;  %2108 = vmatprep.mubr.msk.bf16.mxu0 %vm2317_vm0, %v2316_v18 }
 0x312   : > { %2118 = vmatprep.subr.bf16.mxu0 %v2316_v18 }
 0x318   : > { %2109 = vmatmul.mubr.msk.bf16.vlgmr.msra.gmra.mxu0 %vm773_vm1, %v1182_v25 }
 0x319   : > { %2134 = vmatprep.mubr.msk.bf16.mxu0 %vm2317_vm0, %v2316_v18 }
 0x3c0   : > { %v884_v26 = vpop.f32.mrf.mxu0 }
 0x3c1   : > { %v1985_v27 = vpack.c.bf16 %v884_v26, %v884_v26 }
 0x3c2   : > { %v2080_v28 = vpop.f32.mrf.mxu0 }
 0x3c3   : > { %900 = vst.msk [vmem:[#allocation2] sm:$0xf] %vm899_vm3, %v1985_v27 }
 0x3c4   : > { %v887_v29 = vpop.f32.mrf.mxu0 }
 0x3c5   : > { %v1986_v30 = vpack.c.bf16 %v887_v29, %v887_v29 }
 0x3c6   : > { %v2081_v31 = vpop.f32.mrf.mxu0 }
 0x3c7   : > { %901 = vst.msk [vmem:[#allocation2 + $0x4] sm:$0xf] %vm899_vm3, %v1986_v30 }
 0x3c8   : > { %v948_v32 = vpop.f32.mrf.mxu0 }
 0x3c9   : > { %v955_v33 = vmul.f32 0.17677669, %v948_v32 }
 0x3ca   : > { %v2086_v34 = vpop.f32.mrf.mxu0 }
 0x3cb   : > { %v957_v35 = vsel %vm823_vm2, %v955_v33, -inf }
 0x3cc   : > { %958 = vmax.xlane.f32.xlu0 %v957_v35  ;;  %v951_v36 = vpop.f32.mrf.mxu0 }
 0x3cd   : > { %v956_v37 = vmul.f32 0.17677669, %v951_v36 }
 0x3ce   : > { %v2087_v38 = vpop.f32.mrf.mxu0 }
 0x3cf   : > { %v960_v39 = vsel %vm823_vm2, %v956_v37, -inf }
 0x3d0   : > { %961 = vmax.xlane.f32.xlu1 %v960_v39  ;;  %v1087_v40 = vpop.f32.mrf.mxu0 }
 0x3d1   : > { %v1094_v41 = vmul.f32 0.17677669, %v1087_v40 }
 0x3d2   : > { %v2098_v42 = vpop.f32.mrf.mxu0 }
 0x3d3   : > { %v1096_v43 = vsel %vm823_vm2, %v1094_v41, -inf }
 0x3d4   : > { %1097 = vmax.xlane.f32.xlu0 %v1096_v43  ;;  %v1090_v44 = vpop.f32.mrf.mxu0 }
 0x3d5   : > { %v1095_v45 = vmul.f32 0.17677669, %v1090_v44 }
 0x3d6   : > { %v2099_v46 = vpop.f32.mrf.mxu0 }
 0x3d7   : > { %v1099_v47 = vsel %vm823_vm2, %v1095_v45, -inf }
 0x3d8   : > { %1100 = vmax.xlane.f32.xlu0 %v1099_v47  ;;  %v1225_v48 = vpop.f32.mrf.mxu0 }
 0x3d9   : > { %v1232_v49 = vmul.f32 0.17677669, %v1225_v48 }
 0x3da   : > { %v2110_v50 = vpop.f32.mrf.mxu0 }
 0x3db   : > { %v1234_v51 = vsel %vm823_vm2, %v1232_v49, -inf }
 0x3dc   : > { %1235 = vmax.xlane.f32.xlu0 %v1234_v51  ;;  %v1228_v52 = vpop.f32.mrf.mxu0  ;;  %v2237_v51 = vld [vmem:[%s2758_s3 + $0x38] sm:$0xff]  }
 0x3dd   : > { %v1233_v53 = vmul.f32 0.17677669, %v1228_v52  ;;  %2119 = vmatpush3.bf16.msra.mxu0 %v2237_v51 }
 0x3de   : > { %v2111_v54 = vpop.f32.mrf.mxu0  ;;  %2120 = vmatprep.subr.bf16.mxu0 %v2316_v18 }
 0x3df   : > { %v1237_v55 = vsel %vm823_vm2, %v1233_v53, -inf }
 0x3e0   : > { %1238 = vmax.xlane.f32.xlu1 %v1237_v55 }
 0x455   : > { %v959_v56 = vpop.xlane.xlu0 %958 }
 0x456   : > { %v963_v57 = vsub.f32 %v955_v33, %v959_v56 }
 0x458   : > { %v965_v58 = vmul.f32 1.442695, %v963_v57  ;;  %v2239_v57 = vld [vmem:[%s2758_s3 + $0x28] sm:$0xff]  }
 0x459   : > { %v962_v59 = vpop.xlane.xlu1 %961 }
 0x45a   : > { %2275 = vpow2.f32 %v965_v58  ;;  %v964_v60 = vsub.f32 %v956_v37, %v962_v59 }
 0x45c   : > { %v967_v61 = vmul.f32 1.442695, %v964_v60 }
 0x45d   : > { %v1098_v62 = vpop.xlane.xlu0 %1097 }
 0x45e   : > { %2277 = vpow2.f32 %v967_v61  ;;  %v1102_v63 = vsub.f32 %v1094_v41, %v1098_v62  ;;  %v2240_v61 = vld [vmem:[%s2758_s3 + $0x20] sm:$0xff]  }
 0x460   : > { %v1104_v0 = vmul.f32 1.442695, %v1102_v63 }
 0x461   : > { %v1101_v1 = vpop.xlane.xlu0 %1100 }
 0x462   : > { %2279 = vpow2.f32 %v1104_v0  ;;  %v1103_v2 = vsub.f32 %v1095_v45, %v1101_v1  ;;  %v2241_v0 = vld [vmem:[%s2758_s3 + $0x18] sm:$0xff]   ;;  %v2242_v1 = vld [vmem:[%s2758_s3 + $0x10] sm:$0xff]  }
 0x464   : > { %v1106_v3 = vmul.f32 1.442695, %v1103_v2  ;;  %v2243_v2 = vld [vmem:[%s2758_s3 + $0x8] sm:$0xff]  }
 0x465   : > { %v1236_v4 = vpop.xlane.xlu0 %1235 }
 0x466   : > { %2281 = vpow2.f32 %v1106_v3  ;;  %v1240_v5 = vsub.f32 %v1232_v49, %v1236_v4  ;;  %v2244_v3 = vld [vmem:[%s2758_s3] sm:$0xff]  }
 0x467   : > { %v2276_v6 = vpop.eup %2275 }
 0x468   : > { %v1242_v8 = vmul.f32 1.442695, %v1240_v5  ;;  %v969_v9 = vsel %vm823_vm2, %v2276_v6, 0.0 }
 0x469   : > { %970 = vadd.xlane.f32.xlu0 %v969_v9  ;;  %v1239_v20 = vpop.xlane.xlu1 %1238 }
 0x46a   : > { %2283 = vpow2.f32 %v1242_v8  ;;  %v1241_v21 = vsub.f32 %v1233_v53, %v1239_v20  ;;  %v2238_v53 = vld [vmem:[%s2758_s3 + $0x30] sm:$0xff]   ;;  %v1945_v20 = vld [vmem:[%s2759_s4] ss:$0 sm:$0xff] }
 0x46b   : > { %v2278_v10 = vpop.eup %2277  ;;  %2121 = vmatpush3.bf16.msra.mxu0 %v2238_v53 }
 0x46c   : > { %v972_v11 = vsel %vm823_vm2, %v2278_v10, 0.0  ;;  %v1244_v22 = vmul.f32 1.442695, %v1241_v21  ;;  %2122 = vmatprep.subr.bf16.mxu0 %v2316_v18  ;;  %v501_v21 = vunpack.c.l.bf16 %v2463_v17 }
 0x46d   : > { %973 = vadd.xlane.f32.xlu1 %v972_v11 }
 0x46e   : > { %2285 = vpow2.f32 %v1244_v22 }
 0x46f   : > { %v2280_v12 = vpop.eup %2279  ;;  %2123 = vmatpush3.bf16.msra.mxu0 %v2239_v57 }
 0x470   : > { %v1108_v13 = vsel %vm823_vm2, %v2280_v12, 0.0  ;;  %2124 = vmatprep.subr.bf16.mxu0 %v2316_v18 }
 0x471   : > { %1109 = vadd.xlane.f32.xlu0 %v1108_v13 }
 0x473   : > { %v2282_v14 = vpop.eup %2281  ;;  %2125 = vmatpush3.bf16.msra.mxu0 %v2240_v61 }
 0x474   : > { %v1111_v15 = vsel %vm823_vm2, %v2282_v14, 0.0  ;;  %2126 = vmatprep.subr.bf16.mxu0 %v2316_v18 }
 0x475   : > { %1112 = vadd.xlane.f32.xlu1 %v1111_v15 }
 0x477   : > { %v2284_v16 = vpop.eup %2283  ;;  %2127 = vmatpush3.bf16.msra.mxu0 %v2241_v0  ;;  %v2256_v0 = vld [vmem:[%s2764_s9 + $0x8] sm:$0xff]  }
 0x478   : > { %v1246_v19 = vsel %vm823_vm2, %v2284_v16, 0.0  ;;  %2128 = vmatprep.subr.bf16.mxu0 %v2316_v18 }
 0x479   : > { %1247 = vadd.xlane.f32.xlu0 %v1246_v19 }
 0x47b   : > { %v2286_v23 = vpop.eup %2285  ;;  %2129 = vmatpush3.bf16.msra.mxu0 %v2242_v1  ;;  %v2257_v1 = vld [vmem:[%s2764_s9] sm:$0xff]  }
 0x47c   : > { %v1249_v24 = vsel %vm823_vm2, %v2286_v23, 0.0  ;;  %2130 = vmatprep.subr.bf16.mxu0 %v2316_v18 }
 0x47f   : > { %2131 = vmatpush3.bf16.msra.mxu0 %v2243_v2  ;;  %v1957_v2 = vld [vmem:[%s2763_s8] ss:$0 sm:$0xff] }
 0x480   : > { %2132 = vmatprep.subr.bf16.mxu0 %v2316_v18 }
 0x483   : > { %2133 = vmatpush3.bf16.msra.mxu0 %v2244_v3 }
 0x484   : > { %2158 = vmatprep.subr.bf16.mxu0 %v2316_v18 }
 0x486   : > { %1119 = vrot.lane.b32.xlu1 %v2539_v7, %s2320_s26 }
 0x48f   : > { %981 = vrot.lane.b32.xlu0 %v2539_v7, %s2318_s23 }
 0x4aa   : > { %1250 = vadd.xlane.f32.xlu1 %v1249_v24 }
 0x4bb   : > { %1257 = vrot.lane.b32.xlu1 %v2539_v7, %s2319_s25 }
 0x4f2   : > { %v971_v25 = vpop.xlane.xlu0 %970 }
 0x4f3   : > { %2287 = vrcp.f32 %v971_v25 }
 0x4f6   : > { %v974_v26 = vpop.xlane.xlu1 %973 }
 0x4f7   : > { %2289 = vrcp.f32 %v974_v26  ;;  %v502_v26 = vunpack.c.h.bf16 %v2463_v17 }
 0x4fa   : > { %v1110_v27 = vpop.xlane.xlu0 %1109 }
 0x4fb   : > { %2291 = vrcp.f32 %v1110_v27 }
 0x4fe   : > { %v1113_v28 = vpop.xlane.xlu1 %1112 }
 0x4ff   : > { %2293 = vrcp.f32 %v1113_v28 }
 0x500   : > { %v2288_v29 = vpop.eup %2287 }
 0x501   : > { %v977_v32 = vmul.f32 %v2288_v29, %v2276_v6 }
 0x502   : > { %v1248_v30 = vpop.xlane.xlu0 %1247  ;;  %v1120_v7 = vpop.permute.xlu1 %1119 }
 0x503   : > { %2295 = vrcp.f32 %v1248_v30 }
 0x504   : > { %v2290_v31 = vpop.eup %2289 }
 0x505   : > { %v978_v33 = vmul.f32 %v2290_v31, %v2278_v10  ;;  %v2246_v31 = vld [vmem:[%s2762_s7 + $0x38] sm:$0xff]  }
 0x506   : > { %v982_v34 = vpop.permute.xlu0 %981 }
 0x507   : > { %2089 = vmatpush3.bf16.msra.mxu1 %v982_v34  ;;  %v979_v35 = vpack.c.bf16 %v978_v33, %v977_v32 }
 0x508   : > { %2100 = vmatprep.subr.bf16.mxu1 %v2316_v18  ;;  %v2292_v36 = vpop.eup %2291 }
 0x509   : > { %v1116_v38 = vmul.f32 %v2292_v36, %v2280_v12 }
 0x50a   : > { %2091 = vmatmul.mubr.msk.bf16.vlgmr.msra.gmra.mxu1 %vm823_vm2, %v979_v35 }
 0x50b   : > { %2101 = vmatpush3.bf16.msra.mxu1 %v1120_v7  ;;  %2102 = vmatprep.mubr.msk.bf16.mxu1 %vm2317_vm0, %v2316_v18 }
 0x50c   : > { %v2294_v37 = vpop.eup %2293  ;;  %2112 = vmatprep.subr.bf16.mxu1 %v2316_v18 }
 0x50d   : > { %v1117_v39 = vmul.f32 %v2294_v37, %v2282_v14 }
 0x50f   : > { %v1118_v40 = vpack.c.bf16 %v1117_v39, %v1116_v38  ;;  %v2247_v38 = vld [vmem:[%s2762_s7 + $0x30] sm:$0xff]   ;;  %v2248_v39 = vld [vmem:[%s2762_s7 + $0x28] sm:$0xff]  }
 0x510   : > { %v2296_v43 = vpop.eup %2295 }
 0x511   : > { %v1254_v45 = vmul.f32 %v2296_v43, %v2284_v16  ;;  %v2252_v43 = vld [vmem:[%s2762_s7 + $0x8] sm:$0xff]  }
 0x512   : > { %2103 = vmatmul.mubr.msk.bf16.vlgmr.msra.gmra.mxu1 %vm823_vm2, %v1118_v40  ;;  %v2249_v40 = vld [vmem:[%s2762_s7 + $0x20] sm:$0xff]  }
 0x513   : > { %2114 = vmatprep.mubr.msk.bf16.mxu1 %vm2317_vm0, %v2316_v18 }
 0x533   : > { %v1251_v41 = vpop.xlane.xlu1 %1250 }
 0x534   : > { %2297 = vrcp.f32 %v1251_v41  ;;  %v2250_v41 = vld [vmem:[%s2762_s7 + $0x18] sm:$0xff]  }
 0x537   : > { %v1258_v42 = vpop.permute.xlu1 %1257 }
 0x538   : > { %2113 = vmatpush3.bf16.msra.mxu1 %v1258_v42  ;;  %v2251_v42 = vld [vmem:[%s2762_s7 + $0x10] sm:$0xff]  }
 0x539   : > { %2138 = vmatprep.subr.bf16.mxu1 %v2316_v18 }
 0x541   : > { %v2298_v44 = vpop.eup %2297 }
 0x542   : > { %v1255_v46 = vmul.f32 %v2298_v44, %v2286_v23  ;;  %v2253_v44 = vld [vmem:[%s2762_s7] sm:$0xff]  }
 0x544   : > { %v1256_v47 = vpack.c.bf16 %v1255_v46, %v1254_v45  ;;  %v2254_v45 = vld [vmem:[%s2764_s9 + $0x18] sm:$0xff]  }
 0x546   : > { %2115 = vmatmul.mubr.msk.bf16.vlgmr.msra.gmra.mxu1 %vm823_vm2, %v1256_v47 }
 0x547   : > { %2154 = vmatprep.mubr.msk.bf16.mxu1 %vm2317_vm0, %v2316_v18  ;;  %2139 = vmatpush3.bf16.msra.mxu1 %v2246_v31 }
 0x548   : > { %2140 = vmatprep.subr.bf16.mxu1 %v2316_v18 }
 0x54b   : > { %2141 = vmatpush3.bf16.msra.mxu1 %v2247_v38 }
 0x54c   : > { %2142 = vmatprep.subr.bf16.mxu1 %v2316_v18 }
 0x54f   : > { %2143 = vmatpush3.bf16.msra.mxu1 %v2248_v39 }
 0x550   : > { %2144 = vmatprep.subr.bf16.mxu1 %v2316_v18 }
 0x553   : > { %2145 = vmatpush3.bf16.msra.mxu1 %v2249_v40 }
 0x554   : > { %2146 = vmatprep.subr.bf16.mxu1 %v2316_v18 }
 0x557   : > { %2147 = vmatpush3.bf16.msra.mxu1 %v2250_v41 }
 0x558   : > { %2148 = vmatprep.subr.bf16.mxu1 %v2316_v18 }
 0x55b   : > { %2149 = vmatpush3.bf16.msra.mxu1 %v2251_v42 }
 0x55c   : > { %2150 = vmatprep.subr.bf16.mxu1 %v2316_v18 }
 0x55f   : > { %2151 = vmatpush3.bf16.msra.mxu1 %v2252_v43 }
 0x560   : > { %2152 = vmatprep.subr.bf16.mxu1 %v2316_v18 }
 0x563   : > { %2153 = vmatpush3.bf16.msra.mxu1 %v2253_v44 }
 0x564   : > { %2170 = vmatprep.subr.bf16.mxu1 %v2316_v18 }
 0x5ca   : > { %v1021_v48 = vpop.f32.mrf.mxu1 }
 0x5cb   : > { %v1987_v49 = vpack.c.bf16 %v1021_v48, %v1021_v48 }
 0x5cc   : > { %v2092_v50 = vpop.f32.mrf.mxu1 }
 0x5cd   : > { %1034 = vrot.lane.b32.xlu1 %v1987_v49, %s2319_s25 }
 0x5ce   : > { %v1024_v52 = vpop.f32.mrf.mxu1 }
 0x5cf   : > { %v1988_v54 = vpack.c.bf16 %v1024_v52, %v1024_v52 }
 0x5d0   : > { %v2093_v55 = vpop.f32.mrf.mxu1 }
 0x5d1   : > { %1036 = vrot.lane.b32.xlu0 %v1988_v54, %s2319_s25  ;;  %v1955_v54 = vld [vmem:[%s2760_s5] ss:$0 sm:$0xff]  ;;  %s496_s25 = scalar_lea.vmem %s2770_s15, %s1903_s24 }
 0x5d2   : > { %v1159_v56 = vpop.f32.mrf.mxu1 }
 0x5d3   : > { %v1989_v58 = vpack.c.bf16 %v1159_v56, %v1159_v56 }
 0x5d4   : > { %v2104_v59 = vpop.f32.mrf.mxu1 }
 0x5d5   : > { %1172 = vrot.lane.b32.xlu1 %v1989_v58, %s2320_s26  ;;  %v1956_v58 = vld [vmem:[%s2761_s6] ss:$0 sm:$0xff] }
 0x5d6   : > { %v1162_v60 = vpop.f32.mrf.mxu1 }
 0x5d7   : > { %v1990_v62 = vpack.c.bf16 %v1162_v60, %v1162_v60 }
 0x5d8   : > { %v2105_v63 = vpop.f32.mrf.mxu1 }
 0x5d9   : > { %1174 = vrot.lane.b32.xlu0 %v1990_v62, %s2320_s26  ;;  %v2255_v63 = vld [vmem:[%s2764_s9 + $0x10] sm:$0xff]  }
 0x606   : > { %v1297_v4 = vpop.f32.mrf.mxu1 }
 0x607   : > { %v1991_v5 = vpack.c.bf16 %v1297_v4, %v1297_v4 }
 0x608   : > { %v2116_v6 = vpop.f32.mrf.mxu1 }
 0x609   : > { %1310 = vrot.lane.b32.xlu1 %v1991_v5, %s2318_s23 }
 0x60a   : > { %v1300_v8 = vpop.f32.mrf.mxu1 }
 0x60b   : > { %v1992_v9 = vpack.c.bf16 %v1300_v8, %v1300_v8 }
 0x60c   : > { %v2117_v10 = vpop.f32.mrf.mxu1 }
 0x60d   : > { %1312 = vrot.lane.b32.xlu0 %v1992_v9, %s2318_s23 }
 0x63f   : > { %v1035_v11 = vpop.permute.xlu1 %1034 }
 0x640   : > { %1041 = vst.msk [vmem:[#allocation2] sm:$0xf] %vm1040_vm4, %v1035_v11 }
 0x643   : > { %v1037_v12 = vpop.permute.xlu0 %1036 }
 0x644   : > { %1042 = vst.msk [vmem:[#allocation2 + $0x4] sm:$0xf] %vm1040_vm4, %v1037_v12 }
 0x647   : > { %v1173_v13 = vpop.permute.xlu1 %1172 }
 0x648   : > { %1179 = vst.msk [vmem:[#allocation2] sm:$0xf] %vm1178_vm5, %v1173_v13  ;;  %v1966_v13 = vld [vmem:[%s2765_s10] ss:$0 sm:$0xff] }
 0x64b   : > { %v1175_v14 = vpop.permute.xlu0 %1174 }
 0x64c   : > { %1180 = vst.msk [vmem:[#allocation2 + $0x4] sm:$0xf] %vm1178_vm5, %v1175_v14 }
 0x67b   : > { %v1311_v15 = vpop.permute.xlu1 %1310 }
 0x67c   : > { %1317 = vst.msk [vmem:[#allocation2] sm:$0xf] %vm1316_vm6, %v1311_v15 }
 0x67f   : > { %v1313_v16 = vpop.permute.xlu0 %1312 }
 0x680   : > { %1318 = vst.msk [vmem:[#allocation2 + $0x4] sm:$0xf] %vm1316_vm6, %v1313_v16 }
 0x687   : > { %v2245_v19 = vld [vmem:[#allocation2] sm:$0xff]  }
 0x688   : > { %2135 = vmatmul.mubr.bf16.vlgmr.msra.gmra.mxu0 %v2245_v19 }
 0x689   : > { %2166 = vmatprep.mubr.msk.bf16.mxu0 %vm2317_vm0, %v2316_v18  ;;  %2159 = vmatpush3.bf16.msra.mxu0 %v2254_v45 }
 0x68a   : > { %2160 = vmatprep.subr.bf16.mxu0 %v2316_v18 }
 0x68d   : > { %2161 = vmatpush3.bf16.msra.mxu0 %v2255_v63 }
 0x68e   : > { %2162 = vmatprep.subr.bf16.mxu0 %v2316_v18 }
 0x691   : > { %2163 = vmatpush3.bf16.msra.mxu0 %v2256_v0 }
 0x692   : > { %2164 = vmatprep.subr.bf16.mxu0 %v2316_v18 }
 0x695   : > { %2165 = vmatpush3.bf16.msra.mxu0 %v2257_v1 }
 0x748   : > { %v1432_v22 = vpop.f32.mrf.mxu0 }
 0x749   : > { %v1433_v23 = vadd.f32 %v1945_v20, %v1432_v22 }
 0x74a   : > { %v2136_v24 = vpop.f32.mrf.mxu0 }
 0x74b   : > { %v1439_v25 = vadd.f32 %v1433_v23, %v501_v21  ;;  %v2258_v24 = vld [vmem:[%s2768_s13 + $0x38] sm:$0xff]  }
 0x74c   : > { %v1435_v27 = vpop.f32.mrf.mxu0 }
 0x74d   : > { %v1436_v28 = vadd.f32 %v1945_v20, %v1435_v27  ;;  %1441 = vadd.xlane.f32.xlu1 %v1439_v25 }
 0x74e   : > { %v2137_v29 = vpop.f32.mrf.mxu0 }
 0x74f   : > { %v1440_v30 = vadd.f32 %v1436_v28, %v502_v26 }
 0x751   : > { %1443 = vadd.xlane.f32.xlu0 %v1440_v30 }
 0x7d6   : > { %v1442_v32 = vpop.xlane.xlu1 %1441 }
 0x7d7   : > { %v1446_v33 = vmul.f32 0.0078125, %v1442_v32 }
 0x7d9   : > { %v1448_v34 = vsub.f32 %v1439_v25, %v1446_v33  ;;  %v2259_v33 = vld [vmem:[%s2768_s13 + $0x30] sm:$0xff]  }
 0x7da   : > { %v1444_v35 = vpop.xlane.xlu0 %1443 }
 0x7db   : > { %v1447_v36 = vmul.f32 0.0078125, %v1444_v35  ;;  %v1450_v7 = vmul.f32 %v1448_v34, %v1448_v34  ;;  %v2261_v35 = vld [vmem:[%s2768_s13 + $0x20] sm:$0xff]  }
 0x7dd   : > { %v1449_v17 = vsub.f32 %v1440_v30, %v1447_v36  ;;  %1452 = vadd.xlane.f32.xlu0 %v1450_v7  ;;  %v2262_v36 = vld [vmem:[%s2768_s13 + $0x18] sm:$0xff]   ;;  %v2263_v7 = vld [vmem:[%s2768_s13 + $0x10] sm:$0xff]  }
 0x7df   : > { %v1451_v37 = vmul.f32 %v1449_v17, %v1449_v17 }
 0x7e1   : > { %1454 = vadd.xlane.f32.xlu0 %v1451_v37  ;;  %v2265_v37 = vld [vmem:[%s2768_s13] sm:$0xff]  }
 0x866   : > { %v1453_v46 = vpop.xlane.xlu0 %1452 }
 0x867   : > { %v1456_v47 = vmul.f32 0.0078125, %v1453_v46  ;;  %v1972_v46 = vld [vmem:[%s2766_s11] ss:$0 sm:$0xff] }
 0x869   : > { %v1458_v48 = vadd.f32 1e-05, %v1456_v47 }
 0x86a   : > { %v1455_v49 = vpop.xlane.xlu0 %1454 }
 0x86b   : > { %2299 = vrsqrt.f32 %v1458_v48  ;;  %v1457_v50 = vmul.f32 0.0078125, %v1455_v49 }
 0x86d   : > { %v1459_v51 = vadd.f32 1e-05, %v1457_v50 }
 0x86f   : > { %2301 = vrsqrt.f32 %v1459_v51 }
 0x878   : > { %v2300_v52 = vpop.eup %2299 }
 0x879   : > { %v1462_v53 = vmul.f32 %v2300_v52, %v1448_v34  ;;  %v2260_v34 = vld [vmem:[%s2768_s13 + $0x28] sm:$0xff]  }
 0x87b   : > { %v1471_v57 = vmul.f32 %v1955_v54, %v1462_v53 }
 0x87c   : > { %v2302_v55 = vpop.eup %2301 }
 0x87d   : > { %v1463_v56 = vmul.f32 %v2302_v55, %v1449_v17  ;;  %v1480_v60 = vadd.f32 %v1956_v58, %v1471_v57  ;;  %v2264_v17 = vld [vmem:[%s2768_s13 + $0x8] sm:$0xff]  }
 0x87f   : > { %v1472_v59 = vmul.f32 %v1955_v54, %v1463_v56  ;;  %v1974_v54 = vld [vmem:[%s2769_s14] ss:$0 sm:$0xff] }
 0x881   : > { %v1481_v61 = vadd.f32 %v1956_v58, %v1472_v59 }
 0x883   : > { %v1482_v62 = vpack.c.bf16 %v1481_v61, %v1480_v60 }
 0x885   : > { %2155 = vmatmul.mubr.bf16.vlgmr.msra.gmra.mxu1 %v1482_v62 }
 0x886   : > { %2186 = vmatprep.mubr.msk.bf16.mxu1 %vm2317_vm0, %v2316_v18  ;;  %2171 = vmatpush3.bf16.msra.mxu1 %v2258_v24 }
 0x887   : > { %2172 = vmatprep.subr.bf16.mxu1 %v2316_v18 }
 0x88a   : > { %2173 = vmatpush3.bf16.msra.mxu1 %v2259_v33 }
 0x88b   : > { %2174 = vmatprep.subr.bf16.mxu1 %v2316_v18 }
 0x88e   : > { %2175 = vmatpush3.bf16.msra.mxu1 %v2260_v34 }
 0x88f   : > { %2176 = vmatprep.subr.bf16.mxu1 %v2316_v18 }
 0x892   : > { %2177 = vmatpush3.bf16.msra.mxu1 %v2261_v35 }
 0x893   : > { %2178 = vmatprep.subr.bf16.mxu1 %v2316_v18 }
 0x896   : > { %2179 = vmatpush3.bf16.msra.mxu1 %v2262_v36 }
 0x897   : > { %2180 = vmatprep.subr.bf16.mxu1 %v2316_v18 }
 0x89a   : > { %2181 = vmatpush3.bf16.msra.mxu1 %v2263_v7 }
 0x89b   : > { %2182 = vmatprep.subr.bf16.mxu1 %v2316_v18 }
 0x89e   : > { %2183 = vmatpush3.bf16.msra.mxu1 %v2264_v17 }
 0x89f   : > { %2184 = vmatprep.subr.bf16.mxu1 %v2316_v18  ;;  %v1973_v18 = vld [vmem:[%s2767_s12] ss:$0 sm:$0xff] }
 0x8a2   : > { %2185 = vmatpush3.bf16.msra.mxu1 %v2265_v37 }
 0x945   : > { %v1588_v3 = vpop.f32.mrf.mxu1 }
 0x946   : > { %v1589_v5 = vadd.f32 %v1957_v2, %v1588_v3 }
 0x947   : > { %v2156_v4 = vpop.f32.mrf.mxu1 }
 0x948   : > { %v1595_v10 = vmax.f32 %v1589_v5, 0.0 }
 0x949   : > { %v1591_v6 = vpop.f32.mrf.mxu1 }
 0x94a   : > { %v1592_v8 = vadd.f32 %v1957_v2, %v1591_v6 }
 0x94b   : > { %v2157_v9 = vpop.f32.mrf.mxu1 }
 0x94c   : > { %v1596_v11 = vmax.f32 %v1592_v8, 0.0 }
 0x94e   : > { %v1597_v12 = vpack.c.bf16 %v1596_v11, %v1595_v10 }
 0x950   : > { %2167 = vmatmul.mubr.msk.bf16.vlgmr.msra.gmra.mxu0 %vm1637_vm7, %v1597_v12 }
 0xa10   : > { %v1675_v14 = vpop.f32.mrf.mxu0 }
 0xa11   : > { %v1676_v15 = vadd.f32 %v1966_v13, %v1675_v14 }
 0xa12   : > { %v2168_v16 = vpop.f32.mrf.mxu0 }
 0xa13   : > { %v1682_v19 = vadd.f32 %v1676_v15, %v1480_v60 }
 0xa14   : > { %v1678_v20 = vpop.f32.mrf.mxu0 }
 0xa15   : > { %v1679_v21 = vadd.f32 %v1966_v13, %v1678_v20  ;;  %1684 = vadd.xlane.f32.xlu1 %v1682_v19 }
 0xa16   : > { %v2169_v22 = vpop.f32.mrf.mxu0 }
 0xa17   : > { %v1683_v23 = vadd.f32 %v1679_v21, %v1481_v61 }
 0xa19   : > { %1686 = vadd.xlane.f32.xlu0 %v1683_v23 }
 0xa9e   : > { %v1685_v25 = vpop.xlane.xlu1 %1684 }
 0xa9f   : > { %v1688_v26 = vmul.f32 0.0078125, %v1685_v25 }
 0xaa1   : > { %v1690_v27 = vsub.f32 %v1682_v19, %v1688_v26 }
 0xaa2   : > { %v1687_v28 = vpop.xlane.xlu0 %1686 }
 0xaa3   : > { %v1689_v29 = vmul.f32 0.0078125, %v1687_v28  ;;  %v1692_v30 = vmul.f32 %v1690_v27, %v1690_v27 }
 0xaa5   : > { %v1691_v31 = vsub.f32 %v1683_v23, %v1689_v29  ;;  %1694 = vadd.xlane.f32.xlu1 %v1692_v30 }
 0xaa7   : > { %v1693_v32 = vmul.f32 %v1691_v31, %v1691_v31 }
 0xaa9   : > { %1696 = vadd.xlane.f32.xlu0 %v1693_v32 }
 0xb2e   : > { %v1695_v38 = vpop.xlane.xlu1 %1694 }
 0xb2f   : > { %v1698_v39 = vmul.f32 0.0078125, %v1695_v38 }
 0xb31   : > { %v1700_v40 = vadd.f32 1e-05, %v1698_v39 }
 0xb32   : > { %v1697_v41 = vpop.xlane.xlu0 %1696 }
 0xb33   : > { %2303 = vrsqrt.f32 %v1700_v40  ;;  %v1699_v42 = vmul.f32 0.0078125, %v1697_v41 }
 0xb35   : > { %v1701_v43 = vadd.f32 1e-05, %v1699_v42 }
 0xb37   : > { %2305 = vrsqrt.f32 %v1701_v43 }
 0xb40   : > { %v2304_v44 = vpop.eup %2303 }
 0xb41   : > { %v1704_v45 = vmul.f32 %v2304_v44, %v1690_v27 }
 0xb43   : > { %v1713_v49 = vmul.f32 %v1972_v46, %v1704_v45 }
 0xb44   : > { %v2306_v47 = vpop.eup %2305 }
 0xb45   : > { %v1705_v48 = vmul.f32 %v2306_v47, %v1691_v31  ;;  %v1722_v51 = vadd.f32 %v1973_v18, %v1713_v49 }
 0xb47   : > { %v1714_v50 = vmul.f32 %v1972_v46, %v1705_v48 }
 0xb49   : > { %v1723_v52 = vadd.f32 %v1973_v18, %v1714_v50 }
 0xb4b   : > { %v1724_v53 = vpack.c.bf16 %v1723_v52, %v1722_v51 }
 0xb4d   : > { %2187 = vmatmul.mubr.bf16.vlgmr.msra.gmra.mxu1 %v1724_v53 }
 0xc0d   : > { %v1830_v55 = vpop.f32.mrf.mxu1 }
 0xc0e   : > { %v1831_v56 = vadd.f32 %v1974_v54, %v1830_v55 }
 0xc0f   : > { %v2188_v57 = vpop.f32.mrf.mxu1 }
 0xc10   : > { %1837 = vst.msk [vmem:[%s496_s25] sm:$0xff] %vm1637_vm7, %v1831_v56 }
 0xc11   : > { %v1833_v58 = vpop.f32.mrf.mxu1 }
 0xc12   : > { %v1834_v59 = vadd.f32 %v1974_v54, %v1833_v58 }
 0xc13   : > { %v2189_v60 = vpop.f32.mrf.mxu1 }
 0xc14   : > { %1838 = vst.msk [vmem:[%s496_s25 + $0x8] sm:$0xff] %vm1637_vm7, %v1834_v59 }
 0xc15 PF: > { %s25_s18 = sadd.s32 1, %s2313_s18  }
 0xc16   : > { %p22_p4 = scmp.ge.s32.totalorder %s25_s18, 4  }
 0xc18   :  { %24 = sbr.rel (!%p22_p4) target bundleno = 1 (0x1), region = 110 }

</bundles_post_ra>
